<compile_context>
chip_gen: v7x
topology: tpu7x:2x2x1
jax: 0.10.0
libtpu: 0.0.40
codegen_flags: <defaults>
</compile_context>

<pallas_src>
import functools

import jax
import jax.numpy as jnp
from jax import lax
from jax.experimental import pallas as pl
from jax.experimental.pallas import tpu as pltpu

HIDDEN = 32          # nn.LSTM(hidden_size=32)
H4 = 4 * HIDDEN      # gate width (i, f, g, o)


def windfarm_kernel(
    x_ref,      # (T, F, B)   time-major, batch on lanes, f32
    wih0_ref,   # (4H, F)     layer-0 input weights (PyTorch orientation)
    whh0_ref,   # (4H, H)     layer-0 recurrent weights
    b0_ref,     # (4H, 1)     b_ih0 + b_hh0
    wih1_ref,   # (4H, H)     layer-1 input weights
    whh1_ref,   # (4H, H)     layer-1 recurrent weights
    b1_ref,     # (4H, 1)     b_ih1 + b_hh1
    out_ref,    # (H + 4F, B) (H + F if window_size == 1)
    *,
    window_size,
):
    T, H = window_size, HIDDEN
    B = out_ref.shape[1]

    xv = x_ref[...]                                   # (T, F, B): single read

    # ---- time-axis statistics on the already-loaded xv (VPU, off-chain) ----
    # Two-pass variance: avoids E[x^2] - mean^2 cancellation.
    inv_t = 1.0 / T
    mean = jnp.sum(xv, axis=0) * inv_t                # (F, B)
    feats = [mean]
    if T > 1:                                         # static Python branch
        cen = xv - mean[None]
        var = jnp.sum(cen * cen, axis=0) * inv_t      # population (unbiased=False)
        feats.extend([jnp.sqrt(var), jnp.max(xv, axis=0), jnp.min(xv, axis=0)])

    # Weight reads hoisted; Mosaic may keep them in VMEM / rematerialize.
    wih0 = wih0_ref[...]
    whh0 = whh0_ref[...]
    wih1 = wih1_ref[...]
    whh1 = whh1_ref[...]
    b0 = b0_ref[...]                                  # (4H, 1), not materialized to (4H, B)
    b1 = b1_ref[...]

    def gates_to_hc(gates, c):
        # Sigmoid only on i/f (rows 0:2H) and o (rows 3H:4H); g gets tanh.
        i_f = jax.nn.sigmoid(gates[0:2 * H, :])       # (2H, B)
        g = jnp.tanh(gates[2 * H:3 * H, :])
        o = jax.nn.sigmoid(gates[3 * H:4 * H, :])
        c_new = i_f[H:2 * H, :] * c + i_f[0:H, :] * g
        h_new = o * jnp.tanh(c_new)
        return h_new, c_new

    h0 = jnp.zeros((H, B), jnp.float32)
    c0 = jnp.zeros((H, B), jnp.float32)
    h1 = jnp.zeros((H, B), jnp.float32)
    c1 = jnp.zeros((H, B), jnp.float32)
    # Layer-1 recurrent contribution for the *next* step, pre-issued off the
    # critical chain.  h1_0 == 0, so it starts at just the bias.
    rec1 = jnp.broadcast_to(b1, (H4, B))

    # Static unroll over the small compile-time window.  Critical chain per
    # step: whh0@h0 (K=H) -> layer-0 activations -> wih1@h0 (K=H) -> layer-1
    # activations.  The x projection, bias adds and whh1@h1 are off-chain.
    for t in range(T):
        xp = jnp.dot(wih0, xv[t], preferred_element_type=jnp.float32) + b0
        gates0 = jnp.dot(whh0, h0, preferred_element_type=jnp.float32) + xp
        h0, c0 = gates_to_hc(gates0, c0)
        gates1 = jnp.dot(wih1, h0, preferred_element_type=jnp.float32) + rec1
        h1, c1 = gates_to_hc(gates1, c1)
        if t + 1 < T:
            rec1 = jnp.dot(whh1, h1, preferred_element_type=jnp.float32) + b1

    # ---- one fused lane-dense store of the full transposed feature block ----
    out_ref[...] = jnp.concatenate([h1] + feats, axis=0)


def _choose_batch_tile(B):
    """Pick (tile, padded_batch) for the lane (batch) axis."""
    if B <= 128:
        # Single tile; block == full array dim so the 128-lane rule is waived.
        # (Splitting a <=128 batch across v7x cores would force padding to 256.)
        return B, B
    # Multi-tile: lane tiles must be multiples of 128.  Cap at 256 (fills the
    # 256-wide MXU on v6e/v7x) and keep >= 2 tiles so both v7x TCs get work.
    half = -(-B // 2)
    tb = min(256, ((half + 127) // 128) * 128)
    b_pad = ((B + tb - 1) // tb) * tb
    return tb, b_pad


def init_params(key, n_features):
    """Deterministic LSTM parameter init (PyTorch shapes, uniform(+-1/sqrt(H)))."""
    ks = jax.random.split(key, 8)
    s = 1.0 / jnp.sqrt(jnp.float32(HIDDEN))

    def u(k, shape):
        return jax.random.uniform(k, shape, jnp.float32, -s, s)

    return dict(
        w_ih0=u(ks[0], (4 * HIDDEN, n_features)),
        w_hh0=u(ks[1], (4 * HIDDEN, HIDDEN)),
        b_ih0=u(ks[2], (4 * HIDDEN,)),
        b_hh0=u(ks[3], (4 * HIDDEN,)),
        w_ih1=u(ks[4], (4 * HIDDEN, HIDDEN)),
        w_hh1=u(ks[5], (4 * HIDDEN, HIDDEN)),
        b_ih1=u(ks[6], (4 * HIDDEN,)),
        b_hh1=u(ks[7], (4 * HIDDEN,)),
    )


def windfarm_forward(x, params, *, window_size, n_features):
    """Wrapper: layout glue + pallas_call.  x: (B, window*F) or (B, window, F)."""
    B = x.shape[0]
    T, F = window_size, n_features
    x = x.reshape(B, T, F).astype(jnp.float32)

    tb, b_pad = _choose_batch_tile(B)
    if b_pad != B:
        x = jnp.pad(x, ((0, b_pad - B), (0, 0), (0, 0)))

    # (B, T, F) -> (T, F, B): batch onto the 128-lane axis (done once in XLA).
    x_tfb = jnp.transpose(x, (1, 2, 0))

    n_stats = 4 if T > 1 else 1
    out_dim = HIDDEN + n_stats * F

    b0 = (params["b_ih0"] + params["b_hh0"]).reshape(H4, 1)
    b1 = (params["b_ih1"] + params["b_hh1"]).reshape(H4, 1)

    kernel = functools.partial(windfarm_kernel, window_size=T)
    nb = b_pad // tb

    out_t = pl.pallas_call(
        kernel,
        out_shape=jax.ShapeDtypeStruct((out_dim, b_pad), jnp.float32),
        grid=(nb,),
        in_specs=[
            pl.BlockSpec((T, F, tb), lambda i: (0, 0, i)),
            pl.BlockSpec((H4, F), lambda i: (0, 0)),
            pl.BlockSpec((H4, HIDDEN), lambda i: (0, 0)),
            pl.BlockSpec((H4, 1), lambda i: (0, 0)),
            pl.BlockSpec((H4, HIDDEN), lambda i: (0, 0)),
            pl.BlockSpec((H4, HIDDEN), lambda i: (0, 0)),
            pl.BlockSpec((H4, 1), lambda i: (0, 0)),
        ],
        out_specs=pl.BlockSpec((out_dim, tb), lambda i: (0, i)),
        compiler_params=pltpu.CompilerParams(
            dimension_semantics=("parallel",),        # shard batch tiles across TCs (v7x)
        ),
    )(x_tfb, params["w_ih0"], params["w_hh0"], b0,
      params["w_ih1"], params["w_hh1"], b1)

    out = out_t.T                                     # (b_pad, out_dim)
    return out[:B] if b_pad != B else out


# ------------------------- pure-JAX reference -------------------------
def reference_forward(x, params, *, window_size, n_features):
    B = x.shape[0]
    x = x.reshape(B, window_size, n_features).astype(jnp.float32)
    H = HIDDEN

    def run_layer(inp, w_ih, w_hh, b_ih, b_hh):
        wih_t, whh_t = w_ih.T, w_hh.T
        bias = (b_ih + b_hh)[None, :]

        def cell(carry, x_t):
            h, c = carry
            gates = x_t @ wih_t + h @ whh_t + bias
            i = jax.nn.sigmoid(gates[:, 0 * H:1 * H])
            f = jax.nn.sigmoid(gates[:, 1 * H:2 * H])
            g = jnp.tanh(gates[:, 2 * H:3 * H])
            o = jax.nn.sigmoid(gates[:, 3 * H:4 * H])
            c = f * c + i * g
            h = o * jnp.tanh(c)
            return (h, c), h

        init = (jnp.zeros((B, H), jnp.float32), jnp.zeros((B, H), jnp.float32))
        (_, _), hs = lax.scan(cell, init, jnp.transpose(inp, (1, 0, 2)))
        return jnp.transpose(hs, (1, 0, 2))           # (B, T, H)

    l0 = run_layer(x, params["w_ih0"], params["w_hh0"], params["b_ih0"], params["b_hh0"])
    l1 = run_layer(l0, params["w_ih1"], params["w_hh1"], params["b_ih1"], params["b_hh1"])
    lstm_features = l1[:, -1, :]

    feats = [lstm_features, jnp.mean(x, axis=1)]
    if window_size > 1:
        feats.extend([
            jnp.sqrt(jnp.mean((x - jnp.mean(x, axis=1, keepdims=True)) ** 2, axis=1)),
            jnp.max(x, axis=1),
            jnp.min(x, axis=1),
        ])
    return jnp.concatenate(feats, axis=1)


if __name__ == "__main__":
    batch, window_size, n_features = 2, 8, 4

    key = jax.random.PRNGKey(0)
    k_x, k_p = jax.random.split(key)
    x = jax.random.normal(k_x, (batch, window_size, n_features), jnp.float32)
    params = init_params(k_p, n_features)

    out = windfarm_forward(x, params, window_size=window_size, n_features=n_features)
    out = jax.block_until_ready(out)

    ref = reference_forward(x, params, window_size=window_size, n_features=n_features)
    assert out.shape == (batch, HIDDEN + 4 * n_features), out.shape
    assert jnp.allclose(out, ref, atol=1e-4, rtol=1e-4), float(jnp.max(jnp.abs(out - ref)))

    print("KERNEL_OK")
</pallas_src>

<mosaic_0001>
module attributes {stable_mosaic.version = 11 : i64} {
  func.func @windfarm_kernel(%arg0: i32, %arg1: memref<8x4x2xf32, #tpu.memory_space<vmem>>, %arg2: memref<128x4xf32, #tpu.memory_space<vmem>>, %arg3: memref<128x32xf32, #tpu.memory_space<vmem>>, %arg4: memref<128x1xf32, #tpu.memory_space<vmem>>, %arg5: memref<128x32xf32, #tpu.memory_space<vmem>>, %arg6: memref<128x32xf32, #tpu.memory_space<vmem>>, %arg7: memref<128x1xf32, #tpu.memory_space<vmem>>, %arg8: memref<48x2xf32, #tpu.memory_space<vmem>>) attributes {dimension_semantics = [#tpu.dimension_semantics<parallel>], iteration_bounds = array<i64: 1>, scalar_prefetch = 0 : i64, scratch_operands = 0 : i64, tpu.core_type = #tpu.core_type<tc>, window_params = [{transform_indices = @transform_0, window_bounds = array<i64: 8, 4, 2>}, {pipeline_mode = #tpu.pipeline_mode<synchronous>, transform_indices = @transform_1, window_bounds = array<i64: 128, 4>}, {pipeline_mode = #tpu.pipeline_mode<synchronous>, transform_indices = @transform_2, window_bounds = array<i64: 128, 32>}, {pipeline_mode = #tpu.pipeline_mode<synchronous>, transform_indices = @transform_3, window_bounds = array<i64: 128, 1>}, {pipeline_mode = #tpu.pipeline_mode<synchronous>, transform_indices = @transform_4, window_bounds = array<i64: 128, 32>}, {pipeline_mode = #tpu.pipeline_mode<synchronous>, transform_indices = @transform_5, window_bounds = array<i64: 128, 32>}, {pipeline_mode = #tpu.pipeline_mode<synchronous>, transform_indices = @transform_6, window_bounds = array<i64: 128, 1>}, {transform_indices = @transform_7, window_bounds = array<i64: 48, 2>}]} {
    %c0 = arith.constant 0 : index
    %c0_0 = arith.constant 0 : index
    %c0_1 = arith.constant 0 : index
    %0 = vector.load %arg1[%c0, %c0_0, %c0_1] : memref<8x4x2xf32, #tpu.memory_space<vmem>>, vector<8x4x2xf32>
    %cst = arith.constant dense<0.000000e+00> : vector<4x2xf32>
    %1 = vector.multi_reduction <add>, %0, %cst [0] : vector<8x4x2xf32> to vector<4x2xf32>
    %cst_2 = arith.constant 1.250000e-01 : f32
    %2 = vector.broadcast %cst_2 : f32 to vector<4x2xf32>
    %3 = arith.mulf %1, %2 : vector<4x2xf32>
    %4 = vector.shape_cast %3 : vector<4x2xf32> to vector<1x4x2xf32>
    %5 = vector.broadcast %4 : vector<1x4x2xf32> to vector<8x4x2xf32>
    %6 = arith.subf %0, %5 : vector<8x4x2xf32>
    %7 = arith.mulf %6, %6 : vector<8x4x2xf32>
    %cst_3 = arith.constant dense<0.000000e+00> : vector<4x2xf32>
    %8 = vector.multi_reduction <add>, %7, %cst_3 [0] : vector<8x4x2xf32> to vector<4x2xf32>
    %cst_4 = arith.constant 1.250000e-01 : f32
    %9 = vector.broadcast %cst_4 : f32 to vector<4x2xf32>
    %10 = arith.mulf %8, %9 : vector<4x2xf32>
    %11 = math.sqrt %10 : vector<4x2xf32>
    %cst_5 = arith.constant dense<0xFF800000> : vector<4x2xf32>
    %12 = vector.multi_reduction <maximumf>, %0, %cst_5 [0] : vector<8x4x2xf32> to vector<4x2xf32>
    %cst_6 = arith.constant dense<0x7F800000> : vector<4x2xf32>
    %13 = vector.multi_reduction <minimumf>, %0, %cst_6 [0] : vector<8x4x2xf32> to vector<4x2xf32>
    %c0_7 = arith.constant 0 : index
    %c0_8 = arith.constant 0 : index
    %14 = vector.load %arg2[%c0_7, %c0_8] : memref<128x4xf32, #tpu.memory_space<vmem>>, vector<128x4xf32>
    %c0_9 = arith.constant 0 : index
    %c0_10 = arith.constant 0 : index
    %15 = vector.load %arg3[%c0_9, %c0_10] : memref<128x32xf32, #tpu.memory_space<vmem>>, vector<128x32xf32>
    %c0_11 = arith.constant 0 : index
    %c0_12 = arith.constant 0 : index
    %16 = vector.load %arg5[%c0_11, %c0_12] : memref<128x32xf32, #tpu.memory_space<vmem>>, vector<128x32xf32>
    %c0_13 = arith.constant 0 : index
    %c0_14 = arith.constant 0 : index
    %17 = vector.load %arg6[%c0_13, %c0_14] : memref<128x32xf32, #tpu.memory_space<vmem>>, vector<128x32xf32>
    %c0_15 = arith.constant 0 : index
    %c0_16 = arith.constant 0 : index
    %18 = vector.load %arg4[%c0_15, %c0_16] : memref<128x1xf32, #tpu.memory_space<vmem>>, vector<128x1xf32>
    %c0_17 = arith.constant 0 : index
    %c0_18 = arith.constant 0 : index
    %19 = vector.load %arg7[%c0_17, %c0_18] : memref<128x1xf32, #tpu.memory_space<vmem>>, vector<128x1xf32>
    %cst_19 = arith.constant 0.000000e+00 : f32
    %20 = vector.broadcast %cst_19 : f32 to vector<32x2xf32>
    %cst_20 = arith.constant 0.000000e+00 : f32
    %21 = vector.broadcast %cst_20 : f32 to vector<32x2xf32>
    %cst_21 = arith.constant 0.000000e+00 : f32
    %22 = vector.broadcast %cst_21 : f32 to vector<32x2xf32>
    %23 = vector.shape_cast %19 : vector<128x1xf32> to vector<128x1xf32>
    %24 = vector.broadcast %23 : vector<128x1xf32> to vector<128x2xf32>
    %25 = vector.extract_strided_slice %0 {offsets = [0, 0, 0], sizes = [1, 4, 2], strides = [1, 1, 1]} : vector<8x4x2xf32> to vector<1x4x2xf32>
    %26 = vector.shape_cast %25 : vector<1x4x2xf32> to vector<4x2xf32>
    %cst_22 = arith.constant dense<0.000000e+00> : vector<128x2xf32>
    %27 = tpu.matmul %14, %26, %cst_22 {dimension_numbers = #tpu.dot_dimension_numbers<[1], [0], [0], [1], [0, 0, 1, 1], [], []>} : vector<128x4xf32>, vector<4x2xf32>, vector<128x2xf32> -> vector<128x2xf32>
    %28 = vector.broadcast %18 : vector<128x1xf32> to vector<128x2xf32>
    %29 = arith.addf %27, %28 : vector<128x2xf32>
    %cst_23 = arith.constant dense<0.000000e+00> : vector<128x2xf32>
    %30 = tpu.matmul %15, %20, %cst_23 {dimension_numbers = #tpu.dot_dimension_numbers<[1], [0], [0], [1], [0, 0, 1, 1], [], []>} : vector<128x32xf32>, vector<32x2xf32>, vector<128x2xf32> -> vector<128x2xf32>
    %31 = arith.addf %30, %29 : vector<128x2xf32>
    %32 = vector.extract_strided_slice %31 {offsets = [0, 0], sizes = [64, 2], strides = [1, 1]} : vector<128x2xf32> to vector<64x2xf32>
    %33 = arith.negf %32 : vector<64x2xf32>
    %34 = math.exp %33 : vector<64x2xf32>
    %cst_24 = arith.constant 1.000000e+00 : f32
    %35 = vector.broadcast %cst_24 : f32 to vector<64x2xf32>
    %36 = arith.addf %35, %34 : vector<64x2xf32>
    %37 = arith.divf %35, %36 : vector<64x2xf32>
    %38 = vector.extract_strided_slice %31 {offsets = [64, 0], sizes = [32, 2], strides = [1, 1]} : vector<128x2xf32> to vector<32x2xf32>
    %39 = math.tanh %38 : vector<32x2xf32>
    %40 = vector.extract_strided_slice %31 {offsets = [96, 0], sizes = [32, 2], strides = [1, 1]} : vector<128x2xf32> to vector<32x2xf32>
    %41 = arith.negf %40 : vector<32x2xf32>
    %42 = math.exp %41 : vector<32x2xf32>
    %cst_25 = arith.constant 1.000000e+00 : f32
    %43 = vector.broadcast %cst_25 : f32 to vector<32x2xf32>
    %44 = arith.addf %43, %42 : vector<32x2xf32>
    %45 = arith.divf %43, %44 : vector<32x2xf32>
    %46 = vector.extract_strided_slice %37 {offsets = [32, 0], sizes = [32, 2], strides = [1, 1]} : vector<64x2xf32> to vector<32x2xf32>
    %47 = arith.mulf %46, %21 : vector<32x2xf32>
    %48 = vector.extract_strided_slice %37 {offsets = [0, 0], sizes = [32, 2], strides = [1, 1]} : vector<64x2xf32> to vector<32x2xf32>
    %49 = arith.mulf %48, %39 : vector<32x2xf32>
    %50 = arith.addf %47, %49 : vector<32x2xf32>
    %51 = math.tanh %50 : vector<32x2xf32>
    %52 = arith.mulf %45, %51 : vector<32x2xf32>
    %cst_26 = arith.constant dense<0.000000e+00> : vector<128x2xf32>
    %53 = tpu.matmul %16, %52, %cst_26 {dimension_numbers = #tpu.dot_dimension_numbers<[1], [0], [0], [1], [0, 0, 1, 1], [], []>} : vector<128x32xf32>, vector<32x2xf32>, vector<128x2xf32> -> vector<128x2xf32>
    %54 = arith.addf %53, %24 : vector<128x2xf32>
    %55 = vector.extract_strided_slice %54 {offsets = [0, 0], sizes = [64, 2], strides = [1, 1]} : vector<128x2xf32> to vector<64x2xf32>
    %56 = arith.negf %55 : vector<64x2xf32>
    %57 = math.exp %56 : vector<64x2xf32>
    %cst_27 = arith.constant 1.000000e+00 : f32
    %58 = vector.broadcast %cst_27 : f32 to vector<64x2xf32>
    %59 = arith.addf %58, %57 : vector<64x2xf32>
    %60 = arith.divf %58, %59 : vector<64x2xf32>
    %61 = vector.extract_strided_slice %54 {offsets = [64, 0], sizes = [32, 2], strides = [1, 1]} : vector<128x2xf32> to vector<32x2xf32>
    %62 = math.tanh %61 : vector<32x2xf32>
    %63 = vector.extract_strided_slice %54 {offsets = [96, 0], sizes = [32, 2], strides = [1, 1]} : vector<128x2xf32> to vector<32x2xf32>
    %64 = arith.negf %63 : vector<32x2xf32>
    %65 = math.exp %64 : vector<32x2xf32>
    %cst_28 = arith.constant 1.000000e+00 : f32
    %66 = vector.broadcast %cst_28 : f32 to vector<32x2xf32>
    %67 = arith.addf %66, %65 : vector<32x2xf32>
    %68 = arith.divf %66, %67 : vector<32x2xf32>
    %69 = vector.extract_strided_slice %60 {offsets = [32, 0], sizes = [32, 2], strides = [1, 1]} : vector<64x2xf32> to vector<32x2xf32>
    %70 = arith.mulf %69, %22 : vector<32x2xf32>
    %71 = vector.extract_strided_slice %60 {offsets = [0, 0], sizes = [32, 2], strides = [1, 1]} : vector<64x2xf32> to vector<32x2xf32>
    %72 = arith.mulf %71, %62 : vector<32x2xf32>
    %73 = arith.addf %70, %72 : vector<32x2xf32>
    %74 = math.tanh %73 : vector<32x2xf32>
    %75 = arith.mulf %68, %74 : vector<32x2xf32>
    %cst_29 = arith.constant dense<0.000000e+00> : vector<128x2xf32>
    %76 = tpu.matmul %17, %75, %cst_29 {dimension_numbers = #tpu.dot_dimension_numbers<[1], [0], [0], [1], [0, 0, 1, 1], [], []>} : vector<128x32xf32>, vector<32x2xf32>, vector<128x2xf32> -> vector<128x2xf32>
    %77 = vector.broadcast %19 : vector<128x1xf32> to vector<128x2xf32>
    %78 = arith.addf %76, %77 : vector<128x2xf32>
    %79 = vector.extract_strided_slice %0 {offsets = [1, 0, 0], sizes = [1, 4, 2], strides = [1, 1, 1]} : vector<8x4x2xf32> to vector<1x4x2xf32>
    %80 = vector.shape_cast %79 : vector<1x4x2xf32> to vector<4x2xf32>
    %cst_30 = arith.constant dense<0.000000e+00> : vector<128x2xf32>
    %81 = tpu.matmul %14, %80, %cst_30 {dimension_numbers = #tpu.dot_dimension_numbers<[1], [0], [0], [1], [0, 0, 1, 1], [], []>} : vector<128x4xf32>, vector<4x2xf32>, vector<128x2xf32> -> vector<128x2xf32>
    %82 = vector.broadcast %18 : vector<128x1xf32> to vector<128x2xf32>
    %83 = arith.addf %81, %82 : vector<128x2xf32>
    %cst_31 = arith.constant dense<0.000000e+00> : vector<128x2xf32>
    %84 = tpu.matmul %15, %52, %cst_31 {dimension_numbers = #tpu.dot_dimension_numbers<[1], [0], [0], [1], [0, 0, 1, 1], [], []>} : vector<128x32xf32>, vector<32x2xf32>, vector<128x2xf32> -> vector<128x2xf32>
    %85 = arith.addf %84, %83 : vector<128x2xf32>
    %86 = vector.extract_strided_slice %85 {offsets = [0, 0], sizes = [64, 2], strides = [1, 1]} : vector<128x2xf32> to vector<64x2xf32>
    %87 = arith.negf %86 : vector<64x2xf32>
    %88 = math.exp %87 : vector<64x2xf32>
    %cst_32 = arith.constant 1.000000e+00 : f32
    %89 = vector.broadcast %cst_32 : f32 to vector<64x2xf32>
    %90 = arith.addf %89, %88 : vector<64x2xf32>
    %91 = arith.divf %89, %90 : vector<64x2xf32>
    %92 = vector.extract_strided_slice %85 {offsets = [64, 0], sizes = [32, 2], strides = [1, 1]} : vector<128x2xf32> to vector<32x2xf32>
    %93 = math.tanh %92 : vector<32x2xf32>
    %94 = vector.extract_strided_slice %85 {offsets = [96, 0], sizes = [32, 2], strides = [1, 1]} : vector<128x2xf32> to vector<32x2xf32>
    %95 = arith.negf %94 : vector<32x2xf32>
    %96 = math.exp %95 : vector<32x2xf32>
    %cst_33 = arith.constant 1.000000e+00 : f32
    %97 = vector.broadcast %cst_33 : f32 to vector<32x2xf32>
    %98 = arith.addf %97, %96 : vector<32x2xf32>
    %99 = arith.divf %97, %98 : vector<32x2xf32>
    %100 = vector.extract_strided_slice %91 {offsets = [32, 0], sizes = [32, 2], strides = [1, 1]} : vector<64x2xf32> to vector<32x2xf32>
    %101 = arith.mulf %100, %50 : vector<32x2xf32>
    %102 = vector.extract_strided_slice %91 {offsets = [0, 0], sizes = [32, 2], strides = [1, 1]} : vector<64x2xf32> to vector<32x2xf32>
    %103 = arith.mulf %102, %93 : vector<32x2xf32>
    %104 = arith.addf %101, %103 : vector<32x2xf32>
    %105 = math.tanh %104 : vector<32x2xf32>
    %106 = arith.mulf %99, %105 : vector<32x2xf32>
    %cst_34 = arith.constant dense<0.000000e+00> : vector<128x2xf32>
    %107 = tpu.matmul %16, %106, %cst_34 {dimension_numbers = #tpu.dot_dimension_numbers<[1], [0], [0], [1], [0, 0, 1, 1], [], []>} : vector<128x32xf32>, vector<32x2xf32>, vector<128x2xf32> -> vector<128x2xf32>
    %108 = arith.addf %107, %78 : vector<128x2xf32>
    %109 = vector.extract_strided_slice %108 {offsets = [0, 0], sizes = [64, 2], strides = [1, 1]} : vector<128x2xf32> to vector<64x2xf32>
    %110 = arith.negf %109 : vector<64x2xf32>
    %111 = math.exp %110 : vector<64x2xf32>
    %cst_35 = arith.constant 1.000000e+00 : f32
    %112 = vector.broadcast %cst_35 : f32 to vector<64x2xf32>
    %113 = arith.addf %112, %111 : vector<64x2xf32>
    %114 = arith.divf %112, %113 : vector<64x2xf32>
    %115 = vector.extract_strided_slice %108 {offsets = [64, 0], sizes = [32, 2], strides = [1, 1]} : vector<128x2xf32> to vector<32x2xf32>
    %116 = math.tanh %115 : vector<32x2xf32>
    %117 = vector.extract_strided_slice %108 {offsets = [96, 0], sizes = [32, 2], strides = [1, 1]} : vector<128x2xf32> to vector<32x2xf32>
    %118 = arith.negf %117 : vector<32x2xf32>
    %119 = math.exp %118 : vector<32x2xf32>
    %cst_36 = arith.constant 1.000000e+00 : f32
    %120 = vector.broadcast %cst_36 : f32 to vector<32x2xf32>
    %121 = arith.addf %120, %119 : vector<32x2xf32>
    %122 = arith.divf %120, %121 : vector<32x2xf32>
    %123 = vector.extract_strided_slice %114 {offsets = [32, 0], sizes = [32, 2], strides = [1, 1]} : vector<64x2xf32> to vector<32x2xf32>
    %124 = arith.mulf %123, %73 : vector<32x2xf32>
    %125 = vector.extract_strided_slice %114 {offsets = [0, 0], sizes = [32, 2], strides = [1, 1]} : vector<64x2xf32> to vector<32x2xf32>
    %126 = arith.mulf %125, %116 : vector<32x2xf32>
    %127 = arith.addf %124, %126 : vector<32x2xf32>
    %128 = math.tanh %127 : vector<32x2xf32>
    %129 = arith.mulf %122, %128 : vector<32x2xf32>
    %cst_37 = arith.constant dense<0.000000e+00> : vector<128x2xf32>
    %130 = tpu.matmul %17, %129, %cst_37 {dimension_numbers = #tpu.dot_dimension_numbers<[1], [0], [0], [1], [0, 0, 1, 1], [], []>} : vector<128x32xf32>, vector<32x2xf32>, vector<128x2xf32> -> vector<128x2xf32>
    %131 = vector.broadcast %19 : vector<128x1xf32> to vector<128x2xf32>
    %132 = arith.addf %130, %131 : vector<128x2xf32>
    %133 = vector.extract_strided_slice %0 {offsets = [2, 0, 0], sizes = [1, 4, 2], strides = [1, 1, 1]} : vector<8x4x2xf32> to vector<1x4x2xf32>
    %134 = vector.shape_cast %133 : vector<1x4x2xf32> to vector<4x2xf32>
    %cst_38 = arith.constant dense<0.000000e+00> : vector<128x2xf32>
    %135 = tpu.matmul %14, %134, %cst_38 {dimension_numbers = #tpu.dot_dimension_numbers<[1], [0], [0], [1], [0, 0, 1, 1], [], []>} : vector<128x4xf32>, vector<4x2xf32>, vector<128x2xf32> -> vector<128x2xf32>
    %136 = vector.broadcast %18 : vector<128x1xf32> to vector<128x2xf32>
    %137 = arith.addf %135, %136 : vector<128x2xf32>
    %cst_39 = arith.constant dense<0.000000e+00> : vector<128x2xf32>
    %138 = tpu.matmul %15, %106, %cst_39 {dimension_numbers = #tpu.dot_dimension_numbers<[1], [0], [0], [1], [0, 0, 1, 1], [], []>} : vector<128x32xf32>, vector<32x2xf32>, vector<128x2xf32> -> vector<128x2xf32>
    %139 = arith.addf %138, %137 : vector<128x2xf32>
    %140 = vector.extract_strided_slice %139 {offsets = [0, 0], sizes = [64, 2], strides = [1, 1]} : vector<128x2xf32> to vector<64x2xf32>
    %141 = arith.negf %140 : vector<64x2xf32>
    %142 = math.exp %141 : vector<64x2xf32>
    %cst_40 = arith.constant 1.000000e+00 : f32
    %143 = vector.broadcast %cst_40 : f32 to vector<64x2xf32>
    %144 = arith.addf %143, %142 : vector<64x2xf32>
    %145 = arith.divf %143, %144 : vector<64x2xf32>
    %146 = vector.extract_strided_slice %139 {offsets = [64, 0], sizes = [32, 2], strides = [1, 1]} : vector<128x2xf32> to vector<32x2xf32>
    %147 = math.tanh %146 : vector<32x2xf32>
    %148 = vector.extract_strided_slice %139 {offsets = [96, 0], sizes = [32, 2], strides = [1, 1]} : vector<128x2xf32> to vector<32x2xf32>
    %149 = arith.negf %148 : vector<32x2xf32>
    %150 = math.exp %149 : vector<32x2xf32>
    %cst_41 = arith.constant 1.000000e+00 : f32
    %151 = vector.broadcast %cst_41 : f32 to vector<32x2xf32>
    %152 = arith.addf %151, %150 : vector<32x2xf32>
    %153 = arith.divf %151, %152 : vector<32x2xf32>
    %154 = vector.extract_strided_slice %145 {offsets = [32, 0], sizes = [32, 2], strides = [1, 1]} : vector<64x2xf32> to vector<32x2xf32>
    %155 = arith.mulf %154, %104 : vector<32x2xf32>
    %156 = vector.extract_strided_slice %145 {offsets = [0, 0], sizes = [32, 2], strides = [1, 1]} : vector<64x2xf32> to vector<32x2xf32>
    %157 = arith.mulf %156, %147 : vector<32x2xf32>
    %158 = arith.addf %155, %157 : vector<32x2xf32>
    %159 = math.tanh %158 : vector<32x2xf32>
    %160 = arith.mulf %153, %159 : vector<32x2xf32>
    %cst_42 = arith.constant dense<0.000000e+00> : vector<128x2xf32>
    %161 = tpu.matmul %16, %160, %cst_42 {dimension_numbers = #tpu.dot_dimension_numbers<[1], [0], [0], [1], [0, 0, 1, 1], [], []>} : vector<128x32xf32>, vector<32x2xf32>, vector<128x2xf32> -> vector<128x2xf32>
    %162 = arith.addf %161, %132 : vector<128x2xf32>
    %163 = vector.extract_strided_slice %162 {offsets = [0, 0], sizes = [64, 2], strides = [1, 1]} : vector<128x2xf32> to vector<64x2xf32>
    %164 = arith.negf %163 : vector<64x2xf32>
    %165 = math.exp %164 : vector<64x2xf32>
    %cst_43 = arith.constant 1.000000e+00 : f32
    %166 = vector.broadcast %cst_43 : f32 to vector<64x2xf32>
    %167 = arith.addf %166, %165 : vector<64x2xf32>
    %168 = arith.divf %166, %167 : vector<64x2xf32>
    %169 = vector.extract_strided_slice %162 {offsets = [64, 0], sizes = [32, 2], strides = [1, 1]} : vector<128x2xf32> to vector<32x2xf32>
    %170 = math.tanh %169 : vector<32x2xf32>
    %171 = vector.extract_strided_slice %162 {offsets = [96, 0], sizes = [32, 2], strides = [1, 1]} : vector<128x2xf32> to vector<32x2xf32>
    %172 = arith.negf %171 : vector<32x2xf32>
    %173 = math.exp %172 : vector<32x2xf32>
    %cst_44 = arith.constant 1.000000e+00 : f32
    %174 = vector.broadcast %cst_44 : f32 to vector<32x2xf32>
    %175 = arith.addf %174, %173 : vector<32x2xf32>
    %176 = arith.divf %174, %175 : vector<32x2xf32>
    %177 = vector.extract_strided_slice %168 {offsets = [32, 0], sizes = [32, 2], strides = [1, 1]} : vector<64x2xf32> to vector<32x2xf32>
    %178 = arith.mulf %177, %127 : vector<32x2xf32>
    %179 = vector.extract_strided_slice %168 {offsets = [0, 0], sizes = [32, 2], strides = [1, 1]} : vector<64x2xf32> to vector<32x2xf32>
    %180 = arith.mulf %179, %170 : vector<32x2xf32>
    %181 = arith.addf %178, %180 : vector<32x2xf32>
    %182 = math.tanh %181 : vector<32x2xf32>
    %183 = arith.mulf %176, %182 : vector<32x2xf32>
    %cst_45 = arith.constant dense<0.000000e+00> : vector<128x2xf32>
    %184 = tpu.matmul %17, %183, %cst_45 {dimension_numbers = #tpu.dot_dimension_numbers<[1], [0], [0], [1], [0, 0, 1, 1], [], []>} : vector<128x32xf32>, vector<32x2xf32>, vector<128x2xf32> -> vector<128x2xf32>
    %185 = vector.broadcast %19 : vector<128x1xf32> to vector<128x2xf32>
    %186 = arith.addf %184, %185 : vector<128x2xf32>
    %187 = vector.extract_strided_slice %0 {offsets = [3, 0, 0], sizes = [1, 4, 2], strides = [1, 1, 1]} : vector<8x4x2xf32> to vector<1x4x2xf32>
    %188 = vector.shape_cast %187 : vector<1x4x2xf32> to vector<4x2xf32>
    %cst_46 = arith.constant dense<0.000000e+00> : vector<128x2xf32>
    %189 = tpu.matmul %14, %188, %cst_46 {dimension_numbers = #tpu.dot_dimension_numbers<[1], [0], [0], [1], [0, 0, 1, 1], [], []>} : vector<128x4xf32>, vector<4x2xf32>, vector<128x2xf32> -> vector<128x2xf32>
    %190 = vector.broadcast %18 : vector<128x1xf32> to vector<128x2xf32>
    %191 = arith.addf %189, %190 : vector<128x2xf32>
    %cst_47 = arith.constant dense<0.000000e+00> : vector<128x2xf32>
    %192 = tpu.matmul %15, %160, %cst_47 {dimension_numbers = #tpu.dot_dimension_numbers<[1], [0], [0], [1], [0, 0, 1, 1], [], []>} : vector<128x32xf32>, vector<32x2xf32>, vector<128x2xf32> -> vector<128x2xf32>
    %193 = arith.addf %192, %191 : vector<128x2xf32>
    %194 = vector.extract_strided_slice %193 {offsets = [0, 0], sizes = [64, 2], strides = [1, 1]} : vector<128x2xf32> to vector<64x2xf32>
    %195 = arith.negf %194 : vector<64x2xf32>
    %196 = math.exp %195 : vector<64x2xf32>
    %cst_48 = arith.constant 1.000000e+00 : f32
    %197 = vector.broadcast %cst_48 : f32 to vector<64x2xf32>
    %198 = arith.addf %197, %196 : vector<64x2xf32>
    %199 = arith.divf %197, %198 : vector<64x2xf32>
    %200 = vector.extract_strided_slice %193 {offsets = [64, 0], sizes = [32, 2], strides = [1, 1]} : vector<128x2xf32> to vector<32x2xf32>
    %201 = math.tanh %200 : vector<32x2xf32>
    %202 = vector.extract_strided_slice %193 {offsets = [96, 0], sizes = [32, 2], strides = [1, 1]} : vector<128x2xf32> to vector<32x2xf32>
    %203 = arith.negf %202 : vector<32x2xf32>
    %204 = math.exp %203 : vector<32x2xf32>
    %cst_49 = arith.constant 1.000000e+00 : f32
    %205 = vector.broadcast %cst_49 : f32 to vector<32x2xf32>
    %206 = arith.addf %205, %204 : vector<32x2xf32>
    %207 = arith.divf %205, %206 : vector<32x2xf32>
    %208 = vector.extract_strided_slice %199 {offsets = [32, 0], sizes = [32, 2], strides = [1, 1]} : vector<64x2xf32> to vector<32x2xf32>
    %209 = arith.mulf %208, %158 : vector<32x2xf32>
    %210 = vector.extract_strided_slice %199 {offsets = [0, 0], sizes = [32, 2], strides = [1, 1]} : vector<64x2xf32> to vector<32x2xf32>
    %211 = arith.mulf %210, %201 : vector<32x2xf32>
    %212 = arith.addf %209, %211 : vector<32x2xf32>
    %213 = math.tanh %212 : vector<32x2xf32>
    %214 = arith.mulf %207, %213 : vector<32x2xf32>
    %cst_50 = arith.constant dense<0.000000e+00> : vector<128x2xf32>
    %215 = tpu.matmul %16, %214, %cst_50 {dimension_numbers = #tpu.dot_dimension_numbers<[1], [0], [0], [1], [0, 0, 1, 1], [], []>} : vector<128x32xf32>, vector<32x2xf32>, vector<128x2xf32> -> vector<128x2xf32>
    %216 = arith.addf %215, %186 : vector<128x2xf32>
    %217 = vector.extract_strided_slice %216 {offsets = [0, 0], sizes = [64, 2], strides = [1, 1]} : vector<128x2xf32> to vector<64x2xf32>
    %218 = arith.negf %217 : vector<64x2xf32>
    %219 = math.exp %218 : vector<64x2xf32>
    %cst_51 = arith.constant 1.000000e+00 : f32
    %220 = vector.broadcast %cst_51 : f32 to vector<64x2xf32>
    %221 = arith.addf %220, %219 : vector<64x2xf32>
    %222 = arith.divf %220, %221 : vector<64x2xf32>
    %223 = vector.extract_strided_slice %216 {offsets = [64, 0], sizes = [32, 2], strides = [1, 1]} : vector<128x2xf32> to vector<32x2xf32>
    %224 = math.tanh %223 : vector<32x2xf32>
    %225 = vector.extract_strided_slice %216 {offsets = [96, 0], sizes = [32, 2], strides = [1, 1]} : vector<128x2xf32> to vector<32x2xf32>
    %226 = arith.negf %225 : vector<32x2xf32>
    %227 = math.exp %226 : vector<32x2xf32>
    %cst_52 = arith.constant 1.000000e+00 : f32
    %228 = vector.broadcast %cst_52 : f32 to vector<32x2xf32>
    %229 = arith.addf %228, %227 : vector<32x2xf32>
    %230 = arith.divf %228, %229 : vector<32x2xf32>
    %231 = vector.extract_strided_slice %222 {offsets = [32, 0], sizes = [32, 2], strides = [1, 1]} : vector<64x2xf32> to vector<32x2xf32>
    %232 = arith.mulf %231, %181 : vector<32x2xf32>
    %233 = vector.extract_strided_slice %222 {offsets = [0, 0], sizes = [32, 2], strides = [1, 1]} : vector<64x2xf32> to vector<32x2xf32>
    %234 = arith.mulf %233, %224 : vector<32x2xf32>
    %235 = arith.addf %232, %234 : vector<32x2xf32>
    %236 = math.tanh %235 : vector<32x2xf32>
    %237 = arith.mulf %230, %236 : vector<32x2xf32>
    %cst_53 = arith.constant dense<0.000000e+00> : vector<128x2xf32>
    %238 = tpu.matmul %17, %237, %cst_53 {dimension_numbers = #tpu.dot_dimension_numbers<[1], [0], [0], [1], [0, 0, 1, 1], [], []>} : vector<128x32xf32>, vector<32x2xf32>, vector<128x2xf32> -> vector<128x2xf32>
    %239 = vector.broadcast %19 : vector<128x1xf32> to vector<128x2xf32>
    %240 = arith.addf %238, %239 : vector<128x2xf32>
    %241 = vector.extract_strided_slice %0 {offsets = [4, 0, 0], sizes = [1, 4, 2], strides = [1, 1, 1]} : vector<8x4x2xf32> to vector<1x4x2xf32>
    %242 = vector.shape_cast %241 : vector<1x4x2xf32> to vector<4x2xf32>
    %cst_54 = arith.constant dense<0.000000e+00> : vector<128x2xf32>
    %243 = tpu.matmul %14, %242, %cst_54 {dimension_numbers = #tpu.dot_dimension_numbers<[1], [0], [0], [1], [0, 0, 1, 1], [], []>} : vector<128x4xf32>, vector<4x2xf32>, vector<128x2xf32> -> vector<128x2xf32>
    %244 = vector.broadcast %18 : vector<128x1xf32> to vector<128x2xf32>
    %245 = arith.addf %243, %244 : vector<128x2xf32>
    %cst_55 = arith.constant dense<0.000000e+00> : vector<128x2xf32>
    %246 = tpu.matmul %15, %214, %cst_55 {dimension_numbers = #tpu.dot_dimension_numbers<[1], [0], [0], [1], [0, 0, 1, 1], [], []>} : vector<128x32xf32>, vector<32x2xf32>, vector<128x2xf32> -> vector<128x2xf32>
    %247 = arith.addf %246, %245 : vector<128x2xf32>
    %248 = vector.extract_strided_slice %247 {offsets = [0, 0], sizes = [64, 2], strides = [1, 1]} : vector<128x2xf32> to vector<64x2xf32>
    %249 = arith.negf %248 : vector<64x2xf32>
    %250 = math.exp %249 : vector<64x2xf32>
    %cst_56 = arith.constant 1.000000e+00 : f32
    %251 = vector.broadcast %cst_56 : f32 to vector<64x2xf32>
    %252 = arith.addf %251, %250 : vector<64x2xf32>
    %253 = arith.divf %251, %252 : vector<64x2xf32>
    %254 = vector.extract_strided_slice %247 {offsets = [64, 0], sizes = [32, 2], strides = [1, 1]} : vector<128x2xf32> to vector<32x2xf32>
    %255 = math.tanh %254 : vector<32x2xf32>
    %256 = vector.extract_strided_slice %247 {offsets = [96, 0], sizes = [32, 2], strides = [1, 1]} : vector<128x2xf32> to vector<32x2xf32>
    %257 = arith.negf %256 : vector<32x2xf32>
    %258 = math.exp %257 : vector<32x2xf32>
    %cst_57 = arith.constant 1.000000e+00 : f32
    %259 = vector.broadcast %cst_57 : f32 to vector<32x2xf32>
    %260 = arith.addf %259, %258 : vector<32x2xf32>
    %261 = arith.divf %259, %260 : vector<32x2xf32>
    %262 = vector.extract_strided_slice %253 {offsets = [32, 0], sizes = [32, 2], strides = [1, 1]} : vector<64x2xf32> to vector<32x2xf32>
    %263 = arith.mulf %262, %212 : vector<32x2xf32>
    %264 = vector.extract_strided_slice %253 {offsets = [0, 0], sizes = [32, 2], strides = [1, 1]} : vector<64x2xf32> to vector<32x2xf32>
    %265 = arith.mulf %264, %255 : vector<32x2xf32>
    %266 = arith.addf %263, %265 : vector<32x2xf32>
    %267 = math.tanh %266 : vector<32x2xf32>
    %268 = arith.mulf %261, %267 : vector<32x2xf32>
    %cst_58 = arith.constant dense<0.000000e+00> : vector<128x2xf32>
    %269 = tpu.matmul %16, %268, %cst_58 {dimension_numbers = #tpu.dot_dimension_numbers<[1], [0], [0], [1], [0, 0, 1, 1], [], []>} : vector<128x32xf32>, vector<32x2xf32>, vector<128x2xf32> -> vector<128x2xf32>
    %270 = arith.addf %269, %240 : vector<128x2xf32>
    %271 = vector.extract_strided_slice %270 {offsets = [0, 0], sizes = [64, 2], strides = [1, 1]} : vector<128x2xf32> to vector<64x2xf32>
    %272 = arith.negf %271 : vector<64x2xf32>
    %273 = math.exp %272 : vector<64x2xf32>
    %cst_59 = arith.constant 1.000000e+00 : f32
    %274 = vector.broadcast %cst_59 : f32 to vector<64x2xf32>
    %275 = arith.addf %274, %273 : vector<64x2xf32>
    %276 = arith.divf %274, %275 : vector<64x2xf32>
    %277 = vector.extract_strided_slice %270 {offsets = [64, 0], sizes = [32, 2], strides = [1, 1]} : vector<128x2xf32> to vector<32x2xf32>
    %278 = math.tanh %277 : vector<32x2xf32>
    %279 = vector.extract_strided_slice %270 {offsets = [96, 0], sizes = [32, 2], strides = [1, 1]} : vector<128x2xf32> to vector<32x2xf32>
    %280 = arith.negf %279 : vector<32x2xf32>
    %281 = math.exp %280 : vector<32x2xf32>
    %cst_60 = arith.constant 1.000000e+00 : f32
    %282 = vector.broadcast %cst_60 : f32 to vector<32x2xf32>
    %283 = arith.addf %282, %281 : vector<32x2xf32>
    %284 = arith.divf %282, %283 : vector<32x2xf32>
    %285 = vector.extract_strided_slice %276 {offsets = [32, 0], sizes = [32, 2], strides = [1, 1]} : vector<64x2xf32> to vector<32x2xf32>
    %286 = arith.mulf %285, %235 : vector<32x2xf32>
    %287 = vector.extract_strided_slice %276 {offsets = [0, 0], sizes = [32, 2], strides = [1, 1]} : vector<64x2xf32> to vector<32x2xf32>
    %288 = arith.mulf %287, %278 : vector<32x2xf32>
    %289 = arith.addf %286, %288 : vector<32x2xf32>
    %290 = math.tanh %289 : vector<32x2xf32>
    %291 = arith.mulf %284, %290 : vector<32x2xf32>
    %cst_61 = arith.constant dense<0.000000e+00> : vector<128x2xf32>
    %292 = tpu.matmul %17, %291, %cst_61 {dimension_numbers = #tpu.dot_dimension_numbers<[1], [0], [0], [1], [0, 0, 1, 1], [], []>} : vector<128x32xf32>, vector<32x2xf32>, vector<128x2xf32> -> vector<128x2xf32>
    %293 = vector.broadcast %19 : vector<128x1xf32> to vector<128x2xf32>
    %294 = arith.addf %292, %293 : vector<128x2xf32>
    %295 = vector.extract_strided_slice %0 {offsets = [5, 0, 0], sizes = [1, 4, 2], strides = [1, 1, 1]} : vector<8x4x2xf32> to vector<1x4x2xf32>
    %296 = vector.shape_cast %295 : vector<1x4x2xf32> to vector<4x2xf32>
    %cst_62 = arith.constant dense<0.000000e+00> : vector<128x2xf32>
    %297 = tpu.matmul %14, %296, %cst_62 {dimension_numbers = #tpu.dot_dimension_numbers<[1], [0], [0], [1], [0, 0, 1, 1], [], []>} : vector<128x4xf32>, vector<4x2xf32>, vector<128x2xf32> -> vector<128x2xf32>
    %298 = vector.broadcast %18 : vector<128x1xf32> to vector<128x2xf32>
    %299 = arith.addf %297, %298 : vector<128x2xf32>
    %cst_63 = arith.constant dense<0.000000e+00> : vector<128x2xf32>
    %300 = tpu.matmul %15, %268, %cst_63 {dimension_numbers = #tpu.dot_dimension_numbers<[1], [0], [0], [1], [0, 0, 1, 1], [], []>} : vector<128x32xf32>, vector<32x2xf32>, vector<128x2xf32> -> vector<128x2xf32>
    %301 = arith.addf %300, %299 : vector<128x2xf32>
    %302 = vector.extract_strided_slice %301 {offsets = [0, 0], sizes = [64, 2], strides = [1, 1]} : vector<128x2xf32> to vector<64x2xf32>
    %303 = arith.negf %302 : vector<64x2xf32>
    %304 = math.exp %303 : vector<64x2xf32>
    %cst_64 = arith.constant 1.000000e+00 : f32
    %305 = vector.broadcast %cst_64 : f32 to vector<64x2xf32>
    %306 = arith.addf %305, %304 : vector<64x2xf32>
    %307 = arith.divf %305, %306 : vector<64x2xf32>
    %308 = vector.extract_strided_slice %301 {offsets = [64, 0], sizes = [32, 2], strides = [1, 1]} : vector<128x2xf32> to vector<32x2xf32>
    %309 = math.tanh %308 : vector<32x2xf32>
    %310 = vector.extract_strided_slice %301 {offsets = [96, 0], sizes = [32, 2], strides = [1, 1]} : vector<128x2xf32> to vector<32x2xf32>
    %311 = arith.negf %310 : vector<32x2xf32>
    %312 = math.exp %311 : vector<32x2xf32>
    %cst_65 = arith.constant 1.000000e+00 : f32
    %313 = vector.broadcast %cst_65 : f32 to vector<32x2xf32>
    %314 = arith.addf %313, %312 : vector<32x2xf32>
    %315 = arith.divf %313, %314 : vector<32x2xf32>
    %316 = vector.extract_strided_slice %307 {offsets = [32, 0], sizes = [32, 2], strides = [1, 1]} : vector<64x2xf32> to vector<32x2xf32>
    %317 = arith.mulf %316, %266 : vector<32x2xf32>
    %318 = vector.extract_strided_slice %307 {offsets = [0, 0], sizes = [32, 2], strides = [1, 1]} : vector<64x2xf32> to vector<32x2xf32>
    %319 = arith.mulf %318, %309 : vector<32x2xf32>
    %320 = arith.addf %317, %319 : vector<32x2xf32>
    %321 = math.tanh %320 : vector<32x2xf32>
    %322 = arith.mulf %315, %321 : vector<32x2xf32>
    %cst_66 = arith.constant dense<0.000000e+00> : vector<128x2xf32>
    %323 = tpu.matmul %16, %322, %cst_66 {dimension_numbers = #tpu.dot_dimension_numbers<[1], [0], [0], [1], [0, 0, 1, 1], [], []>} : vector<128x32xf32>, vector<32x2xf32>, vector<128x2xf32> -> vector<128x2xf32>
    %324 = arith.addf %323, %294 : vector<128x2xf32>
    %325 = vector.extract_strided_slice %324 {offsets = [0, 0], sizes = [64, 2], strides = [1, 1]} : vector<128x2xf32> to vector<64x2xf32>
    %326 = arith.negf %325 : vector<64x2xf32>
    %327 = math.exp %326 : vector<64x2xf32>
    %cst_67 = arith.constant 1.000000e+00 : f32
    %328 = vector.broadcast %cst_67 : f32 to vector<64x2xf32>
    %329 = arith.addf %328, %327 : vector<64x2xf32>
    %330 = arith.divf %328, %329 : vector<64x2xf32>
    %331 = vector.extract_strided_slice %324 {offsets = [64, 0], sizes = [32, 2], strides = [1, 1]} : vector<128x2xf32> to vector<32x2xf32>
    %332 = math.tanh %331 : vector<32x2xf32>
    %333 = vector.extract_strided_slice %324 {offsets = [96, 0], sizes = [32, 2], strides = [1, 1]} : vector<128x2xf32> to vector<32x2xf32>
    %334 = arith.negf %333 : vector<32x2xf32>
    %335 = math.exp %334 : vector<32x2xf32>
    %cst_68 = arith.constant 1.000000e+00 : f32
    %336 = vector.broadcast %cst_68 : f32 to vector<32x2xf32>
    %337 = arith.addf %336, %335 : vector<32x2xf32>
    %338 = arith.divf %336, %337 : vector<32x2xf32>
    %339 = vector.extract_strided_slice %330 {offsets = [32, 0], sizes = [32, 2], strides = [1, 1]} : vector<64x2xf32> to vector<32x2xf32>
    %340 = arith.mulf %339, %289 : vector<32x2xf32>
    %341 = vector.extract_strided_slice %330 {offsets = [0, 0], sizes = [32, 2], strides = [1, 1]} : vector<64x2xf32> to vector<32x2xf32>
    %342 = arith.mulf %341, %332 : vector<32x2xf32>
    %343 = arith.addf %340, %342 : vector<32x2xf32>
    %344 = math.tanh %343 : vector<32x2xf32>
    %345 = arith.mulf %338, %344 : vector<32x2xf32>
    %cst_69 = arith.constant dense<0.000000e+00> : vector<128x2xf32>
    %346 = tpu.matmul %17, %345, %cst_69 {dimension_numbers = #tpu.dot_dimension_numbers<[1], [0], [0], [1], [0, 0, 1, 1], [], []>} : vector<128x32xf32>, vector<32x2xf32>, vector<128x2xf32> -> vector<128x2xf32>
    %347 = vector.broadcast %19 : vector<128x1xf32> to vector<128x2xf32>
    %348 = arith.addf %346, %347 : vector<128x2xf32>
    %349 = vector.extract_strided_slice %0 {offsets = [6, 0, 0], sizes = [1, 4, 2], strides = [1, 1, 1]} : vector<8x4x2xf32> to vector<1x4x2xf32>
    %350 = vector.shape_cast %349 : vector<1x4x2xf32> to vector<4x2xf32>
    %cst_70 = arith.constant dense<0.000000e+00> : vector<128x2xf32>
    %351 = tpu.matmul %14, %350, %cst_70 {dimension_numbers = #tpu.dot_dimension_numbers<[1], [0], [0], [1], [0, 0, 1, 1], [], []>} : vector<128x4xf32>, vector<4x2xf32>, vector<128x2xf32> -> vector<128x2xf32>
    %352 = vector.broadcast %18 : vector<128x1xf32> to vector<128x2xf32>
    %353 = arith.addf %351, %352 : vector<128x2xf32>
    %cst_71 = arith.constant dense<0.000000e+00> : vector<128x2xf32>
    %354 = tpu.matmul %15, %322, %cst_71 {dimension_numbers = #tpu.dot_dimension_numbers<[1], [0], [0], [1], [0, 0, 1, 1], [], []>} : vector<128x32xf32>, vector<32x2xf32>, vector<128x2xf32> -> vector<128x2xf32>
    %355 = arith.addf %354, %353 : vector<128x2xf32>
    %356 = vector.extract_strided_slice %355 {offsets = [0, 0], sizes = [64, 2], strides = [1, 1]} : vector<128x2xf32> to vector<64x2xf32>
    %357 = arith.negf %356 : vector<64x2xf32>
    %358 = math.exp %357 : vector<64x2xf32>
    %cst_72 = arith.constant 1.000000e+00 : f32
    %359 = vector.broadcast %cst_72 : f32 to vector<64x2xf32>
    %360 = arith.addf %359, %358 : vector<64x2xf32>
    %361 = arith.divf %359, %360 : vector<64x2xf32>
    %362 = vector.extract_strided_slice %355 {offsets = [64, 0], sizes = [32, 2], strides = [1, 1]} : vector<128x2xf32> to vector<32x2xf32>
    %363 = math.tanh %362 : vector<32x2xf32>
    %364 = vector.extract_strided_slice %355 {offsets = [96, 0], sizes = [32, 2], strides = [1, 1]} : vector<128x2xf32> to vector<32x2xf32>
    %365 = arith.negf %364 : vector<32x2xf32>
    %366 = math.exp %365 : vector<32x2xf32>
    %cst_73 = arith.constant 1.000000e+00 : f32
    %367 = vector.broadcast %cst_73 : f32 to vector<32x2xf32>
    %368 = arith.addf %367, %366 : vector<32x2xf32>
    %369 = arith.divf %367, %368 : vector<32x2xf32>
    %370 = vector.extract_strided_slice %361 {offsets = [32, 0], sizes = [32, 2], strides = [1, 1]} : vector<64x2xf32> to vector<32x2xf32>
    %371 = arith.mulf %370, %320 : vector<32x2xf32>
    %372 = vector.extract_strided_slice %361 {offsets = [0, 0], sizes = [32, 2], strides = [1, 1]} : vector<64x2xf32> to vector<32x2xf32>
    %373 = arith.mulf %372, %363 : vector<32x2xf32>
    %374 = arith.addf %371, %373 : vector<32x2xf32>
    %375 = math.tanh %374 : vector<32x2xf32>
    %376 = arith.mulf %369, %375 : vector<32x2xf32>
    %cst_74 = arith.constant dense<0.000000e+00> : vector<128x2xf32>
    %377 = tpu.matmul %16, %376, %cst_74 {dimension_numbers = #tpu.dot_dimension_numbers<[1], [0], [0], [1], [0, 0, 1, 1], [], []>} : vector<128x32xf32>, vector<32x2xf32>, vector<128x2xf32> -> vector<128x2xf32>
    %378 = arith.addf %377, %348 : vector<128x2xf32>
    %379 = vector.extract_strided_slice %378 {offsets = [0, 0], sizes = [64, 2], strides = [1, 1]} : vector<128x2xf32> to vector<64x2xf32>
    %380 = arith.negf %379 : vector<64x2xf32>
    %381 = math.exp %380 : vector<64x2xf32>
    %cst_75 = arith.constant 1.000000e+00 : f32
    %382 = vector.broadcast %cst_75 : f32 to vector<64x2xf32>
    %383 = arith.addf %382, %381 : vector<64x2xf32>
    %384 = arith.divf %382, %383 : vector<64x2xf32>
    %385 = vector.extract_strided_slice %378 {offsets = [64, 0], sizes = [32, 2], strides = [1, 1]} : vector<128x2xf32> to vector<32x2xf32>
    %386 = math.tanh %385 : vector<32x2xf32>
    %387 = vector.extract_strided_slice %378 {offsets = [96, 0], sizes = [32, 2], strides = [1, 1]} : vector<128x2xf32> to vector<32x2xf32>
    %388 = arith.negf %387 : vector<32x2xf32>
    %389 = math.exp %388 : vector<32x2xf32>
    %cst_76 = arith.constant 1.000000e+00 : f32
    %390 = vector.broadcast %cst_76 : f32 to vector<32x2xf32>
    %391 = arith.addf %390, %389 : vector<32x2xf32>
    %392 = arith.divf %390, %391 : vector<32x2xf32>
    %393 = vector.extract_strided_slice %384 {offsets = [32, 0], sizes = [32, 2], strides = [1, 1]} : vector<64x2xf32> to vector<32x2xf32>
    %394 = arith.mulf %393, %343 : vector<32x2xf32>
    %395 = vector.extract_strided_slice %384 {offsets = [0, 0], sizes = [32, 2], strides = [1, 1]} : vector<64x2xf32> to vector<32x2xf32>
    %396 = arith.mulf %395, %386 : vector<32x2xf32>
    %397 = arith.addf %394, %396 : vector<32x2xf32>
    %398 = math.tanh %397 : vector<32x2xf32>
    %399 = arith.mulf %392, %398 : vector<32x2xf32>
    %cst_77 = arith.constant dense<0.000000e+00> : vector<128x2xf32>
    %400 = tpu.matmul %17, %399, %cst_77 {dimension_numbers = #tpu.dot_dimension_numbers<[1], [0], [0], [1], [0, 0, 1, 1], [], []>} : vector<128x32xf32>, vector<32x2xf32>, vector<128x2xf32> -> vector<128x2xf32>
    %401 = vector.broadcast %19 : vector<128x1xf32> to vector<128x2xf32>
    %402 = arith.addf %400, %401 : vector<128x2xf32>
    %403 = vector.extract_strided_slice %0 {offsets = [7, 0, 0], sizes = [1, 4, 2], strides = [1, 1, 1]} : vector<8x4x2xf32> to vector<1x4x2xf32>
    %404 = vector.shape_cast %403 : vector<1x4x2xf32> to vector<4x2xf32>
    %cst_78 = arith.constant dense<0.000000e+00> : vector<128x2xf32>
    %405 = tpu.matmul %14, %404, %cst_78 {dimension_numbers = #tpu.dot_dimension_numbers<[1], [0], [0], [1], [0, 0, 1, 1], [], []>} : vector<128x4xf32>, vector<4x2xf32>, vector<128x2xf32> -> vector<128x2xf32>
    %406 = vector.broadcast %18 : vector<128x1xf32> to vector<128x2xf32>
    %407 = arith.addf %405, %406 : vector<128x2xf32>
    %cst_79 = arith.constant dense<0.000000e+00> : vector<128x2xf32>
    %408 = tpu.matmul %15, %376, %cst_79 {dimension_numbers = #tpu.dot_dimension_numbers<[1], [0], [0], [1], [0, 0, 1, 1], [], []>} : vector<128x32xf32>, vector<32x2xf32>, vector<128x2xf32> -> vector<128x2xf32>
    %409 = arith.addf %408, %407 : vector<128x2xf32>
    %410 = vector.extract_strided_slice %409 {offsets = [0, 0], sizes = [64, 2], strides = [1, 1]} : vector<128x2xf32> to vector<64x2xf32>
    %411 = arith.negf %410 : vector<64x2xf32>
    %412 = math.exp %411 : vector<64x2xf32>
    %cst_80 = arith.constant 1.000000e+00 : f32
    %413 = vector.broadcast %cst_80 : f32 to vector<64x2xf32>
    %414 = arith.addf %413, %412 : vector<64x2xf32>
    %415 = arith.divf %413, %414 : vector<64x2xf32>
    %416 = vector.extract_strided_slice %409 {offsets = [64, 0], sizes = [32, 2], strides = [1, 1]} : vector<128x2xf32> to vector<32x2xf32>
    %417 = math.tanh %416 : vector<32x2xf32>
    %418 = vector.extract_strided_slice %409 {offsets = [96, 0], sizes = [32, 2], strides = [1, 1]} : vector<128x2xf32> to vector<32x2xf32>
    %419 = arith.negf %418 : vector<32x2xf32>
    %420 = math.exp %419 : vector<32x2xf32>
    %cst_81 = arith.constant 1.000000e+00 : f32
    %421 = vector.broadcast %cst_81 : f32 to vector<32x2xf32>
    %422 = arith.addf %421, %420 : vector<32x2xf32>
    %423 = arith.divf %421, %422 : vector<32x2xf32>
    %424 = vector.extract_strided_slice %415 {offsets = [32, 0], sizes = [32, 2], strides = [1, 1]} : vector<64x2xf32> to vector<32x2xf32>
    %425 = arith.mulf %424, %374 : vector<32x2xf32>
    %426 = vector.extract_strided_slice %415 {offsets = [0, 0], sizes = [32, 2], strides = [1, 1]} : vector<64x2xf32> to vector<32x2xf32>
    %427 = arith.mulf %426, %417 : vector<32x2xf32>
    %428 = arith.addf %425, %427 : vector<32x2xf32>
    %429 = math.tanh %428 : vector<32x2xf32>
    %430 = arith.mulf %423, %429 : vector<32x2xf32>
    %cst_82 = arith.constant dense<0.000000e+00> : vector<128x2xf32>
    %431 = tpu.matmul %16, %430, %cst_82 {dimension_numbers = #tpu.dot_dimension_numbers<[1], [0], [0], [1], [0, 0, 1, 1], [], []>} : vector<128x32xf32>, vector<32x2xf32>, vector<128x2xf32> -> vector<128x2xf32>
    %432 = arith.addf %431, %402 : vector<128x2xf32>
    %433 = vector.extract_strided_slice %432 {offsets = [0, 0], sizes = [64, 2], strides = [1, 1]} : vector<128x2xf32> to vector<64x2xf32>
    %434 = arith.negf %433 : vector<64x2xf32>
    %435 = math.exp %434 : vector<64x2xf32>
    %cst_83 = arith.constant 1.000000e+00 : f32
    %436 = vector.broadcast %cst_83 : f32 to vector<64x2xf32>
    %437 = arith.addf %436, %435 : vector<64x2xf32>
    %438 = arith.divf %436, %437 : vector<64x2xf32>
    %439 = vector.extract_strided_slice %432 {offsets = [64, 0], sizes = [32, 2], strides = [1, 1]} : vector<128x2xf32> to vector<32x2xf32>
    %440 = math.tanh %439 : vector<32x2xf32>
    %441 = vector.extract_strided_slice %432 {offsets = [96, 0], sizes = [32, 2], strides = [1, 1]} : vector<128x2xf32> to vector<32x2xf32>
    %442 = arith.negf %441 : vector<32x2xf32>
    %443 = math.exp %442 : vector<32x2xf32>
    %cst_84 = arith.constant 1.000000e+00 : f32
    %444 = vector.broadcast %cst_84 : f32 to vector<32x2xf32>
    %445 = arith.addf %444, %443 : vector<32x2xf32>
    %446 = arith.divf %444, %445 : vector<32x2xf32>
    %447 = vector.extract_strided_slice %438 {offsets = [32, 0], sizes = [32, 2], strides = [1, 1]} : vector<64x2xf32> to vector<32x2xf32>
    %448 = arith.mulf %447, %397 : vector<32x2xf32>
    %449 = vector.extract_strided_slice %438 {offsets = [0, 0], sizes = [32, 2], strides = [1, 1]} : vector<64x2xf32> to vector<32x2xf32>
    %450 = arith.mulf %449, %440 : vector<32x2xf32>
    %451 = arith.addf %448, %450 : vector<32x2xf32>
    %452 = math.tanh %451 : vector<32x2xf32>
    %453 = arith.mulf %446, %452 : vector<32x2xf32>
    %454 = tpu.concatenate %453, %3, %11, %12, %13 in 0 : vector<32x2xf32>, vector<4x2xf32>, vector<4x2xf32>, vector<4x2xf32>, vector<4x2xf32> -> vector<48x2xf32>
    %c0_85 = arith.constant 0 : index
    %c0_86 = arith.constant 0 : index
    %455 = vector.load %arg8[%c0_85, %c0_86] : memref<48x2xf32, #tpu.memory_space<vmem>>, vector<48x2xf32>
    tpu.vector_store %arg8[%c0_85, %c0_86], %454 {strides = array<i32>} : memref<48x2xf32, #tpu.memory_space<vmem>>, vector<48x2xf32>,
    return
  }
  func.func @transform_0(%arg0: i32) -> (i32, i32, i32) {
    %c0_i32 = arith.constant 0 : i32
    %c0_i32_0 = arith.constant 0 : i32
    %c0_i32_1 = arith.constant 0 : i32
    return %c0_i32, %c0_i32_0, %arg0 : i32, i32, i32
  }
  func.func @transform_1(%arg0: i32) -> (i32, i32) {
    %c0_i32 = arith.constant 0 : i32
    %c0_i32_0 = arith.constant 0 : i32
    %c0_i32_1 = arith.constant 0 : i32
    return %c0_i32, %c0_i32_0 : i32, i32
  }
  func.func @transform_2(%arg0: i32) -> (i32, i32) {
    %c0_i32 = arith.constant 0 : i32
    %c0_i32_0 = arith.constant 0 : i32
    %c0_i32_1 = arith.constant 0 : i32
    return %c0_i32, %c0_i32_0 : i32, i32
  }
  func.func @transform_3(%arg0: i32) -> (i32, i32) {
    %c0_i32 = arith.constant 0 : i32
    %c0_i32_0 = arith.constant 0 : i32
    %c0_i32_1 = arith.constant 0 : i32
    return %c0_i32, %c0_i32_0 : i32, i32
  }
  func.func @transform_4(%arg0: i32) -> (i32, i32) {
    %c0_i32 = arith.constant 0 : i32
    %c0_i32_0 = arith.constant 0 : i32
    %c0_i32_1 = arith.constant 0 : i32
    return %c0_i32, %c0_i32_0 : i32, i32
  }
  func.func @transform_5(%arg0: i32) -> (i32, i32) {
    %c0_i32 = arith.constant 0 : i32
    %c0_i32_0 = arith.constant 0 : i32
    %c0_i32_1 = arith.constant 0 : i32
    return %c0_i32, %c0_i32_0 : i32, i32
  }
  func.func @transform_6(%arg0: i32) -> (i32, i32) {
    %c0_i32 = arith.constant 0 : i32
    %c0_i32_0 = arith.constant 0 : i32
    %c0_i32_1 = arith.constant 0 : i32
    return %c0_i32, %c0_i32_0 : i32, i32
  }
  func.func @transform_7(%arg0: i32) -> (i32, i32) {
    %c0_i32 = arith.constant 0 : i32
    %c0_i32_0 = arith.constant 0 : i32
    return %c0_i32, %arg0 : i32, i32
  }
}

</mosaic_0001>

<bundles_post_ra>
// kernel: tpu_custom_call.1
= control target key start
LH: loop header
LB: loop body
LE: loop exit
PB: predicated region body
PF: predicated region fallthrough
CT: control target
= control target key end

     0   :  { %vm425_vm0 = vcmask 1043456   ;;  %vm376_vm1 = vcmask 31744   ;;  %v10759_v9 = vmov 0.0   ;;  %v10760_v12 = vmov 0   ;;  %s13931_s0 = inlined_call_operand.vmem [shape: f32[8,4,2], index: 0, kind: input, shape index: {}]   ;;  %s13932_s1 = inlined_call_operand.vmem [shape: f32[128,4], index: 1, kind: input, shape index: {}]   ;;  %s13933_s3 = inlined_call_operand.vmem [shape: f32[128,1], index: 3, kind: input, shape index: {}]   ;;  %s13934_s2 = inlined_call_operand.vmem [shape: f32[128,32], index: 2, kind: input, shape index: {}]   ;;  %s13935_s6 = inlined_call_operand.vmem [shape: f32[128,1], index: 6, kind: input, shape index: {}]   ;;  %s13936_s4 = inlined_call_operand.vmem [shape: f32[128,32], index: 4, kind: input, shape index: {}]   ;;  %s13937_s5 = inlined_call_operand.vmem [shape: f32[128,32], index: 5, kind: input, shape index: {}]   ;;  %s13938_s7 = inlined_call_operand.vmem [shape: f32[48,2], index: 7, kind: output, shape index: {}]  }
   0x1   :  { %v26_v0 = vld [vmem:[%s13931_s0] sm:$0xf]  ;;  %v10812_v2 = vld [vmem:[%s13932_s1 + $0x8] sm:$0xff]  ;;  %v10825_v4 = vld [vmem:[%s13932_s1 + $0x10] sm:$0xff]  ;;  %9533 = vset.pattern.permute.xlu1 %v10760_v12  ;;  %9532 = vset.pattern.permute.xlu0 %v10760_v12  ;;  %vm574_vm2 = vcmask 261120   ;;  %vm34_vm3 = vcmask 11264  }
   0x2   :  { %v10807_v1 = vld [vmem:[%s13932_s1] sm:$0xff]  ;;  %7934 = vmatprep.subr.msk.mxu0 %vm425_vm0, %v26_v0  ;;  %9048 = vmatprep.subr.msk.mxu1 %vm425_vm0, %v26_v0  ;;  %v10832_v5 = vld [vmem:[%s13932_s1 + $0x48] sm:$0xff]  ;;  %v10840_v6 = vld [vmem:[%s13932_s1 + $0x50] sm:$0xff]  ;;  %vm6634_vm4 = vcmask 15360  }
   0x3   :  { %7936 = vmatprep.mubr.msk.f32.mxu0 %vm376_vm1, %v10807_v1  ;;  %v10820_v3 = vld [vmem:[%s13932_s1 + $0x40] sm:$0xff]  ;;  %7935 = vmatpush3.msk.msra.mxu0 %vm425_vm0, %v26_v0  ;;  %v10849_v7 = vld [vmem:[%s13932_s1 + $0x18] sm:$0xff]  ;;  %v10877_v13 = vld [vmem:[%s13932_s1 + $0x28] sm:$0xff] }
   0x4   :  { %7937 = vmatmul.mubr.msk.f32.vlgmr.msra.gmra.mrb[0].mxu0 %vm376_vm1, %v10812_v2  ;;  %9049 = vmatpush3.msk.msra.mxu1 %vm425_vm0, %v26_v0  ;;  %v10856_v8 = vld [vmem:[%s13932_s1 + $0x20] sm:$0xff]  ;;  %v10863_v10 = vld [vmem:[%s13932_s1 + $0x58] sm:$0xff]  ;;  %v10884_v14 = vld [vmem:[%s13932_s1 + $0x30] sm:$0xff] }
   0x5   :  { %7948 = vmatprep.mubr.msk.f32.mxu1 %vm376_vm1, %v10820_v3  ;;  %7939 = vmatprep.mubr.msk.f32.mxu0 %vm376_vm1, %v10825_v4  ;;  %v10870_v11 = vld [vmem:[%s13932_s1 + $0x60] sm:$0xff]  ;;  %v10894_v16 = vld [vmem:[%s13932_s1 + $0x68] sm:$0xff]  ;;  %v10904_v18 = vld [vmem:[%s13932_s1 + $0x70] sm:$0xff] }
   0x6   :  { %7949 = vmatmul.mubr.msk.f32.vlgmr.msra.gmra.mrb[0].mxu1 %vm376_vm1, %v10832_v5  ;;  %7960 = vmatprep.subr.mxu0 %v10759_v9  ;;  %v188_v15 = vld [vmem:[%s13933_s3 + $0x20] sm:$0xff]  ;;  %v189_v19 = vld [vmem:[%s13933_s3 + $0x28] sm:$0xff]  ;;  %v10914_v20 = vld [vmem:[%s13932_s1 + $0x38] sm:$0xff] }
   0x7   :  { %7951 = vmatprep.mubr.msk.f32.mxu1 %vm376_vm1, %v10840_v6  ;;  %7961 = vmatpush3.msra.mxu0 %v10759_v9  ;;  %v184_v17 = vld [vmem:[%s13933_s3] sm:$0xff]  ;;  %v185_v21 = vld [vmem:[%s13933_s3 + $0x8] sm:$0xff]  ;;  %v10931_v23 = vld [vmem:[%s13932_s1 + $0x78] sm:$0xff] }
   0x8   :  { %7940 = vmatmul.mubr.msk.f32.gmra.mrb[2].mxu0 %vm376_vm1, %v10849_v7  ;;  %318 = vperm.xlu1 %9533, %v188_v15   ;;  %v10924_v22 = vld [vmem:[%s13934_s2] sm:$0xff]  ;;  %v187_v24 = vld [vmem:[%s13933_s3 + $0x18] sm:$0xff]  ;;  %v10943_v25 = vld [vmem:[%s13934_s2 + $0x8] sm:$0xff] }
   0x9   :  { %7942 = vmatprep.mubr.msk.f32.mxu0 %vm376_vm1, %v10856_v8  ;;  %298 = vperm.xlu0 %9532, %v184_v17   ;;  %v186_v26 = vld [vmem:[%s13933_s3 + $0x10] sm:$0xff]  ;;  %v191_v28 = vld [vmem:[%s13933_s3 + $0x38] sm:$0xff]  ;;  %v10973_v31 = vld [vmem:[%s13934_s2 + $0x20] sm:$0xff] }
   0xa   :  { %7952 = vmatmul.mubr.msk.f32.gmra.mrb[2].mxu1 %vm376_vm1, %v10863_v10  ;;  %v10953_v27 = vld [vmem:[%s13934_s2 + $0x10] sm:$0xff]  ;;  %v10965_v29 = vld [vmem:[%s13934_s2 + $0x18] sm:$0xff]  ;;  %v193_v32 = vld [vmem:[%s13933_s3 + $0x48] sm:$0xff] }
   0xb   :  { %7954 = vmatprep.mubr.msk.f32.mxu1 %vm376_vm1, %v10870_v11  ;;  %v190_v30 = vld [vmem:[%s13933_s3 + $0x30] sm:$0xff]  ;;  %v10985_v33 = vld [vmem:[%s13934_s2 + $0x28] sm:$0xff]  ;;  %v192_v34 = vld [vmem:[%s13933_s3 + $0x40] sm:$0xff] }
   0xc   :  { %7943 = vmatmul.mubr.msk.f32.gmra.mrb[4].mxu0 %vm376_vm1, %v10877_v13  ;;  %323 = vperm.xlu1 %9533, %v189_v19   ;;  %v10993_v35 = vld [vmem:[%s13934_s2 + $0x30] sm:$0xff]  ;;  %v197_v36 = vld [vmem:[%s13933_s3 + $0x68] sm:$0xff]  ;;  %v11005_v37 = vld [vmem:[%s13934_s2 + $0x38] sm:$0xff] }
   0xd   :  { %7945 = vmatprep.mubr.msk.f32.mxu0 %vm376_vm1, %v10884_v14  ;;  %303 = vperm.xlu0 %9532, %v185_v21   ;;  %v196_v38 = vld [vmem:[%s13933_s3 + $0x60] sm:$0xff]  ;;  %v195_v40 = vld [vmem:[%s13933_s3 + $0x58] sm:$0xff]  ;;  %v11025_v41 = vld [vmem:[%s13934_s2 + $0x48] sm:$0xff] }
   0xe   :  { %7955 = vmatmul.mubr.msk.f32.gmra.mrb[4].mxu1 %vm376_vm1, %v10894_v16  ;;  %v11013_v39 = vld [vmem:[%s13934_s2 + $0x40] sm:$0xff]  ;;  %v194_v42 = vld [vmem:[%s13933_s3 + $0x50] sm:$0xff]  ;;  %v199_v44 = vld [vmem:[%s13933_s3 + $0x78] sm:$0xff] }
   0xf   :  { %7957 = vmatprep.mubr.msk.f32.mxu1 %vm376_vm1, %v10904_v18  ;;  %v11033_v43 = vld [vmem:[%s13934_s2 + $0x50] sm:$0xff]  ;;  %v11045_v45 = vld [vmem:[%s13934_s2 + $0x58] sm:$0xff]  ;;  %v11053_v47 = vld [vmem:[%s13934_s2 + $0x60] sm:$0xff] }
  0x10   :  { %7946 = vmatmul.mubr.msk.f32.gmra.mrb[6].mxu0 %vm376_vm1, %v10914_v20  ;;  %313 = vperm.xlu1 %9533, %v187_v24   ;;  %v198_v46 = vld [vmem:[%s13933_s3 + $0x70] sm:$0xff]  ;;  %v201_v48 = vld [vmem:[%s13935_s6 + $0x8] sm:$0xff]  ;;  %v200_v50 = vld [vmem:[%s13935_s6] sm:$0xff] }
  0x11   :  { %7962 = vmatprep.mubr.msk.f32.mxu0 %vm574_vm2, %v10924_v22  ;;  %308 = vperm.xlu0 %9532, %v186_v26   ;;  %v11065_v49 = vld [vmem:[%s13934_s2 + $0x68] sm:$0xff]  ;;  %v11073_v51 = vld [vmem:[%s13934_s2 + $0x70] sm:$0xff]  ;;  %v11085_v53 = vld [vmem:[%s13934_s2 + $0x78] sm:$0xff] }
  0x12   :  { %7958 = vmatmul.mubr.msk.f32.gmra.mrb[6].mxu1 %vm376_vm1, %v10931_v23  ;;  %v205_v52 = vld [vmem:[%s13935_s6 + $0x28] sm:$0xff]  ;;  %v204_v54 = vld [vmem:[%s13935_s6 + $0x20] sm:$0xff]  ;;  %v203_v55 = vld [vmem:[%s13935_s6 + $0x18] sm:$0xff] }
  0x13   :  { %v202_v56 = vld [vmem:[%s13935_s6 + $0x10] sm:$0xff]  ;;  %v207_v57 = vld [vmem:[%s13935_s6 + $0x38] sm:$0xff]  ;;  %v209_v59 = vld [vmem:[%s13935_s6 + $0x48] sm:$0xff] }
  0x14   :  { %7963 = vmatmul.mubr.msk.f32.vlgmr.msra.gmra.mrb[0].mxu0 %vm574_vm2, %v10943_v25  ;;  %333 = vperm.xlu1 %9533, %v191_v28   ;;  %v206_v58 = vld [vmem:[%s13935_s6 + $0x30] sm:$0xff]  ;;  %v208_v60 = vld [vmem:[%s13935_s6 + $0x40] sm:$0xff]  ;;  %v213_v61 = vld [vmem:[%s13935_s6 + $0x68] sm:$0xff] }
  0x15   :  { %7965 = vmatprep.mubr.msk.f32.mxu0 %vm574_vm2, %v10953_v27  ;;  %328 = vperm.xlu0 %9532, %v190_v30   ;;  %v212_v62 = vld [vmem:[%s13935_s6 + $0x60] sm:$0xff]  ;;  %v211_v63 = vld [vmem:[%s13935_s6 + $0x58] sm:$0xff]  ;;  %v210_v0 = vld [vmem:[%s13935_s6 + $0x50] sm:$0xff] }
  0x16   :  { %v215_v9 = vld [vmem:[%s13935_s6 + $0x78] sm:$0xff]  ;;  %v214_v12 = vld [vmem:[%s13935_s6 + $0x70] sm:$0xff]  ;;  %v27_v15 = vld [vmem:[%s13931_s0 + $0x4] sm:$0xf] }
  0x17   :  { %8050 = vmatprep.subr.msk.mxu0 %vm425_vm0, %v27_v15  ;;  %v152_v17 = vld [vmem:[%s13936_s4] sm:$0xff] }
  0x18   :  { %7966 = vmatmul.mubr.msk.f32.gmra.mrb[2].mxu0 %vm574_vm2, %v10965_v29  ;;  %343 = vperm.xlu1 %9533, %v193_v32  }
  0x19   :  { %7968 = vmatprep.mubr.msk.f32.mxu0 %vm574_vm2, %v10973_v31  ;;  %338 = vperm.xlu0 %9532, %v192_v34  }
  0x1a   :  { %8051 = vmatpush3.msk.msra.mxu0 %vm425_vm0, %v27_v15  ;;  %7994 = vmatprep.mubr.msk.f32.mxu1 %vm574_vm2, %v152_v17 }
  0x1c   :  { %7969 = vmatmul.mubr.msk.f32.gmra.mrb[4].mxu0 %vm574_vm2, %v10985_v33  ;;  %363 = vperm.xlu1 %9533, %v197_v36  }
  0x1d   :  { %7971 = vmatprep.mubr.msk.f32.mxu0 %vm574_vm2, %v10993_v35  ;;  %358 = vperm.xlu0 %9532, %v196_v38  }
  0x20   :  { %7972 = vmatmul.mubr.msk.f32.gmra.mrb[6].mxu0 %vm574_vm2, %v11005_v37  ;;  %353 = vperm.xlu1 %9533, %v195_v40  }
  0x21   :  { %7974 = vmatprep.mubr.msk.f32.mxu0 %vm574_vm2, %v11013_v39  ;;  %348 = vperm.xlu0 %9532, %v194_v42  }
  0x24   :  { %7975 = vmatmul.mubr.msk.f32.gmra.mrb[8].mxu0 %vm574_vm2, %v11025_v41  ;;  %373 = vperm.xlu1 %9533, %v199_v44  }
  0x25   :  { %7977 = vmatprep.mubr.msk.f32.mxu0 %vm574_vm2, %v11033_v43  ;;  %368 = vperm.xlu0 %9532, %v198_v46  }
  0x28   :  { %7978 = vmatmul.mubr.msk.f32.gmra.mrb[10].mxu0 %vm574_vm2, %v11045_v45  ;;  %223 = vperm.xlu1 %9533, %v201_v48  }
  0x29   :  { %7980 = vmatprep.mubr.msk.f32.mxu0 %vm574_vm2, %v11053_v47  ;;  %218 = vperm.xlu0 %9532, %v200_v50  }
  0x2c   :  { %7981 = vmatmul.mubr.msk.f32.gmra.mrb[12].mxu0 %vm574_vm2, %v11065_v49  ;;  %243 = vperm.xlu1 %9533, %v205_v52  }
  0x2d   :  { %7983 = vmatprep.mubr.msk.f32.mxu0 %vm574_vm2, %v11073_v51  ;;  %238 = vperm.xlu0 %9532, %v204_v54  }
  0x30   :  { %7984 = vmatmul.mubr.msk.f32.gmra.mrb[14].mxu0 %vm574_vm2, %v11085_v53  ;;  %233 = vperm.xlu1 %9533, %v203_v55  }
  0x31   :  { %8052 = vmatprep.mubr.msk.f32.mxu0 %vm376_vm1, %v10807_v1  ;;  %228 = vperm.xlu0 %9532, %v202_v56  }
  0x34   :  { %253 = vperm.xlu1 %9533, %v207_v57   ;;  %8053 = vmatmul.mubr.msk.f32.vlgmr.msra.gmra.mrb[16].mxu0 %vm376_vm1, %v10812_v2 }
  0x35   :  { %248 = vperm.xlu0 %9532, %v206_v58   ;;  %8055 = vmatprep.mubr.msk.f32.mxu0 %vm376_vm1, %v10825_v4 }
  0x38   :  { %263 = vperm.xlu1 %9533, %v209_v59   ;;  %8056 = vmatmul.mubr.msk.f32.gmra.mrb[18].mxu0 %vm376_vm1, %v10849_v7 }
  0x39   :  { %258 = vperm.xlu0 %9532, %v208_v60   ;;  %8058 = vmatprep.mubr.msk.f32.mxu0 %vm376_vm1, %v10856_v8 }
  0x3c   :  { %283 = vperm.xlu1 %9533, %v213_v61   ;;  %8059 = vmatmul.mubr.msk.f32.gmra.mrb[20].mxu0 %vm376_vm1, %v10877_v13 }
  0x3d   :  { %278 = vperm.xlu0 %9532, %v212_v62   ;;  %8061 = vmatprep.mubr.msk.f32.mxu0 %vm376_vm1, %v10884_v14 }
  0x40   :  { %273 = vperm.xlu1 %9533, %v211_v63   ;;  %8062 = vmatmul.mubr.msk.f32.gmra.mrb[22].mxu0 %vm376_vm1, %v10914_v20 }
  0x41   :  { %268 = vperm.xlu0 %9532, %v210_v0   ;;  %8064 = vmatprep.mubr.msk.f32.mxu0 %vm376_vm1, %v10820_v3 }
  0x44   :  { %293 = vperm.xlu1 %9533, %v215_v9   ;;  %8065 = vmatmul.mubr.msk.f32.gmra.mrb[24].mxu0 %vm376_vm1, %v10832_v5 }
  0x45   :  { %288 = vperm.xlu0 %9532, %v214_v12   ;;  %8067 = vmatprep.mubr.msk.f32.mxu0 %vm376_vm1, %v10840_v6 }
  0x48   :  { %8068 = vmatmul.mubr.msk.f32.gmra.mrb[26].mxu0 %vm376_vm1, %v10863_v10 }
  0x49   :  { %8070 = vmatprep.mubr.msk.f32.mxu0 %vm376_vm1, %v10870_v11 }
  0x4c   :  { %8071 = vmatmul.mubr.msk.f32.gmra.mrb[28].mxu0 %vm376_vm1, %v10894_v16 }
  0x4d   :  { %8073 = vmatprep.mubr.msk.f32.mxu0 %vm376_vm1, %v10904_v18 }
  0x50   :  { %8074 = vmatmul.mubr.msk.f32.gmra.mrb[30].mxu0 %vm376_vm1, %v10931_v23 }
  0x51   :  { %8084 = vmatprep.mubr.msk.f32.mxu0 %vm574_vm2, %v10924_v22 }
  0x87   :  { %v11171_v19 = vpop.permute.xlu1 %318 }
  0x88   :  { %14090 = vst [vmem:[#allocation2_spill] sm:$0xff] %v11171_v19  ;;  %v11173_v21 = vpop.permute.xlu0 %298 }
  0x89   :  { %14091 = vst [vmem:[#allocation3_spill] sm:$0xff] %v11173_v21 }
  0x8b   :  { %v11175_v28 = vpop.permute.xlu1 %323 }
  0x8c   :  { %14092 = vst [vmem:[#allocation4_spill] sm:$0xff] %v11175_v28  ;;  %v11177_v30 = vpop.permute.xlu0 %303 }
  0x8d   :  { %14093 = vst [vmem:[#allocation5_spill] sm:$0xff] %v11177_v30 }
  0x8f   :  { %v11179_v36 = vpop.permute.xlu1 %313 }
  0x90   :  { %14094 = vst [vmem:[#allocation6_spill] sm:$0xff] %v11179_v36  ;;  %v11183_v40 = vpop.permute.xlu0 %308 }
  0x91   :  { %14095 = vst [vmem:[#allocation7_spill] sm:$0xff] %v11183_v40 }
  0x93   :  { %v11191_v48 = vpop.permute.xlu1 %333 }
  0x94   :  { %14096 = vst [vmem:[#allocation8_spill] sm:$0xff] %v11191_v48  ;;  %v11193_v52 = vpop.permute.xlu0 %328 }
  0x95   :  { %14097 = vst [vmem:[#allocation9_spill] sm:$0xff] %v11193_v52 }
  0x97   :  { %v11198_v62 = vpop.permute.xlu1 %343 }
  0x98   :  { %14098 = vst [vmem:[#allocation10_spill] sm:$0xff] %v11198_v62  ;;  %v11201_v0 = vpop.permute.xlu0 %338 }
  0x99   :  { %14099 = vst [vmem:[#allocation11_spill] sm:$0xff] %v11201_v0 }
  0xd9   :  { %v7950_v24 = vpop.f32.mrb[0].mxu1 }
  0xda   :  { %v535_v26 = vpop.f32.mrb[1].mxu1 }
  0xdd   :  { %v7953_v32 = vpop.f32.mrb[2].mxu1 }
  0xde   :  { %v545_v34 = vpop.f32.mrb[3].mxu1 }
  0xe1   :  { %v11181_v38 = vpop.f32.mrb[4].mxu1 }
  0xe2   :  { %v11185_v42 = vpop.f32.mrb[5].mxu1 }
  0xe5   :  { %v11187_v44 = vpop.f32.mrb[6].mxu1 }
  0xe6   :  { %v11189_v46 = vpop.f32.mrb[7].mxu1 }
  0xe7   :  { %v7964_v50 = vpop.f32.mrb[0].mxu0 }
  0xe8   :  { %v9050_v54 = vadd.f32 %v7964_v50, %v11177_v30  ;;  %v689_v55 = vpop.f32.mrb[1].mxu0 }
  0xe9   :  { %v9051_v56 = vadd.f32 %v689_v55, %v11173_v21 }
  0xea   :  { %v6679_v57 = vmul.f32 -1.442695, %v9050_v54 }
  0xeb   :  { %v6678_v58 = vmul.f32 -1.442695, %v9051_v56  ;;  %v7967_v59 = vpop.f32.mrb[2].mxu0  ;;  %v11205_v56 = vpop.permute.xlu1 %363 }
  0xec   :  { %9534 = vpow2.f32 %v6679_v57  ;;  %v9052_v60 = vadd.f32 %v7967_v59, %v11179_v36  ;;  %v699_v61 = vpop.f32.mrb[3].mxu0  ;;  %14100 = vst [vmem:[#allocation12_spill] sm:$0xff] %v11205_v56 }
  0xed   :  { %9536 = vpow2.f32 %v6678_v58  ;;  %v9053_v63 = vadd.f32 %v699_v61, %v11183_v40  ;;  %v11207_v58 = vpop.permute.xlu0 %358 }
  0xee   :  { %v6681_v9 = vmul.f32 -1.442695, %v9052_v60  ;;  %14101 = vst [vmem:[#allocation13_spill] sm:$0xff] %v11207_v58 }
  0xef   :  { %v6680_v12 = vmul.f32 -1.442695, %v9053_v63  ;;  %v7970_v15 = vpop.f32.mrb[4].mxu0  ;;  %v11213_v21 = vpop.permute.xlu1 %353 }
  0xf0   :  { %9538 = vpow2.f32 %v6681_v9  ;;  %v9054_v17 = vadd.f32 %v7970_v15, %v11175_v28  ;;  %v709_v50 = vpop.f32.mrb[5].mxu0  ;;  %v541_v15 = vadd.f32 %v7950_v24, %v11198_v62  ;;  %14102 = vst [vmem:[#allocation14_spill] sm:$0xff] %v11213_v21  ;;  %v551_v24 = vadd.f32 %v7953_v32, %v11213_v21 }
  0xf1   :  { %9540 = vpow2.f32 %v6680_v12  ;;  %v9055_v54 = vadd.f32 %v709_v50, %v11171_v19  ;;  %v556_v32 = vadd.f32 %v11185_v42, %v11207_v58 }
  0xf2   :  { %v6683_v55 = vmul.f32 -1.442695, %v9054_v17  ;;  %v536_v17 = vadd.f32 %v535_v26, %v11201_v0 }
  0xf3   :  { %v6682_v57 = vmul.f32 -1.442695, %v9055_v54  ;;  %v7973_v59 = vpop.f32.mrb[6].mxu0 }
  0xf4   :  { %9542 = vpow2.f32 %v6683_v55  ;;  %v9056_v61 = vadd.f32 %v7973_v59, %v11191_v48  ;;  %v719_v60 = vpop.f32.mrb[7].mxu0 }
  0xf5   :  { %9544 = vpow2.f32 %v6682_v57  ;;  %v9057_v63 = vadd.f32 %v719_v60, %v11193_v52  ;;  %v11215_v60 = vpop.permute.xlu0 %348 }
  0xf6   :  { %v9535_v9 = vpop.eup %9534  ;;  %v6685_v12 = vmul.f32 -1.442695, %v9056_v61  ;;  %14103 = vst [vmem:[#allocation15_spill] sm:$0xff] %v11215_v60  ;;  %v546_v26 = vadd.f32 %v545_v34, %v11215_v60 }
  0xf7   :  { %v9537_v28 = vpop.eup %9536  ;;  %v793_v50 = vadd.f32 1.0, %v9535_v9  ;;  %v6684_v19 = vmul.f32 -1.442695, %v9057_v63  ;;  %v7976_v54 = vpop.f32.mrb[8].mxu0 }
  0xf8   :  { %v792_v40 = vadd.f32 1.0, %v9537_v28  ;;  %9546 = vpow2.f32 %v6685_v12  ;;  %v735_v36 = vadd.f32 %v7976_v54, %v541_v15  ;;  %v729_v55 = vpop.f32.mrb[9].mxu0 }
  0xf9   :  { %9548 = vrcp.f32 %v793_v50  ;;  %v730_v57 = vadd.f32 %v729_v55, %v536_v17  ;;  %v561_v17 = vadd.f32 %v11181_v38, %v11205_v56 }
  0xfa   :  { %v9539_v59 = vpop.eup %9538  ;;  %9550 = vrcp.f32 %v792_v40 }
  0xfb   :  { %v9541_v61 = vpop.eup %9540  ;;  %v795_v9 = vadd.f32 1.0, %v9539_v59  ;;  %9552 = vpow2.f32 %v6684_v19  ;;  %v7979_v63 = vpop.f32.mrb[10].mxu0 }
  0xfc   :  { %v794_v28 = vadd.f32 1.0, %v9541_v61  ;;  %9554 = vtanh.f32 %v735_v36  ;;  %v745_v15 = vadd.f32 %v7979_v63, %v551_v24  ;;  %v739_v12 = vpop.f32.mrb[11].mxu0  ;;  %v11223_v24 = vpop.permute.xlu1 %373 }
  0xfd   :  { %9556 = vrcp.f32 %v795_v9  ;;  %v740_v54 = vadd.f32 %v739_v12, %v546_v26  ;;  %14104 = vst [vmem:[#allocation16_spill] sm:$0xff] %v11223_v24  ;;  %v11225_v9 = vpop.permute.xlu0 %368  ;;  %v571_v38 = vadd.f32 %v11187_v44, %v11223_v24 }
  0xfe   :  { %v9543_v50 = vpop.eup %9542  ;;  %9558 = vrcp.f32 %v794_v28  ;;  %14105 = vst [vmem:[#allocation17_spill] sm:$0xff] %v11225_v9 }
  0xff   :  { %v9545_v55 = vpop.eup %9544  ;;  %v797_v40 = vadd.f32 1.0, %v9543_v50  ;;  %9560 = vtanh.f32 %v730_v57  ;;  %v7982_v34 = vpop.f32.mrb[12].mxu0  ;;  %v566_v57 = vadd.f32 %v11189_v46, %v11225_v9 }
 0x100   :  { %v796_v19 = vadd.f32 1.0, %v9545_v55  ;;  %9562 = vtanh.f32 %v745_v15  ;;  %v755_v59 = vadd.f32 %v7982_v34, %v561_v17  ;;  %v749_v36 = vpop.f32.mrb[13].mxu0 }
 0x101   :  { %9564 = vrcp.f32 %v797_v40  ;;  %v750_v61 = vadd.f32 %v749_v36, %v556_v32 }
 0x102   :  { %v9547_v26 = vpop.eup %9546  ;;  %9566 = vrcp.f32 %v796_v19  ;;  %v6687_v63 = vmul.f32 -1.442695, %v755_v59 }
 0x103   :  { %v9549_v42 = vpop.eup %9548  ;;  %v799_v28 = vadd.f32 1.0, %v9547_v26  ;;  %9568 = vtanh.f32 %v740_v54  ;;  %v6686_v15 = vmul.f32 -1.442695, %v750_v61  ;;  %v7985_v12 = vpop.f32.mrb[14].mxu0 }
 0x104   :  { %v9551_v50 = vpop.eup %9550  ;;  %9570 = vpow2.f32 %v6687_v63  ;;  %v765_v17 = vadd.f32 %v7985_v12, %v571_v38  ;;  %v759_v55 = vpop.f32.mrb[15].mxu0 }
 0x105   :  { %v9553_v32 = vpop.eup %9552  ;;  %9572 = vrcp.f32 %v799_v28  ;;  %v760_v40 = vadd.f32 %v759_v55, %v566_v57 }
 0x106   :  { %v9555_v34 = vpop.eup %9554  ;;  %v798_v36 = vadd.f32 1.0, %v9553_v32  ;;  %9574 = vpow2.f32 %v6686_v15  ;;  %v6689_v44 = vmul.f32 -1.442695, %v765_v17 }
 0x107   :  { %v9557_v19 = vpop.eup %9556  ;;  %v849_v59 = vmul.f32 %v9555_v34, %v9549_v42  ;;  %v6688_v24 = vmul.f32 -1.442695, %v760_v40 }
 0x108   :  { %v9559_v58 = vpop.eup %9558  ;;  %9576 = vrcp.f32 %v798_v36 }
 0x109   :  { %v9561_v46 = vpop.eup %9560  ;;  %9578 = vpow2.f32 %v6689_v44 }
 0x10a   :  { %v9563_v54 = vpop.eup %9562  ;;  %v848_v61 = vmul.f32 %v9561_v46, %v9551_v50  ;;  %9580 = vpow2.f32 %v6688_v24 }
 0x10b   :  { %v9565_v26 = vpop.eup %9564  ;;  %v851_v38 = vmul.f32 %v9563_v54, %v9557_v19 }
 0x10c   :  { %v9567_v63 = vpop.eup %9566  ;;  %v845_v12 = vmul.f32 0.0, %v9565_v26 }
 0x10d   :  { %v9569_v28 = vpop.eup %9568  ;;  %v844_v57 = vmul.f32 0.0, %v9567_v63 }
 0x10e   :  { %v9571_v55 = vpop.eup %9570  ;;  %v11231_v32 = vadd.f32 %v849_v59, %v845_v12  ;;  %v850_v15 = vmul.f32 %v9569_v28, %v9559_v58 }
 0x10f   :  { %v9573_v17 = vpop.eup %9572  ;;  %v11233_v42 = vadd.f32 %v848_v61, %v844_v57  ;;  %v833_v40 = vadd.f32 1.0, %v9571_v55 }
 0x110   :  { %v9575_v34 = vpop.eup %9574  ;;  %v847_v36 = vmul.f32 0.0, %v9573_v17  ;;  %9582 = vtanh.f32 %v11231_v32 }
 0x111   :  { %9584 = vtanh.f32 %v11233_v42  ;;  %v832_v24 = vadd.f32 1.0, %v9575_v34 }
 0x112   :  { %v9577_v50 = vpop.eup %9576  ;;  %v11237_v44 = vadd.f32 %v851_v38, %v847_v36  ;;  %9586 = vrcp.f32 %v833_v40 }
 0x113   :  { %v9579_v19 = vpop.eup %9578  ;;  %v846_v46 = vmul.f32 0.0, %v9577_v50  ;;  %9588 = vrcp.f32 %v832_v24 }
 0x114   :  { %v9581_v59 = vpop.eup %9580  ;;  %9590 = vtanh.f32 %v11237_v44  ;;  %v835_v58 = vadd.f32 1.0, %v9579_v19  ;;  %v11246_v19 = vld [vmem:[%s13936_s4 + $0x8] sm:$0xff] }
 0x115   :  { %v11240_v54 = vadd.f32 %v850_v15, %v846_v46  ;;  %v834_v61 = vadd.f32 1.0, %v9581_v59  ;;  %v11251_v46 = vld [vmem:[%s13936_s4 + $0x10] sm:$0xff]  ;;  %v11264_v59 = vld [vmem:[%s13936_s4 + $0x18] sm:$0xff] }
 0x116   :  { %9592 = vrcp.f32 %v835_v58  ;;  %v11269_v58 = vld [vmem:[%s13936_s4 + $0x20] sm:$0xff] }
 0x117   :  { %9594 = vtanh.f32 %v11240_v54 }
 0x118   :  { %9596 = vrcp.f32 %v834_v61 }
 0x11a   :  { %v9583_v26 = vpop.eup %9582 }
 0x11b   :  { %v9585_v63 = vpop.eup %9584 }
 0x11c   :  { %v9587_v12 = vpop.eup %9586 }
 0x11d   :  { %v9589_v38 = vpop.eup %9588  ;;  %v861_v28 = vmul.f32 %v9587_v12, %v9583_v26  ;;  %v14113_v12 = vld [vmem:[#allocation6_spill] sm:$0xff] }
 0x11e   :  { %v9591_v57 = vpop.eup %9590  ;;  %v860_v55 = vmul.f32 %v9589_v38, %v9585_v63 }
 0x120   :  { %v9593_v17 = vpop.eup %9592  ;;  %v8872_v40 = vpack.c.bf16 %v861_v28, %v860_v55 }
 0x121   :  { %v9595_v34 = vpop.eup %9594  ;;  %v863_v36 = vmul.f32 %v9593_v17, %v9591_v57  ;;  %v14114_v17 = vld [vmem:[#allocation7_spill] sm:$0xff] }
 0x122   :  { %v9597_v24 = vpop.eup %9596  ;;  %8873 = vmatprep.subr.bf16.mxu1 %v8872_v40  ;;  %8889 = vmatprep.subr.bf16.mxu0 %v8872_v40 }
 0x123   :  { %8875 = vmatpush3.bf16.msra.mxu1 %v8872_v40  ;;  %8891 = vmatpush3.bf16.msra.mxu0 %v8872_v40  ;;  %v862_v15 = vmul.f32 %v9597_v24, %v9595_v34 }
 0x125   :  { %v8876_v50 = vpack.c.bf16 %v863_v36, %v862_v15 }
 0x127   :  { %8877 = vmatprep.subr.bf16.mxu1 %v8876_v50  ;;  %8893 = vmatprep.subr.bf16.mxu0 %v8876_v50 }
 0x128   :  { %8879 = vmatpush3.bf16.msra.mxu1 %v8876_v50  ;;  %8895 = vmatpush3.bf16.msra.mxu0 %v8876_v50 }
 0x12b   :  { %7995 = vmatmul.mubr.msk.f32.vlgmr.msra.gmra.mrb[8].mxu1 %vm574_vm2, %v11246_v19  ;;  %8085 = vmatmul.mubr.msk.f32.vlgmr.msra.gmra.mrb[16].mxu0 %vm574_vm2, %v10943_v25  ;;  %v11282_v25 = vld [vmem:[%s13936_s4 + $0x28] sm:$0xff] }
 0x12c   :  { %7997 = vmatprep.mubr.msk.f32.mxu1 %vm574_vm2, %v11251_v46  ;;  %8087 = vmatprep.mubr.msk.f32.mxu0 %vm574_vm2, %v10953_v27  ;;  %v11287_v27 = vld [vmem:[%s13936_s4 + $0x30] sm:$0xff] }
 0x12f   :  { %7998 = vmatmul.mubr.msk.f32.gmra.mrb[10].mxu1 %vm574_vm2, %v11264_v59  ;;  %8088 = vmatmul.mubr.msk.f32.gmra.mrb[18].mxu0 %vm574_vm2, %v10965_v29  ;;  %v11300_v29 = vld [vmem:[%s13936_s4 + $0x38] sm:$0xff] }
 0x130   :  { %8000 = vmatprep.mubr.msk.f32.mxu1 %vm574_vm2, %v11269_v58  ;;  %8090 = vmatprep.mubr.msk.f32.mxu0 %vm574_vm2, %v10973_v31  ;;  %v11305_v31 = vld [vmem:[%s13936_s4 + $0x40] sm:$0xff] }
 0x133   :  { %8001 = vmatmul.mubr.msk.f32.gmra.mrb[12].mxu1 %vm574_vm2, %v11282_v25  ;;  %8091 = vmatmul.mubr.msk.f32.gmra.mrb[20].mxu0 %vm574_vm2, %v10985_v33  ;;  %v11318_v33 = vld [vmem:[%s13936_s4 + $0x48] sm:$0xff] }
 0x134   :  { %8003 = vmatprep.mubr.msk.f32.mxu1 %vm574_vm2, %v11287_v27  ;;  %8093 = vmatprep.mubr.msk.f32.mxu0 %vm574_vm2, %v10993_v35  ;;  %v11323_v35 = vld [vmem:[%s13936_s4 + $0x50] sm:$0xff] }
 0x137   :  { %8004 = vmatmul.mubr.msk.f32.gmra.mrb[14].mxu1 %vm574_vm2, %v11300_v29  ;;  %8094 = vmatmul.mubr.msk.f32.gmra.mrb[22].mxu0 %vm574_vm2, %v11005_v37  ;;  %v11336_v37 = vld [vmem:[%s13936_s4 + $0x58] sm:$0xff] }
 0x138   :  { %8006 = vmatprep.mubr.msk.f32.mxu1 %vm574_vm2, %v11305_v31  ;;  %8096 = vmatprep.mubr.msk.f32.mxu0 %vm574_vm2, %v11013_v39  ;;  %v11341_v39 = vld [vmem:[%s13936_s4 + $0x60] sm:$0xff] }
 0x13b   :  { %8007 = vmatmul.mubr.msk.f32.gmra.mrb[16].mxu1 %vm574_vm2, %v11318_v33  ;;  %8097 = vmatmul.mubr.msk.f32.gmra.mrb[24].mxu0 %vm574_vm2, %v11025_v41  ;;  %v11354_v41 = vld [vmem:[%s13936_s4 + $0x68] sm:$0xff] }
 0x13c   :  { %8009 = vmatprep.mubr.msk.f32.mxu1 %vm574_vm2, %v11323_v35  ;;  %8099 = vmatprep.mubr.msk.f32.mxu0 %vm574_vm2, %v11033_v43  ;;  %v11359_v43 = vld [vmem:[%s13936_s4 + $0x70] sm:$0xff] }
 0x13f   :  { %8010 = vmatmul.mubr.msk.f32.gmra.mrb[18].mxu1 %vm574_vm2, %v11336_v37  ;;  %8100 = vmatmul.mubr.msk.f32.gmra.mrb[26].mxu0 %vm574_vm2, %v11045_v45  ;;  %v11372_v45 = vld [vmem:[%s13936_s4 + $0x78] sm:$0xff] }
 0x140   :  { %8012 = vmatprep.mubr.msk.f32.mxu1 %vm574_vm2, %v11341_v39  ;;  %8102 = vmatprep.mubr.msk.f32.mxu0 %vm574_vm2, %v11053_v47  ;;  %v28_v47 = vld [vmem:[%s13931_s0 + $0x8] sm:$0xf] }
 0x141   :  { %8172 = vmatprep.subr.msk.mxu0 %vm425_vm0, %v28_v47 }
 0x142   :  { %8173 = vmatpush3.msk.msra.mxu0 %vm425_vm0, %v28_v47 }
 0x143   :  { %8013 = vmatmul.mubr.msk.f32.gmra.mrb[20].mxu1 %vm574_vm2, %v11354_v41  ;;  %8103 = vmatmul.mubr.msk.f32.gmra.mrb[28].mxu0 %vm574_vm2, %v11065_v49 }
 0x144   :  { %8015 = vmatprep.mubr.msk.f32.mxu1 %vm574_vm2, %v11359_v43  ;;  %8105 = vmatprep.mubr.msk.f32.mxu0 %vm574_vm2, %v11073_v51 }
 0x147   :  { %8016 = vmatmul.mubr.msk.f32.gmra.mrb[22].mxu1 %vm574_vm2, %v11372_v45  ;;  %8106 = vmatmul.mubr.msk.f32.gmra.mrb[30].mxu0 %vm574_vm2, %v11085_v53 }
 0x148   :  { %8174 = vmatprep.mubr.msk.f32.mxu0 %vm376_vm1, %v10807_v1  ;;  %v11420_v1 = vld [vmem:[%s13937_s5] sm:$0xff] }
 0x149   :  { %8026 = vmatprep.mubr.msk.f32.mxu1 %vm574_vm2, %v11420_v1 }
 0x14b   :  { %8175 = vmatmul.mubr.msk.f32.vlgmr.msra.gmra.mrb[32].mxu0 %vm376_vm1, %v10812_v2  ;;  %v11424_v2 = vpop.permute.xlu1 %223 }
 0x14c   :  { %8177 = vmatprep.mubr.msk.f32.mxu0 %vm376_vm1, %v10825_v4  ;;  %14106 = vst [vmem:[#allocation18_spill] sm:$0xff] %v11424_v2 }
 0x14f   :  { %8178 = vmatmul.mubr.msk.f32.gmra.mrb[34].mxu0 %vm376_vm1, %v10849_v7  ;;  %v11428_v4 = vpop.permute.xlu1 %243 }
 0x150   :  { %8180 = vmatprep.mubr.msk.f32.mxu0 %vm376_vm1, %v10856_v8  ;;  %14108 = vst [vmem:[#allocation20_spill] sm:$0xff] %v11428_v4 }
 0x153   :  { %8181 = vmatmul.mubr.msk.f32.gmra.mrb[36].mxu0 %vm376_vm1, %v10877_v13 }
 0x154   :  { %8183 = vmatprep.mubr.msk.f32.mxu0 %vm376_vm1, %v10884_v14 }
 0x157   :  { %8184 = vmatmul.mubr.msk.f32.gmra.mrb[38].mxu0 %vm376_vm1, %v10914_v20  ;;  %v11436_v20 = vpop.permute.xlu1 %233 }
 0x158   :  { %8186 = vmatprep.mubr.msk.f32.mxu0 %vm376_vm1, %v10820_v3  ;;  %v11426_v3 = vpop.permute.xlu0 %218  ;;  %14111 = vst [vmem:[#allocation22_spill] sm:$0xff] %v11436_v20 }
 0x159   :  { %14107 = vst [vmem:[#allocation19_spill] sm:$0xff] %v11426_v3 }
 0x15b   :  { %8187 = vmatmul.mubr.msk.f32.gmra.mrb[40].mxu0 %vm376_vm1, %v10832_v5 }
 0x15c   :  { %8189 = vmatprep.mubr.msk.f32.mxu0 %vm376_vm1, %v10840_v6  ;;  %v11430_v5 = vpop.permute.xlu0 %238 }
 0x15d   :  { %14109 = vst [vmem:[#allocation21_spill] sm:$0xff] %v11430_v5 }
 0x15f   :  { %8190 = vmatmul.mubr.msk.f32.gmra.mrb[42].mxu0 %vm376_vm1, %v10863_v10 }
 0x160   :  { %8192 = vmatprep.mubr.msk.f32.mxu0 %vm376_vm1, %v10870_v11 }
 0x163   :  { %8193 = vmatmul.mubr.msk.f32.gmra.mrb[44].mxu0 %vm376_vm1, %v10894_v16  ;;  %v14110_v16 = vld [vmem:[#allocation3_spill] sm:$0xff] }
 0x164   :  { %8195 = vmatprep.mubr.msk.f32.mxu0 %vm376_vm1, %v10904_v18 }
 0x167   :  { %8196 = vmatmul.mubr.msk.f32.gmra.mrb[46].mxu0 %vm376_vm1, %v10931_v23 }
 0x168   :  { %8206 = vmatprep.mubr.msk.f32.mxu0 %vm574_vm2, %v10924_v22  ;;  %v11438_v22 = vpop.permute.xlu0 %228 }
 0x169   :  { %14112 = vst [vmem:[#allocation23_spill] sm:$0xff] %v11438_v22 }
 0x1fe   :  { %v7996_v6 = vpop.f32.mrb[8].mxu1  ;;  %v8086_v7 = vpop.f32.mrb[16].mxu0 }
 0x1ff   :  { %v984_v8 = vadd.f32 %v7996_v6, %v11424_v2  ;;  %v9090_v10 = vadd.f32 %v8086_v7, %v11177_v30  ;;  %v978_v11 = vpop.f32.mrb[9].mxu1  ;;  %v1560_v13 = vpop.f32.mrb[17].mxu0  ;;  %v14115_v7 = vld [vmem:[#allocation4_spill] sm:$0xff] }
 0x200   :  { %v979_v14 = vadd.f32 %v978_v11, %v11426_v3  ;;  %v9091_v18 = vadd.f32 %v1560_v13, %v14110_v16 }
 0x201   :  { %v6707_v23 = vmul.f32 -1.442695, %v984_v8  ;;  %v6768_v49 = vmul.f32 -1.442695, %v9090_v10 }
 0x202   :  { %v6706_v51 = vmul.f32 -1.442695, %v979_v14  ;;  %v6767_v53 = vmul.f32 -1.442695, %v9091_v18  ;;  %v7999_v61 = vpop.f32.mrb[10].mxu1  ;;  %v8089_v26 = vpop.f32.mrb[18].mxu0 }
 0x203   :  { %9598 = vpow2.f32 %v6707_v23  ;;  %v994_v63 = vadd.f32 %v7999_v61, %v11436_v20  ;;  %v9092_v38 = vadd.f32 %v8089_v26, %v14113_v12  ;;  %v988_v28 = vpop.f32.mrb[11].mxu1  ;;  %v1570_v57 = vpop.f32.mrb[19].mxu0  ;;  %v14116_v14 = vld [vmem:[#allocation2_spill] sm:$0xff] }
 0x204   :  { %9600 = vpow2.f32 %v6768_v49  ;;  %v989_v55 = vadd.f32 %v988_v28, %v11438_v22  ;;  %v9093_v40 = vadd.f32 %v1570_v57, %v14114_v17  ;;  %v11448_v23 = vpop.permute.xlu1 %253 }
 0x205   :  { %9602 = vpow2.f32 %v6706_v51  ;;  %v6709_v34 = vmul.f32 -1.442695, %v994_v63  ;;  %v6770_v36 = vmul.f32 -1.442695, %v9092_v38  ;;  %14117 = vst [vmem:[#allocation24_spill] sm:$0xff] %v11448_v23 }
 0x206   :  { %9604 = vpow2.f32 %v6767_v53  ;;  %v6708_v24 = vmul.f32 -1.442695, %v989_v55  ;;  %v6769_v15 = vmul.f32 -1.442695, %v9093_v40  ;;  %v8002_v50 = vpop.f32.mrb[12].mxu1  ;;  %v8092_v47 = vpop.f32.mrb[20].mxu0 }
 0x207   :  { %9606 = vpow2.f32 %v6709_v34  ;;  %v1004_v6 = vadd.f32 %v8002_v50, %v11428_v4  ;;  %v9094_v8 = vadd.f32 %v8092_v47, %v14115_v7  ;;  %v998_v10 = vpop.f32.mrb[13].mxu1  ;;  %v1580_v11 = vpop.f32.mrb[21].mxu0 }
 0x208   :  { %9608 = vpow2.f32 %v6770_v36  ;;  %v999_v13 = vadd.f32 %v998_v10, %v11430_v5  ;;  %v9095_v18 = vadd.f32 %v1580_v11, %v14116_v14  ;;  %v11451_v36 = vpop.permute.xlu0 %248 }
 0x209   :  { %9610 = vpow2.f32 %v6708_v24  ;;  %v6711_v49 = vmul.f32 -1.442695, %v1004_v6  ;;  %v6772_v51 = vmul.f32 -1.442695, %v9094_v8  ;;  %14118 = vst [vmem:[#allocation25_spill] sm:$0xff] %v11451_v36 }
 0x20a   :  { %9612 = vpow2.f32 %v6769_v15  ;;  %v6710_v53 = vmul.f32 -1.442695, %v999_v13  ;;  %v6771_v61 = vmul.f32 -1.442695, %v9095_v18  ;;  %v8005_v26 = vpop.f32.mrb[14].mxu1  ;;  %v8095_v63 = vpop.f32.mrb[22].mxu0 }
 0x20b   :  { %9614 = vpow2.f32 %v6711_v49  ;;  %v1014_v38 = vadd.f32 %v8005_v26, %v11448_v23  ;;  %v1008_v28 = vpop.f32.mrb[15].mxu1  ;;  %v1590_v57 = vpop.f32.mrb[23].mxu0 }
 0x20c   :  { %9616 = vpow2.f32 %v6772_v51  ;;  %v11461_v49 = vpop.permute.xlu1 %263  ;;  %v11469_v23 = vpop.permute.xlu0 %258  ;;  %v9097_v2 = vadd.f32 %v1590_v57, %v11193_v52 }
 0x20d   :  { %v9599_v55 = vpop.eup %9598  ;;  %9618 = vpow2.f32 %v6710_v53  ;;  %v6713_v40 = vmul.f32 -1.442695, %v1014_v38  ;;  %14119 = vst [vmem:[#allocation26_spill] sm:$0xff] %v11461_v49  ;;  %14120 = vst [vmem:[#allocation27_spill] sm:$0xff] %v11469_v23 }
 0x20e   :  { %v9601_v34 = vpop.eup %9600  ;;  %v1082_v24 = vadd.f32 1.0, %v9599_v55  ;;  %9620 = vpow2.f32 %v6771_v61  ;;  %v11453_v50 = vpop.f32.mrb[16].mxu1 }
 0x20f   :  { %v9603_v15 = vpop.eup %9602  ;;  %v1664_v47 = vadd.f32 1.0, %v9601_v34  ;;  %9622 = vpow2.f32 %v6713_v40  ;;  %v11455_v6 = vpop.f32.mrb[24].mxu0 }
 0x210   :  { %v11457_v8 = vpop.f32.mrb[17].mxu1  ;;  %v9605_v10 = vpop.eup %9604  ;;  %9624 = vrcp.f32 %v1082_v24  ;;  %v1081_v11 = vadd.f32 1.0, %v9603_v15 }
 0x211   :  { %v11459_v13 = vpop.f32.mrb[25].mxu0  ;;  %v9607_v18 = vpop.eup %9606  ;;  %9626 = vrcp.f32 %v1664_v47  ;;  %v1663_v51 = vadd.f32 1.0, %v9605_v10 }
 0x212   :  { %v9609_v53 = vpop.eup %9608  ;;  %9628 = vrcp.f32 %v1081_v11  ;;  %v1084_v61 = vadd.f32 1.0, %v9607_v18  ;;  %v8011_v26 = vpop.f32.mrb[18].mxu1  ;;  %v9096_v11 = vadd.f32 %v8095_v63, %v11191_v48 }
 0x213   :  { %v11463_v38 = vpop.f32.mrb[26].mxu0  ;;  %v9611_v55 = vpop.eup %9610  ;;  %9630 = vrcp.f32 %v1663_v51  ;;  %v1666_v40 = vadd.f32 1.0, %v9609_v53  ;;  %v1009_v51 = vadd.f32 %v1008_v28, %v11451_v36 }
 0x214   :  { %v11465_v34 = vpop.f32.mrb[19].mxu1  ;;  %v11467_v24 = vpop.f32.mrb[27].mxu0  ;;  %9632 = vrcp.f32 %v1084_v61  ;;  %v1083_v5 = vadd.f32 1.0, %v9611_v55  ;;  %v6774_v63 = vmul.f32 -1.442695, %v9096_v11  ;;  %v1024_v11 = vadd.f32 %v11453_v50, %v11461_v49 }
 0x215   :  { %v9613_v15 = vpop.eup %9612  ;;  %9634 = vrcp.f32 %v1666_v40  ;;  %v11474_v7 = vpop.permute.xlu1 %283  ;;  %v9099_v50 = vadd.f32 %v11459_v13, %v11201_v0 }
 0x216   :  { %v9615_v47 = vpop.eup %9614  ;;  %v1665_v10 = vadd.f32 1.0, %v9613_v15  ;;  %9636 = vrcp.f32 %v1083_v5  ;;  %v8014_v53 = vpop.f32.mrb[20].mxu1  ;;  %14121 = vst [vmem:[#allocation28_spill] sm:$0xff] %v11474_v7 }
 0x217   :  { %v9617_v18 = vpop.eup %9616  ;;  %v1086_v4 = vadd.f32 1.0, %v9615_v47  ;;  %v8104_v22 = vpop.f32.mrb[28].mxu0 }
 0x218   :  { %v9619_v20 = vpop.eup %9618  ;;  %9638 = vrcp.f32 %v1665_v10  ;;  %v1668_v3 = vadd.f32 1.0, %v9617_v18  ;;  %v1038_v14 = vpop.f32.mrb[21].mxu1  ;;  %v6712_v18 = vmul.f32 -1.442695, %v1009_v51  ;;  %v9098_v51 = vadd.f32 %v11455_v6, %v11198_v62 }
 0x219   :  { %v1620_v61 = vpop.f32.mrb[29].mxu0  ;;  %v9621_v55 = vpop.eup %9620  ;;  %9640 = vrcp.f32 %v1086_v4  ;;  %v1085_v40 = vadd.f32 1.0, %v9619_v20  ;;  %v6773_v4 = vmul.f32 -1.442695, %v9097_v2  ;;  %v1019_v2 = vadd.f32 %v11457_v8, %v11469_v23 }
 0x21a   :  { %v9623_v15 = vpop.eup %9622  ;;  %9642 = vrcp.f32 %v1668_v3  ;;  %v1667_v5 = vadd.f32 1.0, %v9621_v55  ;;  %v11478_v28 = vpop.permute.xlu0 %278  ;;  %v1044_v6 = vadd.f32 %v8014_v53, %v11474_v7  ;;  %v9100_v8 = vadd.f32 %v11463_v38, %v11213_v21 }
 0x21b   :  { %v11476_v47 = vpop.eup %9624  ;;  %14122 = vst [vmem:[#allocation29_spill] sm:$0xff] %v11478_v28  ;;  %9644 = vrcp.f32 %v1085_v40  ;;  %v1088_v10 = vadd.f32 1.0, %v9623_v15  ;;  %v11480_v36 = vpop.f32.mrb[22].mxu1  ;;  %v1039_v38 = vadd.f32 %v1038_v14, %v11478_v28 }
 0x21c   :  { %v11482_v57 = vpop.eup %9626  ;;  %9646 = vrcp.f32 %v1667_v5  ;;  %v11484_v20 = vpop.f32.mrb[30].mxu0 }
 0x21d   :  { %v11486_v52 = vpop.f32.mrb[23].mxu1  ;;  %v11488_v3 = vpop.eup %9628  ;;  %9648 = vrcp.f32 %v1088_v10 }
 0x21e   :  { %v11492_v55 = vpop.f32.mrb[31].mxu0  ;;  %v11494_v40 = vpop.eup %9630  ;;  %9650 = vpow2.f32 %v6774_v63 }
 0x21f   :  { %v11498_v15 = vpop.eup %9632  ;;  %9652 = vpow2.f32 %v6712_v18  ;;  %v11504_v10 = vpop.permute.xlu1 %273 }
 0x220   :  { %v11502_v5 = vpop.eup %9634  ;;  %14123 = vst [vmem:[#allocation30_spill] sm:$0xff] %v11504_v10  ;;  %9654 = vpow2.f32 %v6773_v4  ;;  %v1034_v63 = vadd.f32 %v8011_v26, %v11504_v10  ;;  %v11514_v18 = vpop.permute.xlu0 %268  ;;  %v9102_v4 = vadd.f32 %v8104_v22, %v11205_v56  ;;  %v9101_v26 = vadd.f32 %v11467_v24, %v11215_v60  ;;  %v14125_v22 = vld [vmem:[#allocation13_spill] sm:$0xff] }
 0x221   :  { %v11508_v49 = vpop.eup %9636  ;;  %9656 = vtanh.f32 %v1024_v11  ;;  %14124 = vst [vmem:[#allocation31_spill] sm:$0xff] %v11514_v18  ;;  %v1029_v13 = vadd.f32 %v11465_v34, %v11514_v18  ;;  %v6715_v10 = vmul.f32 -1.442695, %v1044_v6 }
 0x222   :  { %v11512_v62 = vpop.eup %9638  ;;  %9658 = vtanh.f32 %v9098_v51  ;;  %v6776_v51 = vmul.f32 -1.442695, %v9102_v4 }
 0x223   :  { %v9641_v23 = vpop.eup %9640  ;;  %9660 = vtanh.f32 %v1019_v2  ;;  %v9103_v2 = vadd.f32 %v1620_v61, %v14125_v22 }
 0x224   :  { %v9643_v11 = vpop.eup %9642  ;;  %9662 = vtanh.f32 %v9099_v50  ;;  %v1134_v0 = vmul.f32 0.0, %v9641_v23 }
 0x225   :  { %v9645_v53 = vpop.eup %9644  ;;  %9664 = vtanh.f32 %v1034_v63  ;;  %v6714_v63 = vmul.f32 -1.442695, %v1039_v38  ;;  %v6775_v14 = vmul.f32 -1.442695, %v9103_v2 }
 0x226   :  { %v9647_v7 = vpop.eup %9646  ;;  %9666 = vtanh.f32 %v9100_v8  ;;  %v1716_v8 = vmul.f32 %v9643_v11, %v11231_v32  ;;  %v1133_v61 = vmul.f32 0.0, %v9645_v53 }
 0x227   :  { %v9649_v21 = vpop.eup %9648  ;;  %9668 = vtanh.f32 %v1029_v13  ;;  %v11526_v13 = vpop.permute.xlu1 %293 }
 0x228   :  { %v9651_v56 = vpop.eup %9650  ;;  %9670 = vtanh.f32 %v9101_v26  ;;  %14126 = vst [vmem:[#allocation32_spill] sm:$0xff] %v11526_v13 }
 0x229   :  { %v9653_v34 = vpop.eup %9652  ;;  %v1670_v18 = vadd.f32 1.0, %v9651_v56  ;;  %9672 = vpow2.f32 %v6715_v10  ;;  %v1715_v10 = vmul.f32 %v9647_v7, %v11233_v42  ;;  %v11539_v7 = vpop.permute.xlu0 %288 }
 0x22a   :  { %v9655_v50 = vpop.eup %9654  ;;  %v1087_v24 = vadd.f32 1.0, %v9653_v34  ;;  %9674 = vpow2.f32 %v6776_v51  ;;  %v1054_v51 = vadd.f32 %v11480_v36, %v11526_v13  ;;  %14127 = vst [vmem:[#allocation33_spill] sm:$0xff] %v11539_v7 }
 0x22b   :  { %v9657_v6 = vpop.eup %9656  ;;  %9676 = vrcp.f32 %v1670_v18  ;;  %v1669_v4 = vadd.f32 1.0, %v9655_v50  ;;  %v1136_v18 = vmul.f32 0.0, %v9649_v21 }
 0x22c   :  { %v9659_v28 = vpop.eup %9658  ;;  %9678 = vrcp.f32 %v1087_v24  ;;  %v1138_v26 = vmul.f32 %v9657_v6, %v11476_v47  ;;  %v6717_v50 = vmul.f32 -1.442695, %v1054_v51 }
 0x22d   :  { %v9661_v56 = vpop.eup %9660  ;;  %9680 = vrcp.f32 %v1669_v4  ;;  %v1720_v23 = vmul.f32 %v9659_v28, %v11482_v57  ;;  %v14128_v57 = vld [vmem:[#allocation16_spill] sm:$0xff] }
 0x22e   :  { %v9663_v32 = vpop.eup %9662  ;;  %v11533_v11 = vadd.f32 %v1138_v26, %v1134_v0  ;;  %v1137_v38 = vmul.f32 %v9661_v56, %v11488_v3  ;;  %9682 = vpow2.f32 %v6714_v63  ;;  %v9104_v21 = vadd.f32 %v11484_v20, %v14128_v57 }
 0x22f   :  { %v9665_v53 = vpop.eup %9664  ;;  %v11536_v2 = vadd.f32 %v1720_v23, %v1716_v8  ;;  %v1719_v47 = vmul.f32 %v9663_v32, %v11494_v40  ;;  %9684 = vpow2.f32 %v6775_v14  ;;  %v1049_v40 = vadd.f32 %v11486_v52, %v11539_v7 }
 0x230   :  { %v9667_v42 = vpop.eup %9666  ;;  %v11541_v28 = vadd.f32 %v1137_v38, %v1133_v61  ;;  %v1140_v36 = vmul.f32 %v9665_v53, %v11498_v15  ;;  %9686 = vtanh.f32 %v11533_v11  ;;  %v6778_v14 = vmul.f32 -1.442695, %v9104_v21 }
 0x231   :  { %v9669_v0 = vpop.eup %9668  ;;  %v11546_v34 = vadd.f32 %v1719_v47, %v1715_v10  ;;  %v1722_v3 = vmul.f32 %v9667_v42, %v11502_v5  ;;  %9688 = vpow2.f32 %v6717_v50  ;;  %v6716_v5 = vmul.f32 -1.442695, %v1049_v40 }
 0x232   :  { %v9671_v24 = vpop.eup %9670  ;;  %v11551_v63 = vadd.f32 %v1140_v36, %v1136_v18  ;;  %v1139_v6 = vmul.f32 %v9669_v0, %v11508_v49  ;;  %9690 = vtanh.f32 %v11536_v2 }
 0x233   :  { %v9673_v8 = vpop.eup %9672  ;;  %v1721_v15 = vmul.f32 %v9671_v24, %v11512_v62  ;;  %v9105_v62 = vadd.f32 %v11492_v55, %v11225_v9 }
 0x234   :  { %v9675_v4 = vpop.eup %9674  ;;  %v1122_v20 = vadd.f32 1.0, %v9673_v8 }
 0x235   :  { %v9677_v61 = vpop.eup %9676  ;;  %v1704_v52 = vadd.f32 1.0, %v9675_v4  ;;  %v6777_v42 = vmul.f32 -1.442695, %v9105_v62 }
 0x236   :  { %v9679_v26 = vpop.eup %9678  ;;  %v1718_v56 = vmul.f32 %v9677_v61, %v11237_v44  ;;  %9692 = vrcp.f32 %v1122_v20 }
 0x237   :  { %v9681_v10 = vpop.eup %9680  ;;  %v1135_v23 = vmul.f32 0.0, %v9679_v26  ;;  %9694 = vpow2.f32 %v6778_v14 }
 0x238   :  { %v9683_v49 = vpop.eup %9682  ;;  %v1717_v51 = vmul.f32 %v9681_v10, %v11240_v54  ;;  %v11561_v32 = vadd.f32 %v1722_v3, %v1718_v56  ;;  %9696 = vpow2.f32 %v6716_v5 }
 0x239   :  { %v9685_v18 = vpop.eup %9684  ;;  %v11563_v38 = vadd.f32 %v1139_v6, %v1135_v23  ;;  %v1121_v53 = vadd.f32 1.0, %v9683_v49  ;;  %9698 = vrcp.f32 %v1704_v52 }
 0x23a   :  { %v11565_v44 = vadd.f32 %v1721_v15, %v1717_v51  ;;  %v1703_v47 = vadd.f32 1.0, %v9685_v18  ;;  %9700 = vtanh.f32 %v11541_v28  ;;  %v9687_v55 = vpop.eup %9686 }
 0x23b   :  { %9702 = vtanh.f32 %v11546_v34  ;;  %v9689_v54 = vpop.eup %9688 }
 0x23c   :  { %9704 = vrcp.f32 %v1121_v53  ;;  %v9691_v36 = vpop.eup %9690  ;;  %v1124_v21 = vadd.f32 1.0, %v9689_v54 }
 0x23d   :  { %9706 = vrcp.f32 %v1703_v47 }
 0x23e   :  { %9708 = vpow2.f32 %v6777_v42 }
 0x23f   :  { %9710 = vtanh.f32 %v11551_v63 }
 0x240   :  { %v9693_v0 = vpop.eup %9692  ;;  %9712 = vrcp.f32 %v1124_v21 }
 0x241   :  { %v9695_v3 = vpop.eup %9694  ;;  %9714 = vtanh.f32 %v11563_v38  ;;  %v1150_v4 = vmul.f32 %v9693_v0, %v9687_v55 }
 0x242   :  { %v9697_v50 = vpop.eup %9696  ;;  %v1706_v24 = vadd.f32 1.0, %v9695_v3  ;;  %v11576_v3 = vld [vmem:[%s13937_s5 + $0x8] sm:$0xff] }
 0x243   :  { %v9699_v40 = vpop.eup %9698  ;;  %v1123_v6 = vadd.f32 1.0, %v9697_v50 }
 0x244   :  { %v9701_v8 = vpop.eup %9700  ;;  %v1732_v14 = vmul.f32 %v9699_v40, %v9691_v36  ;;  %v11581_v40 = vld [vmem:[%s13937_s5 + $0x10] sm:$0xff] }
 0x245   :  { %v9703_v15 = vpop.eup %9702  ;;  %9716 = vrcp.f32 %v1123_v6  ;;  %v11590_v6 = vld [vmem:[%s13937_s5 + $0x18] sm:$0xff] }
 0x246   :  { %v9705_v20 = vpop.eup %9704  ;;  %9718 = vtanh.f32 %v11561_v32 }
 0x247   :  { %v9707_v61 = vpop.eup %9706  ;;  %9720 = vrcp.f32 %v1706_v24  ;;  %v1149_v5 = vmul.f32 %v9705_v20, %v9701_v8  ;;  %v11595_v8 = vld [vmem:[%s13937_s5 + $0x20] sm:$0xff]  ;;  %v11616_v20 = vld [vmem:[%s13937_s5 + $0x30] sm:$0xff] }
 0x248   :  { %v9709_v26 = vpop.eup %9708  ;;  %v1731_v56 = vmul.f32 %v9707_v61, %v9703_v15  ;;  %9722 = vtanh.f32 %v11565_v44  ;;  %v11604_v15 = vld [vmem:[%s13937_s5 + $0x28] sm:$0xff]  ;;  %v11632_v61 = vld [vmem:[%s13937_s5 + $0x38] sm:$0xff] }
 0x249   :  { %v1705_v52 = vadd.f32 1.0, %v9709_v26  ;;  %v8880_v10 = vpack.c.bf16 %v1150_v4, %v1149_v5  ;;  %v9711_v23 = vpop.eup %9710  ;;  %v11609_v4 = vld [vmem:[%s13934_s2 + $0x8] sm:$0xff]  ;;  %v11637_v5 = vld [vmem:[%s13934_s2 + $0x18] sm:$0xff]  ;;  %v11644_v26 = vld [vmem:[%s13937_s5 + $0x40] sm:$0xff] }
 0x24a   :  { %v8896_v62 = vpack.c.bf16 %v1732_v14, %v1731_v56  ;;  %v9713_v49 = vpop.eup %9712  ;;  %v11621_v14 = vld [vmem:[%s13934_s2 + $0x10] sm:$0xff]  ;;  %v11649_v56 = vld [vmem:[%s13934_s2 + $0x20] sm:$0xff] }
 0x24b   :  { %9724 = vrcp.f32 %v1705_v52  ;;  %8881 = vmatprep.subr.bf16.mxu1 %v8880_v10  ;;  %v9715_v51 = vpop.eup %9714  ;;  %v1152_v18 = vmul.f32 %v9713_v49, %v9711_v23  ;;  %v11660_v52 = vld [vmem:[%s13937_s5 + $0x48] sm:$0xff]  ;;  %v11672_v23 = vld [vmem:[%s13937_s5 + $0x50] sm:$0xff]  ;;  %v11688_v49 = vld [vmem:[%s13937_s5 + $0x58] sm:$0xff] }
 0x24c   :  { %8913 = vmatprep.subr.bf16.mxu0 %v8896_v62  ;;  %8883 = vmatpush3.bf16.msra.mxu1 %v8880_v10  ;;  %v11665_v10 = vld [vmem:[%s13934_s2 + $0x28] sm:$0xff] }
 0x24d   :  { %8915 = vmatpush3.bf16.msra.mxu0 %v8896_v62 }
 0x24f   :  { %v9717_v53 = vpop.eup %9716 }
 0x250   :  { %v9719_v47 = vpop.eup %9718  ;;  %v1151_v42 = vmul.f32 %v9717_v53, %v9715_v51  ;;  %v11693_v51 = vld [vmem:[%s13934_s2 + $0x38] sm:$0xff]  ;;  %v11705_v53 = vld [vmem:[%s13934_s2 + $0x40] sm:$0xff] }
 0x251   :  { %v9721_v55 = vpop.eup %9720 }
 0x252   :  { %v8884_v54 = vpack.c.bf16 %v1152_v18, %v1151_v42  ;;  %v9723_v36 = vpop.eup %9722  ;;  %v1734_v21 = vmul.f32 %v9721_v55, %v9719_v47  ;;  %v11700_v18 = vld [vmem:[%s13937_s5 + $0x60] sm:$0xff]  ;;  %v11716_v47 = vld [vmem:[%s13937_s5 + $0x68] sm:$0xff]  ;;  %v11728_v55 = vld [vmem:[%s13937_s5 + $0x70] sm:$0xff] }
 0x253   :  { %14129 = vst [vmem:[#allocation34_spill] sm:$0xff] %v11700_v18  ;;  %14130 = vst [vmem:[#allocation35_spill] sm:$0xff] %v11716_v47  ;;  %v11721_v42 = vld [vmem:[%s13934_s2 + $0x48] sm:$0xff] }
 0x254   :  { %8885 = vmatprep.subr.bf16.mxu1 %v8884_v54  ;;  %14131 = vst [vmem:[#allocation36_spill] sm:$0xff] %v11728_v55 }
 0x255   :  { %v9725_v0 = vpop.eup %9724  ;;  %8887 = vmatpush3.bf16.msra.mxu1 %v8884_v54  ;;  %v11733_v54 = vld [vmem:[%s13934_s2 + $0x50] sm:$0xff] }
 0x256   :  { %v1733_v50 = vmul.f32 %v9725_v0, %v9723_v36  ;;  %8897 = vmatprep.subr.bf16.mxu1 %v8896_v62  ;;  %v11744_v36 = vld [vmem:[%s13937_s5 + $0x78] sm:$0xff]  ;;  %v11756_v0 = vld [vmem:[%s13934_s2 + $0x60] sm:$0xff] }
 0x257   :  { %14132 = vst [vmem:[#allocation37_spill] sm:$0xff] %v11744_v36 }
 0x258   :  { %v8900_v24 = vpack.c.bf16 %v1734_v21, %v1733_v50  ;;  %8027 = vmatmul.mubr.msk.f32.vlgmr.msra.gmra.mrb[24].mxu1 %vm574_vm2, %v11576_v3  ;;  %v11749_v21 = vld [vmem:[%s13934_s2 + $0x58] sm:$0xff]  ;;  %v11765_v50 = vld [vmem:[%s13936_s4] sm:$0xff] }
 0x259   :  { %8899 = vmatpush3.bf16.msra.mxu1 %v8896_v62  ;;  %8029 = vmatprep.mubr.msk.f32.mxu1 %vm574_vm2, %v11581_v40  ;;  %v11677_v62 = vld [vmem:[%s13934_s2 + $0x30] sm:$0xff]  ;;  %14133 = vst [vmem:[#allocation38_spill] sm:$0xff] %v11765_v50 }
 0x25a   :  { %8917 = vmatprep.subr.bf16.mxu0 %v8900_v24  ;;  %8901 = vmatprep.subr.bf16.mxu1 %v8900_v24 }
 0x25b   :  { %8919 = vmatpush3.bf16.msra.mxu0 %v8900_v24 }
 0x25c   :  { %8030 = vmatmul.mubr.msk.f32.gmra.mrb[26].mxu1 %vm574_vm2, %v11590_v6 }
 0x25d   :  { %8903 = vmatpush3.bf16.msra.mxu1 %v8900_v24  ;;  %8032 = vmatprep.mubr.msk.f32.mxu1 %vm574_vm2, %v11595_v8  ;;  %v11772_v24 = vld [vmem:[%s13934_s2 + $0x68] sm:$0xff] }
 0x25e   :  { %8207 = vmatmul.mubr.msk.f32.vlgmr.msra.gmra.mrb[32].mxu0 %vm574_vm2, %v11609_v4 }
 0x25f   :  { %8209 = vmatprep.mubr.msk.f32.mxu0 %vm574_vm2, %v11621_v14 }
 0x260   :  { %8033 = vmatmul.mubr.msk.f32.gmra.mrb[28].mxu1 %vm574_vm2, %v11604_v15 }
 0x261   :  { %8035 = vmatprep.mubr.msk.f32.mxu1 %vm574_vm2, %v11616_v20 }
 0x262   :  { %8210 = vmatmul.mubr.msk.f32.gmra.mrb[34].mxu0 %vm574_vm2, %v11637_v5 }
 0x263   :  { %8212 = vmatprep.mubr.msk.f32.mxu0 %vm574_vm2, %v11649_v56 }
 0x264   :  { %8036 = vmatmul.mubr.msk.f32.gmra.mrb[30].mxu1 %vm574_vm2, %v11632_v61 }
 0x265   :  { %8038 = vmatprep.mubr.msk.f32.mxu1 %vm574_vm2, %v11644_v26 }
 0x266   :  { %8213 = vmatmul.mubr.msk.f32.gmra.mrb[36].mxu0 %vm574_vm2, %v11665_v10 }
 0x267   :  { %8215 = vmatprep.mubr.msk.f32.mxu0 %vm574_vm2, %v11677_v62 }
 0x268   :  { %8039 = vmatmul.mubr.msk.f32.gmra.mrb[32].mxu1 %vm574_vm2, %v11660_v52 }
 0x269   :  { %8041 = vmatprep.mubr.msk.f32.mxu1 %vm574_vm2, %v11672_v23 }
 0x26a   :  { %8216 = vmatmul.mubr.msk.f32.gmra.mrb[38].mxu0 %vm574_vm2, %v11693_v51 }
 0x26b   :  { %8218 = vmatprep.mubr.msk.f32.mxu0 %vm574_vm2, %v11705_v53 }
 0x26c   :  { %8042 = vmatmul.mubr.msk.f32.gmra.mrb[34].mxu1 %vm574_vm2, %v11688_v49 }
 0x26d   :  { %8044 = vmatprep.mubr.msk.f32.mxu1 %vm574_vm2, %v11700_v18 }
 0x26e   :  { %8219 = vmatmul.mubr.msk.f32.gmra.mrb[40].mxu0 %vm574_vm2, %v11721_v42 }
 0x26f   :  { %8221 = vmatprep.mubr.msk.f32.mxu0 %vm574_vm2, %v11733_v54 }
 0x270   :  { %8045 = vmatmul.mubr.msk.f32.gmra.mrb[36].mxu1 %vm574_vm2, %v11716_v47 }
 0x271   :  { %8047 = vmatprep.mubr.msk.f32.mxu1 %vm574_vm2, %v11728_v55  ;;  %v11797_v55 = vld [vmem:[%s13932_s1] sm:$0xff] }
 0x272   :  { %8222 = vmatmul.mubr.msk.f32.gmra.mrb[42].mxu0 %vm574_vm2, %v11749_v21 }
 0x273   :  { %8224 = vmatprep.mubr.msk.f32.mxu0 %vm574_vm2, %v11756_v0 }
 0x274   :  { %8048 = vmatmul.mubr.msk.f32.gmra.mrb[38].mxu1 %vm574_vm2, %v11744_v36  ;;  %v11779_v36 = vld [vmem:[%s13934_s2 + $0x70] sm:$0xff] }
 0x275   :  { %8116 = vmatprep.mubr.msk.f32.mxu1 %vm574_vm2, %v11765_v50  ;;  %v11790_v50 = vld [vmem:[%s13934_s2 + $0x78] sm:$0xff] }
 0x276   :  { %8225 = vmatmul.mubr.msk.f32.gmra.mrb[44].mxu0 %vm574_vm2, %v11772_v24 }
 0x277   :  { %8227 = vmatprep.mubr.msk.f32.mxu0 %vm574_vm2, %v11779_v36 }
 0x278   :  { %8117 = vmatmul.mubr.msk.f32.vlgmr.msra.gmra.mrb[24].mxu1 %vm574_vm2, %v11246_v19  ;;  %v29_v19 = vld [vmem:[%s13931_s0 + $0xc] sm:$0xf] }
 0x279   :  { %8119 = vmatprep.mubr.msk.f32.mxu1 %vm574_vm2, %v11251_v46  ;;  %8294 = vmatprep.subr.msk.mxu0 %vm425_vm0, %v29_v19  ;;  %v11837_v46 = vld [vmem:[%s13932_s1 + $0x8] sm:$0xff] }
 0x27a   :  { %8228 = vmatmul.mubr.msk.f32.gmra.mrb[46].mxu0 %vm574_vm2, %v11790_v50  ;;  %14134 = vst [vmem:[#allocation39_spill] sm:$0xff] %v11837_v46 }
 0x27b   :  { %8296 = vmatprep.mubr.msk.f32.mxu0 %vm376_vm1, %v11797_v55  ;;  %8295 = vmatpush3.msk.msra.mxu0 %vm425_vm0, %v29_v19  ;;  %v11942_v19 = vld [vmem:[%s13934_s2] sm:$0xff] }
 0x27c   :  { %8120 = vmatmul.mubr.msk.f32.gmra.mrb[26].mxu1 %vm574_vm2, %v11264_v59  ;;  %v11844_v59 = vld [vmem:[%s13932_s1 + $0x10] sm:$0xff]  ;;  %14149 = vst [vmem:[#allocation54_spill] sm:$0xff] %v11942_v19 }
 0x27d   :  { %8122 = vmatprep.mubr.msk.f32.mxu1 %vm574_vm2, %v11269_v58  ;;  %14135 = vst [vmem:[#allocation40_spill] sm:$0xff] %v11844_v59  ;;  %v11851_v58 = vld [vmem:[%s13932_s1 + $0x18] sm:$0xff] }
 0x27e   :  { %8297 = vmatmul.mubr.msk.f32.vlgmr.msra.gmra.mrb[48].mxu0 %vm376_vm1, %v11837_v46  ;;  %14136 = vst [vmem:[#allocation41_spill] sm:$0xff] %v11851_v58 }
 0x27f   :  { %8299 = vmatprep.mubr.msk.f32.mxu0 %vm376_vm1, %v11844_v59 }
 0x280   :  { %8123 = vmatmul.mubr.msk.f32.gmra.mrb[28].mxu1 %vm574_vm2, %v11282_v25  ;;  %v11858_v25 = vld [vmem:[%s13932_s1 + $0x20] sm:$0xff] }
 0x281   :  { %8125 = vmatprep.mubr.msk.f32.mxu1 %vm574_vm2, %v11287_v27  ;;  %14137 = vst [vmem:[#allocation42_spill] sm:$0xff] %v11858_v25  ;;  %v11865_v27 = vld [vmem:[%s13932_s1 + $0x28] sm:$0xff] }
 0x282   :  { %8300 = vmatmul.mubr.msk.f32.gmra.mrb[50].mxu0 %vm376_vm1, %v11851_v58  ;;  %14138 = vst [vmem:[#allocation43_spill] sm:$0xff] %v11865_v27 }
 0x283   :  { %8302 = vmatprep.mubr.msk.f32.mxu0 %vm376_vm1, %v11858_v25 }
 0x284   :  { %8126 = vmatmul.mubr.msk.f32.gmra.mrb[30].mxu1 %vm574_vm2, %v11300_v29  ;;  %v11872_v29 = vld [vmem:[%s13932_s1 + $0x30] sm:$0xff] }
 0x285   :  { %8128 = vmatprep.mubr.msk.f32.mxu1 %vm574_vm2, %v11305_v31  ;;  %14139 = vst [vmem:[#allocation44_spill] sm:$0xff] %v11872_v29  ;;  %v11879_v31 = vld [vmem:[%s13932_s1 + $0x38] sm:$0xff] }
 0x286   :  { %8303 = vmatmul.mubr.msk.f32.gmra.mrb[52].mxu0 %vm376_vm1, %v11865_v27  ;;  %14140 = vst [vmem:[#allocation45_spill] sm:$0xff] %v11879_v31 }
 0x287   :  { %8305 = vmatprep.mubr.msk.f32.mxu0 %vm376_vm1, %v11872_v29 }
 0x288   :  { %8129 = vmatmul.mubr.msk.f32.gmra.mrb[32].mxu1 %vm574_vm2, %v11318_v33  ;;  %v11886_v33 = vld [vmem:[%s13932_s1 + $0x40] sm:$0xff] }
 0x289   :  { %8131 = vmatprep.mubr.msk.f32.mxu1 %vm574_vm2, %v11323_v35  ;;  %14141 = vst [vmem:[#allocation46_spill] sm:$0xff] %v11886_v33  ;;  %v11893_v35 = vld [vmem:[%s13932_s1 + $0x48] sm:$0xff] }
 0x28a   :  { %8306 = vmatmul.mubr.msk.f32.gmra.mrb[54].mxu0 %vm376_vm1, %v11879_v31  ;;  %14142 = vst [vmem:[#allocation47_spill] sm:$0xff] %v11893_v35 }
 0x28b   :  { %8308 = vmatprep.mubr.msk.f32.mxu0 %vm376_vm1, %v11886_v33 }
 0x28c   :  { %8132 = vmatmul.mubr.msk.f32.gmra.mrb[34].mxu1 %vm574_vm2, %v11336_v37  ;;  %v11900_v37 = vld [vmem:[%s13932_s1 + $0x50] sm:$0xff] }
 0x28d   :  { %8134 = vmatprep.mubr.msk.f32.mxu1 %vm574_vm2, %v11341_v39  ;;  %14143 = vst [vmem:[#allocation48_spill] sm:$0xff] %v11900_v37  ;;  %v11907_v39 = vld [vmem:[%s13932_s1 + $0x58] sm:$0xff] }
 0x28e   :  { %8309 = vmatmul.mubr.msk.f32.gmra.mrb[56].mxu0 %vm376_vm1, %v11893_v35  ;;  %14144 = vst [vmem:[#allocation49_spill] sm:$0xff] %v11907_v39 }
 0x28f   :  { %8311 = vmatprep.mubr.msk.f32.mxu0 %vm376_vm1, %v11900_v37 }
 0x290   :  { %8135 = vmatmul.mubr.msk.f32.gmra.mrb[36].mxu1 %vm574_vm2, %v11354_v41  ;;  %v11914_v41 = vld [vmem:[%s13932_s1 + $0x60] sm:$0xff] }
 0x291   :  { %8137 = vmatprep.mubr.msk.f32.mxu1 %vm574_vm2, %v11359_v43  ;;  %14145 = vst [vmem:[#allocation50_spill] sm:$0xff] %v11914_v41  ;;  %v11921_v43 = vld [vmem:[%s13932_s1 + $0x68] sm:$0xff] }
 0x292   :  { %8312 = vmatmul.mubr.msk.f32.gmra.mrb[58].mxu0 %vm376_vm1, %v11907_v39  ;;  %14146 = vst [vmem:[#allocation51_spill] sm:$0xff] %v11921_v43 }
 0x293   :  { %8314 = vmatprep.mubr.msk.f32.mxu0 %vm376_vm1, %v11914_v41 }
 0x294   :  { %8138 = vmatmul.mubr.msk.f32.gmra.mrb[38].mxu1 %vm574_vm2, %v11372_v45  ;;  %v11928_v45 = vld [vmem:[%s13932_s1 + $0x70] sm:$0xff] }
 0x295   :  { %8148 = vmatprep.mubr.msk.f32.mxu1 %vm574_vm2, %v11420_v1  ;;  %14147 = vst [vmem:[#allocation52_spill] sm:$0xff] %v11928_v45  ;;  %v11935_v1 = vld [vmem:[%s13932_s1 + $0x78] sm:$0xff] }
 0x296   :  { %8315 = vmatmul.mubr.msk.f32.gmra.mrb[60].mxu0 %vm376_vm1, %v11921_v43  ;;  %14148 = vst [vmem:[#allocation53_spill] sm:$0xff] %v11935_v1 }
 0x297   :  { %8317 = vmatprep.mubr.msk.f32.mxu0 %vm376_vm1, %v11928_v45 }
 0x29a   :  { %8318 = vmatmul.mubr.msk.f32.gmra.mrb[62].mxu0 %vm376_vm1, %v11935_v1 }
 0x29b   :  { %8328 = vmatprep.mubr.msk.f32.mxu0 %vm574_vm2, %v11942_v19  ;;  %v14150_v19 = vld [vmem:[#allocation4_spill] sm:$0xff] }
 0x331   :  { %v8208_v43 = vpop.f32.mrb[32].mxu0 }
 0x332   :  { %v9122_v41 = vadd.f32 %v8208_v43, %v11177_v30  ;;  %v2335_v45 = vpop.f32.mrb[33].mxu0  ;;  %v14151_v30 = vld [vmem:[#allocation2_spill] sm:$0xff] }
 0x333   :  { %v9123_v39 = vadd.f32 %v2335_v45, %v14110_v16 }
 0x334   :  { %v6857_v37 = vmul.f32 -1.442695, %v9122_v41 }
 0x335   :  { %v6856_v35 = vmul.f32 -1.442695, %v9123_v39  ;;  %v8211_v33 = vpop.f32.mrb[34].mxu0 }
 0x336   :  { %9726 = vpow2.f32 %v6857_v37  ;;  %v9124_v1 = vadd.f32 %v8211_v33, %v14113_v12  ;;  %v2345_v31 = vpop.f32.mrb[35].mxu0 }
 0x337   :  { %9728 = vpow2.f32 %v6856_v35  ;;  %v9125_v29 = vadd.f32 %v2345_v31, %v14114_v17  ;;  %v14152_v35 = vld [vmem:[#allocation9_spill] sm:$0xff] }
 0x338   :  { %v6859_v27 = vmul.f32 -1.442695, %v9124_v1 }
 0x339   :  { %v6858_v25 = vmul.f32 -1.442695, %v9125_v29  ;;  %v8214_v58 = vpop.f32.mrb[36].mxu0 }
 0x33a   :  { %9730 = vpow2.f32 %v6859_v27  ;;  %v9126_v59 = vadd.f32 %v8214_v58, %v14150_v19  ;;  %v2355_v43 = vpop.f32.mrb[37].mxu0 }
 0x33b   :  { %9732 = vpow2.f32 %v6858_v25  ;;  %v9127_v45 = vadd.f32 %v2355_v43, %v14151_v30  ;;  %v14153_v25 = vld [vmem:[#allocation10_spill] sm:$0xff] }
 0x33c   :  { %v6861_v41 = vmul.f32 -1.442695, %v9126_v59 }
 0x33d   :  { %v6860_v39 = vmul.f32 -1.442695, %v9127_v45  ;;  %v8217_v16 = vpop.f32.mrb[38].mxu0 }
 0x33e   :  { %9734 = vpow2.f32 %v6861_v41  ;;  %v9128_v33 = vadd.f32 %v8217_v16, %v11191_v48  ;;  %v2365_v37 = vpop.f32.mrb[39].mxu0 }
 0x33f   :  { %9736 = vpow2.f32 %v6860_v39  ;;  %v9129_v31 = vadd.f32 %v2365_v37, %v14152_v35  ;;  %v14154_v39 = vld [vmem:[#allocation11_spill] sm:$0xff] }
 0x340   :  { %v9727_v1 = vpop.eup %9726  ;;  %v6863_v29 = vmul.f32 -1.442695, %v9128_v33  ;;  %v14155_v33 = vld [vmem:[#allocation14_spill] sm:$0xff] }
 0x341   :  { %v9729_v17 = vpop.eup %9728  ;;  %v2439_v27 = vadd.f32 1.0, %v9727_v1  ;;  %v6862_v12 = vmul.f32 -1.442695, %v9129_v31  ;;  %v8220_v58 = vpop.f32.mrb[40].mxu0 }
 0x342   :  { %v2438_v19 = vadd.f32 1.0, %v9729_v17  ;;  %9738 = vpow2.f32 %v6863_v29  ;;  %v9130_v43 = vadd.f32 %v8220_v58, %v14153_v25  ;;  %v2375_v59 = vpop.f32.mrb[41].mxu0 }
 0x343   :  { %9740 = vrcp.f32 %v2439_v27  ;;  %v9131_v48 = vadd.f32 %v2375_v59, %v14154_v39 }
 0x344   :  { %v9731_v45 = vpop.eup %9730  ;;  %9742 = vrcp.f32 %v2438_v19 }
 0x345   :  { %v9733_v41 = vpop.eup %9732  ;;  %v2441_v16 = vadd.f32 1.0, %v9731_v45  ;;  %9744 = vpow2.f32 %v6862_v12  ;;  %v8223_v37 = vpop.f32.mrb[42].mxu0  ;;  %v14156_v12 = vld [vmem:[#allocation12_spill] sm:$0xff] }
 0x346   :  { %v2440_v35 = vadd.f32 1.0, %v9733_v41  ;;  %9746 = vtanh.f32 %v9130_v43  ;;  %v9132_v1 = vadd.f32 %v8223_v37, %v14155_v33  ;;  %v2385_v31 = vpop.f32.mrb[43].mxu0  ;;  %v14157_v33 = vld [vmem:[#allocation18_spill] sm:$0xff] }
 0x347   :  { %9748 = vrcp.f32 %v2441_v16  ;;  %v9133_v27 = vadd.f32 %v2385_v31, %v11215_v60 }
 0x348   :  { %v9735_v17 = vpop.eup %9734  ;;  %9750 = vrcp.f32 %v2440_v35 }
 0x349   :  { %v9737_v29 = vpop.eup %9736  ;;  %v2443_v58 = vadd.f32 1.0, %v9735_v17  ;;  %9752 = vtanh.f32 %v9131_v48  ;;  %v8226_v19 = vpop.f32.mrb[44].mxu0 }
 0x34a   :  { %v2442_v25 = vadd.f32 1.0, %v9737_v29  ;;  %9754 = vtanh.f32 %v9132_v1  ;;  %v9134_v45 = vadd.f32 %v8226_v19, %v14156_v12  ;;  %v2395_v59 = vpop.f32.mrb[45].mxu0  ;;  %v14158_v29 = vld [vmem:[#allocation19_spill] sm:$0xff] }
 0x34b   :  { %9756 = vrcp.f32 %v2443_v58  ;;  %v9135_v43 = vadd.f32 %v2395_v59, %v14125_v22  ;;  %v8118_v41 = vpop.f32.mrb[24].mxu1 }
 0x34c   :  { %v9739_v37 = vpop.eup %9738  ;;  %9758 = vrcp.f32 %v2442_v25  ;;  %v6865_v16 = vmul.f32 -1.442695, %v9134_v45  ;;  %v9074_v35 = vadd.f32 %v8118_v41, %v14157_v33  ;;  %v1801_v39 = vpop.f32.mrb[25].mxu1 }
 0x34d   :  { %v9741_v17 = vpop.eup %9740  ;;  %v2445_v48 = vadd.f32 1.0, %v9739_v37  ;;  %9760 = vtanh.f32 %v9133_v27  ;;  %v6864_v31 = vmul.f32 -1.442695, %v9135_v43  ;;  %v8229_v60 = vpop.f32.mrb[46].mxu0  ;;  %v9075_v1 = vadd.f32 %v1801_v39, %v14158_v29  ;;  %v14159_v43 = vld [vmem:[#allocation22_spill] sm:$0xff] }
 0x34e   :  { %v9743_v30 = vpop.eup %9742  ;;  %9762 = vpow2.f32 %v6865_v16  ;;  %v9136_v58 = vadd.f32 %v8229_v60, %v14128_v57  ;;  %v2405_v19 = vpop.f32.mrb[47].mxu0  ;;  %v6796_v59 = vmul.f32 -1.442695, %v9074_v35  ;;  %v14160_v60 = vld [vmem:[#allocation23_spill] sm:$0xff] }
 0x34f   :  { %v9745_v22 = vpop.eup %9744  ;;  %9764 = vrcp.f32 %v2445_v48  ;;  %v9137_v25 = vadd.f32 %v2405_v19, %v11225_v9  ;;  %v6795_v45 = vmul.f32 -1.442695, %v9075_v1  ;;  %v8121_v41 = vpop.f32.mrb[26].mxu1 }
 0x350   :  { %v9747_v33 = vpop.eup %9746  ;;  %v2444_v12 = vadd.f32 1.0, %v9745_v22  ;;  %9766 = vpow2.f32 %v6864_v31  ;;  %v6867_v27 = vmul.f32 -1.442695, %v9136_v58  ;;  %v9076_v37 = vadd.f32 %v8121_v41, %v14159_v43  ;;  %v1811_v46 = vpop.f32.mrb[27].mxu1  ;;  %v14161_v31 = vld [vmem:[#allocation20_spill] sm:$0xff] }
 0x351   :  { %v9749_v39 = vpop.eup %9748  ;;  %v2495_v29 = vmul.f32 %v9747_v33, %v9741_v17  ;;  %v6866_v16 = vmul.f32 -1.442695, %v9137_v25  ;;  %9768 = vpow2.f32 %v6796_v59  ;;  %v9077_v57 = vadd.f32 %v1811_v46, %v14160_v60  ;;  %v14162_v33 = vld [vmem:[#allocation21_spill] sm:$0xff] }
 0x352   :  { %v9751_v35 = vpop.eup %9750  ;;  %9770 = vrcp.f32 %v2444_v12  ;;  %v6798_v48 = vmul.f32 -1.442695, %v9076_v37 }
 0x353   :  { %v9753_v47 = vpop.eup %9752  ;;  %9772 = vpow2.f32 %v6867_v27  ;;  %v6797_v1 = vmul.f32 -1.442695, %v9077_v57  ;;  %v8124_v19 = vpop.f32.mrb[28].mxu1 }
 0x354   :  { %v9755_v9 = vpop.eup %9754  ;;  %v2494_v22 = vmul.f32 %v9753_v47, %v9743_v30  ;;  %9774 = vpow2.f32 %v6866_v16  ;;  %v9078_v58 = vadd.f32 %v8124_v19, %v14161_v31  ;;  %v1821_v41 = vpop.f32.mrb[29].mxu1 }
 0x355   :  { %v9757_v43 = vpop.eup %9756  ;;  %v2497_v18 = vmul.f32 %v9755_v9, %v9749_v39  ;;  %9776 = vpow2.f32 %v6795_v45  ;;  %v9079_v17 = vadd.f32 %v1821_v41, %v14162_v33 }
 0x356   :  { %v9759_v59 = vpop.eup %9758  ;;  %v2491_v46 = vmul.f32 %v9757_v43, %v11536_v2  ;;  %9778 = vpow2.f32 %v6798_v48  ;;  %v6800_v12 = vmul.f32 -1.442695, %v9078_v58 }
 0x357   :  { %v9761_v25 = vpop.eup %9760  ;;  %v2490_v57 = vmul.f32 %v9759_v59, %v11546_v34  ;;  %9780 = vpow2.f32 %v6797_v1  ;;  %v6799_v27 = vmul.f32 -1.442695, %v9079_v17  ;;  %v8127_v30 = vpop.f32.mrb[30].mxu1 }
 0x358   :  { %v9763_v47 = vpop.eup %9762  ;;  %v11970_v37 = vadd.f32 %v2495_v29, %v2491_v46  ;;  %v2496_v16 = vmul.f32 %v9761_v25, %v9751_v35  ;;  %9782 = vpow2.f32 %v6800_v12  ;;  %v1831_v9 = vpop.f32.mrb[31].mxu1 }
 0x359   :  { %v9765_v45 = vpop.eup %9764  ;;  %v11972_v39 = vadd.f32 %v2494_v22, %v2490_v57  ;;  %v2479_v19 = vadd.f32 1.0, %v9763_v47  ;;  %9784 = vpow2.f32 %v6799_v27  ;;  %v14166_v47 = vld [vmem:[#allocation24_spill] sm:$0xff] }
 0x35a   :  { %v9767_v2 = vpop.eup %9766  ;;  %v2493_v43 = vmul.f32 %v9765_v45, %v11561_v32  ;;  %9786 = vtanh.f32 %v11970_v37  ;;  %v9080_v45 = vadd.f32 %v8127_v30, %v14166_v47 }
 0x35b   :  { %14163 = vst [vmem:[#allocation55_spill] sm:$0xff] %v11972_v39  ;;  %v9769_v34 = vpop.eup %9768  ;;  %9788 = vtanh.f32 %v11972_v39  ;;  %v2478_v48 = vadd.f32 1.0, %v9767_v2  ;;  %v8130_v1 = vpop.f32.mrb[32].mxu1 }
 0x35c   :  { %v9771_v29 = vpop.eup %9770  ;;  %v11977_v58 = vadd.f32 %v2497_v18, %v2493_v43  ;;  %9790 = vrcp.f32 %v2479_v19  ;;  %v1905_v35 = vadd.f32 1.0, %v9769_v34  ;;  %v1841_v41 = vpop.f32.mrb[33].mxu1  ;;  %v14167_v43 = vld [vmem:[#allocation25_spill] sm:$0xff] }
 0x35d   :  { %v9773_v22 = vpop.eup %9772  ;;  %v2492_v17 = vmul.f32 %v9771_v29, %v11565_v44  ;;  %9792 = vrcp.f32 %v2478_v48  ;;  %v9081_v34 = vadd.f32 %v1831_v9, %v14167_v43  ;;  %v14169_v9 = vld [vmem:[#allocation28_spill] sm:$0xff] }
 0x35e   :  { %14164 = vst [vmem:[#allocation56_spill] sm:$0xff] %v11977_v58  ;;  %v9775_v59 = vpop.eup %9774  ;;  %9794 = vtanh.f32 %v11977_v58  ;;  %v2481_v32 = vadd.f32 1.0, %v9773_v22 }
 0x35f   :  { %v9777_v46 = vpop.eup %9776  ;;  %v11981_v12 = vadd.f32 %v2496_v16, %v2492_v17  ;;  %v2480_v25 = vadd.f32 1.0, %v9775_v59  ;;  %9796 = vrcp.f32 %v1905_v35  ;;  %v8133_v57 = vpop.f32.mrb[34].mxu1  ;;  %v6801_v47 = vmul.f32 -1.442695, %v9081_v34 }
 0x360   :  { %v9779_v27 = vpop.eup %9778  ;;  %9798 = vrcp.f32 %v2481_v32  ;;  %v1904_v18 = vadd.f32 1.0, %v9777_v46  ;;  %v1851_v19 = vpop.f32.mrb[35].mxu1  ;;  %v6802_v32 = vmul.f32 -1.442695, %v9080_v45  ;;  %v14172_v45 = vld [vmem:[#allocation30_spill] sm:$0xff] }
 0x361   :  { %14165 = vst [vmem:[#allocation57_spill] sm:$0xff] %v11981_v12  ;;  %v9781_v2 = vpop.eup %9780  ;;  %9800 = vtanh.f32 %v11981_v12  ;;  %v1907_v44 = vadd.f32 1.0, %v9779_v27  ;;  %v14168_v27 = vld [vmem:[#allocation26_spill] sm:$0xff]  ;;  %v9084_v58 = vadd.f32 %v8133_v57, %v14172_v45 }
 0x362   :  { %v9783_v48 = vpop.eup %9782  ;;  %9802 = vrcp.f32 %v2480_v25  ;;  %v1906_v29 = vadd.f32 1.0, %v9781_v2  ;;  %v9082_v31 = vadd.f32 %v8130_v1, %v14168_v27  ;;  %v14170_v2 = vld [vmem:[#allocation27_spill] sm:$0xff] }
 0x363   :  { %v9785_v16 = vpop.eup %9784  ;;  %9804 = vrcp.f32 %v1904_v18  ;;  %v1909_v22 = vadd.f32 1.0, %v9783_v48  ;;  %v8136_v35 = vpop.f32.mrb[36].mxu1  ;;  %v9083_v18 = vadd.f32 %v1841_v41, %v14170_v2  ;;  %v14171_v48 = vld [vmem:[#allocation29_spill] sm:$0xff] }
 0x364   :  { %v9787_v17 = vpop.eup %9786  ;;  %9806 = vrcp.f32 %v1907_v44  ;;  %v1908_v59 = vadd.f32 1.0, %v9785_v16  ;;  %v1861_v46 = vpop.f32.mrb[37].mxu1  ;;  %v9086_v43 = vadd.f32 %v8136_v35, %v14169_v9 }
 0x365   :  { %v9789_v30 = vpop.eup %9788  ;;  %9808 = vrcp.f32 %v1906_v29  ;;  %v9087_v60 = vadd.f32 %v1861_v46, %v14171_v48 }
 0x366   :  { %v9791_v33 = vpop.eup %9790  ;;  %9810 = vrcp.f32 %v1909_v22  ;;  %v14173_v22 = vld [vmem:[#allocation31_spill] sm:$0xff] }
 0x367   :  { %v9793_v25 = vpop.eup %9792  ;;  %9812 = vrcp.f32 %v1908_v59  ;;  %v2507_v12 = vmul.f32 %v9791_v33, %v9787_v17  ;;  %v8139_v44 = vpop.f32.mrb[38].mxu1  ;;  %v9085_v1 = vadd.f32 %v1851_v19, %v14173_v22  ;;  %v6804_v59 = vmul.f32 -1.442695, %v9086_v43 }
 0x368   :  { %v9795_v16 = vpop.eup %9794  ;;  %9814 = vpow2.f32 %v6802_v32  ;;  %v2506_v29 = vmul.f32 %v9793_v25, %v9789_v30  ;;  %v1871_v34 = vpop.f32.mrb[39].mxu1  ;;  %v9088_v35 = vadd.f32 %v8139_v44, %v11526_v13  ;;  %v6803_v32 = vmul.f32 -1.442695, %v9087_v60 }
 0x369   :  { %v9797_v39 = vpop.eup %9796  ;;  %9816 = vpow2.f32 %v6801_v47  ;;  %v9089_v33 = vadd.f32 %v1871_v34, %v11539_v7 }
 0x36a   :  { %v9799_v9 = vpop.eup %9798  ;;  %9818 = vtanh.f32 %v9082_v31  ;;  %v11993_v41 = vpack.c.bf16 %v2507_v12, %v2506_v29  ;;  %v6806_v19 = vmul.f32 -1.442695, %v9088_v35 }
 0x36b   :  { %v9801_v17 = vpop.eup %9800  ;;  %9820 = vtanh.f32 %v9083_v18  ;;  %v2509_v46 = vmul.f32 %v9799_v9, %v9795_v16  ;;  %v6805_v12 = vmul.f32 -1.442695, %v9089_v33 }
 0x36c   :  { %v9803_v57 = vpop.eup %9802  ;;  %9822 = vtanh.f32 %v9084_v58  ;;  %8937 = vmatprep.subr.bf16.mxu0 %v11993_v41 }
 0x36d   :  { %v9805_v47 = vpop.eup %9804  ;;  %9824 = vtanh.f32 %v9085_v1  ;;  %8939 = vmatpush3.bf16.msra.mxu0 %v11993_v41  ;;  %v2508_v30 = vmul.f32 %v9803_v57, %v9801_v17 }
 0x36e   :  { %v9807_v31 = vpop.eup %9806  ;;  %9826 = vpow2.f32 %v6804_v59 }
 0x36f   :  { %v9809_v43 = vpop.eup %9808  ;;  %9828 = vpow2.f32 %v6803_v32  ;;  %v11998_v25 = vpack.c.bf16 %v2509_v46, %v2508_v30 }
 0x370   :  { %v9811_v18 = vpop.eup %9810  ;;  %9830 = vpow2.f32 %v6806_v19 }
 0x371   :  { %v9813_v60 = vpop.eup %9812  ;;  %8941 = vmatprep.subr.bf16.mxu0 %v11998_v25  ;;  %9832 = vpow2.f32 %v6805_v12  ;;  %v1957_v44 = vmul.f32 %v9811_v18, %v11533_v11 }
 0x372   :  { %v9815_v58 = vpop.eup %9814  ;;  %8943 = vmatpush3.bf16.msra.mxu0 %v11998_v25  ;;  %v1956_v34 = vmul.f32 %v9813_v60, %v11541_v28 }
 0x373   :  { %v9817_v9 = vpop.eup %9816  ;;  %v1911_v16 = vadd.f32 1.0, %v9815_v58 }
 0x374   :  { %v9819_v29 = vpop.eup %9818  ;;  %v1910_v1 = vadd.f32 1.0, %v9817_v9 }
 0x375   :  { %v9821_v35 = vpop.eup %9820  ;;  %9834 = vrcp.f32 %v1911_v16  ;;  %v1961_v59 = vmul.f32 %v9819_v29, %v9797_v39  ;;  %8329 = vmatmul.mubr.msk.f32.vlgmr.msra.gmra.mrb[48].mxu0 %vm574_vm2, %v11609_v4 }
 0x376   :  { %v9823_v33 = vpop.eup %9822  ;;  %9836 = vrcp.f32 %v1910_v1  ;;  %v1960_v17 = vmul.f32 %v9821_v35, %v9805_v47  ;;  %8331 = vmatprep.mubr.msk.f32.mxu0 %vm574_vm2, %v11621_v14  ;;  %v12180_v1 = vld [vmem:[%s13936_s4 + $0x70] sm:$0xff]  ;;  %v12187_v35 = vld [vmem:[%s13936_s4 + $0x78] sm:$0xff] }
 0x377   :  { %v9825_v32 = vpop.eup %9824  ;;  %v12008_v46 = vadd.f32 %v1961_v59, %v1957_v44  ;;  %v1963_v11 = vmul.f32 %v9823_v33, %v9807_v31  ;;  %v12194_v59 = vld [vmem:[%s13937_s5] sm:$0xff]  ;;  %v30_v33 = vld [vmem:[%s13931_s0 + $0x10] sm:$0xf] }
 0x378   :  { %v9827_v57 = vpop.eup %9826  ;;  %v12010_v19 = vadd.f32 %v1960_v17, %v1956_v34  ;;  %v1962_v28 = vmul.f32 %v9825_v32, %v9809_v43  ;;  %8416 = vmatprep.subr.msk.mxu0 %vm425_vm0, %v30_v33  ;;  %v14179_v17 = vld [vmem:[#allocation39_spill] sm:$0xff]  ;;  %v14180_v32 = vld [vmem:[#allocation40_spill] sm:$0xff] }
 0x379   :  { %v9829_v30 = vpop.eup %9828  ;;  %9838 = vtanh.f32 %v12008_v46  ;;  %v1945_v39 = vadd.f32 1.0, %v9827_v57  ;;  %8332 = vmatmul.mubr.msk.f32.gmra.mrb[50].mxu0 %vm574_vm2, %v11637_v5  ;;  %v14182_v57 = vld [vmem:[#allocation42_spill] sm:$0xff] }
 0x37a   :  { %9840 = vtanh.f32 %v12010_v19  ;;  %v1944_v4 = vadd.f32 1.0, %v9829_v30  ;;  %8334 = vmatprep.mubr.msk.f32.mxu0 %vm574_vm2, %v11649_v56  ;;  %v9831_v14 = vpop.eup %9830  ;;  %8417 = vmatpush3.msk.msra.mxu0 %vm425_vm0, %v30_v33  ;;  %v14184_v30 = vld [vmem:[#allocation44_spill] sm:$0xff] }
 0x37b   :  { %9842 = vrcp.f32 %v1945_v39  ;;  %v9833_v47 = vpop.eup %9832  ;;  %v1947_v31 = vadd.f32 1.0, %v9831_v14  ;;  %v14185_v39 = vld [vmem:[#allocation45_spill] sm:$0xff]  ;;  %v14187_v14 = vld [vmem:[#allocation47_spill] sm:$0xff] }
 0x37c   :  { %9844 = vrcp.f32 %v1944_v4  ;;  %v1946_v43 = vadd.f32 1.0, %v9833_v47  ;;  %v14186_v4 = vld [vmem:[#allocation46_spill] sm:$0xff]  ;;  %v14188_v47 = vld [vmem:[#allocation48_spill] sm:$0xff] }
 0x37d   :  { %8335 = vmatmul.mubr.msk.f32.gmra.mrb[52].mxu0 %vm574_vm2, %v11665_v10  ;;  %9846 = vrcp.f32 %v1947_v31  ;;  %v14189_v31 = vld [vmem:[#allocation49_spill] sm:$0xff] }
 0x37e   :  { %8337 = vmatprep.mubr.msk.f32.mxu0 %vm574_vm2, %v11677_v62  ;;  %9848 = vrcp.f32 %v1946_v43  ;;  %v14191_v43 = vld [vmem:[#allocation51_spill] sm:$0xff] }
 0x37f   :  { %v9835_v12 = vpop.eup %9834 }
 0x380   :  { %v9837_v5 = vpop.eup %9836  ;;  %v1959_v18 = vmul.f32 %v9835_v12, %v11551_v63  ;;  %v14190_v12 = vld [vmem:[#allocation50_spill] sm:$0xff] }
 0x381   :  { %v1958_v60 = vmul.f32 %v9837_v5, %v11563_v38  ;;  %8338 = vmatmul.mubr.msk.f32.gmra.mrb[54].mxu0 %vm574_vm2, %v11693_v51  ;;  %v14192_v5 = vld [vmem:[#allocation52_spill] sm:$0xff] }
 0x382   :  { %v12026_v56 = vadd.f32 %v1963_v11, %v1959_v18  ;;  %8340 = vmatprep.mubr.msk.f32.mxu0 %vm574_vm2, %v11705_v53  ;;  %v14181_v11 = vld [vmem:[#allocation41_spill] sm:$0xff] }
 0x383   :  { %v9839_v10 = vpop.eup %9838  ;;  %v12030_v58 = vadd.f32 %v1962_v28, %v1958_v60  ;;  %v14183_v28 = vld [vmem:[#allocation43_spill] sm:$0xff]  ;;  %v14193_v18 = vld [vmem:[#allocation53_spill] sm:$0xff]  ;;  %v14194_v60 = vld [vmem:[#allocation54_spill] sm:$0xff] }
 0x384   :  { %v9841_v62 = vpop.eup %9840  ;;  %9850 = vtanh.f32 %v12026_v56 }
 0x385   :  { %v9843_v9 = vpop.eup %9842  ;;  %9852 = vtanh.f32 %v12030_v58  ;;  %8341 = vmatmul.mubr.msk.f32.gmra.mrb[56].mxu0 %vm574_vm2, %v11721_v42 }
 0x386   :  { %v9845_v63 = vpop.eup %9844  ;;  %8343 = vmatprep.mubr.msk.f32.mxu0 %vm574_vm2, %v11733_v54  ;;  %v1973_v38 = vmul.f32 %v9843_v9, %v9839_v10 }
 0x387   :  { %v1972_v51 = vmul.f32 %v9845_v63, %v9841_v62  ;;  %v9847_v44 = vpop.eup %9846  ;;  %v14195_v62 = vld [vmem:[#allocation5_spill] sm:$0xff] }
 0x388   :  { %v9849_v16 = vpop.eup %9848 }
 0x389   :  { %8344 = vmatmul.mubr.msk.f32.gmra.mrb[58].mxu0 %vm574_vm2, %v11749_v21  ;;  %v8904_v53 = vpack.c.bf16 %v1973_v38, %v1972_v51  ;;  %v14196_v38 = vld [vmem:[#allocation3_spill] sm:$0xff] }
 0x38a   :  { %8346 = vmatprep.mubr.msk.f32.mxu0 %vm574_vm2, %v11756_v0  ;;  %v12145_v0 = vld [vmem:[%s13936_s4 + $0x48] sm:$0xff] }
 0x38b   :  { %8905 = vmatprep.subr.bf16.mxu1 %v8904_v53 }
 0x38c   :  { %8907 = vmatpush3.bf16.msra.mxu1 %v8904_v53 }
 0x38d   :  { %8347 = vmatmul.mubr.msk.f32.gmra.mrb[60].mxu0 %vm574_vm2, %v11772_v24  ;;  %v12159_v24 = vld [vmem:[%s13936_s4 + $0x58] sm:$0xff] }
 0x38e   :  { %v9851_v42 = vpop.eup %9850  ;;  %8349 = vmatprep.mubr.msk.f32.mxu0 %vm574_vm2, %v11779_v36  ;;  %v12138_v36 = vld [vmem:[%s13936_s4 + $0x40] sm:$0xff] }
 0x38f   :  { %v9853_v54 = vpop.eup %9852  ;;  %v1975_v29 = vmul.f32 %v9851_v42, %v9847_v44  ;;  %v14197_v42 = vld [vmem:[#allocation6_spill] sm:$0xff] }
 0x390   :  { %v1974_v34 = vmul.f32 %v9853_v54, %v9849_v16 }
 0x391   :  { %8350 = vmatmul.mubr.msk.f32.gmra.mrb[62].mxu0 %vm574_vm2, %v11790_v50  ;;  %v12152_v50 = vld [vmem:[%s13936_s4 + $0x50] sm:$0xff] }
 0x392   :  { %v8908_v21 = vpack.c.bf16 %v1975_v29, %v1974_v34  ;;  %8418 = vmatprep.mubr.msk.f32.mxu0 %vm376_vm1, %v11797_v55  ;;  %v12131_v55 = vld [vmem:[%s13936_s4 + $0x38] sm:$0xff]  ;;  %v14198_v34 = vld [vmem:[#allocation7_spill] sm:$0xff] }
 0x394   :  { %8909 = vmatprep.subr.bf16.mxu1 %v8908_v21 }
 0x395   :  { %8911 = vmatpush3.bf16.msra.mxu1 %v8908_v21  ;;  %8419 = vmatmul.mubr.msk.f32.vlgmr.msra.gmra.mrb[64].mxu0 %vm376_vm1, %v14179_v17  ;;  %v14200_v17 = vld [vmem:[#allocation2_spill] sm:$0xff] }
 0x396   :  { %8921 = vmatprep.subr.bf16.mxu1 %v11993_v41  ;;  %8421 = vmatprep.mubr.msk.f32.mxu0 %vm376_vm1, %v14180_v32 }
 0x398   :  { %8149 = vmatmul.mubr.msk.f32.vlgmr.msra.gmra.mrb[40].mxu1 %vm574_vm2, %v11576_v3  ;;  %v14174_v3 = vld [vmem:[#allocation34_spill] sm:$0xff] }
 0x399   :  { %8923 = vmatpush3.bf16.msra.mxu1 %v11993_v41  ;;  %8151 = vmatprep.mubr.msk.f32.mxu1 %vm574_vm2, %v11581_v40  ;;  %v14175_v40 = vld [vmem:[#allocation35_spill] sm:$0xff]  ;;  %v12166_v41 = vld [vmem:[%s13936_s4 + $0x60] sm:$0xff] }
 0x39a   :  { %8925 = vmatprep.subr.bf16.mxu1 %v11998_v25  ;;  %8422 = vmatmul.mubr.msk.f32.gmra.mrb[66].mxu0 %vm376_vm1, %v14181_v11 }
 0x39b   :  { %8424 = vmatprep.mubr.msk.f32.mxu0 %vm376_vm1, %v14182_v57 }
 0x39c   :  { %8152 = vmatmul.mubr.msk.f32.gmra.mrb[42].mxu1 %vm574_vm2, %v11590_v6  ;;  %v14176_v6 = vld [vmem:[#allocation36_spill] sm:$0xff] }
 0x39d   :  { %8927 = vmatpush3.bf16.msra.mxu1 %v11998_v25  ;;  %8154 = vmatprep.mubr.msk.f32.mxu1 %vm574_vm2, %v11595_v8  ;;  %v14177_v8 = vld [vmem:[#allocation37_spill] sm:$0xff]  ;;  %v12173_v25 = vld [vmem:[%s13936_s4 + $0x68] sm:$0xff] }
 0x39e   :  { %8425 = vmatmul.mubr.msk.f32.gmra.mrb[68].mxu0 %vm376_vm1, %v14183_v28 }
 0x39f   :  { %8427 = vmatprep.mubr.msk.f32.mxu0 %vm376_vm1, %v14184_v30  ;;  %v14201_v30 = vld [vmem:[#allocation8_spill] sm:$0xff] }
 0x3a0   :  { %8155 = vmatmul.mubr.msk.f32.gmra.mrb[44].mxu1 %vm574_vm2, %v11604_v15  ;;  %v14178_v15 = vld [vmem:[#allocation38_spill] sm:$0xff] }
 0x3a1   :  { %8157 = vmatprep.mubr.msk.f32.mxu1 %vm574_vm2, %v11616_v20  ;;  %v12089_v20 = vld [vmem:[%s13936_s4 + $0x8] sm:$0xff] }
 0x3a2   :  { %8428 = vmatmul.mubr.msk.f32.gmra.mrb[70].mxu0 %vm376_vm1, %v14185_v39 }
 0x3a3   :  { %8430 = vmatprep.mubr.msk.f32.mxu0 %vm376_vm1, %v14186_v4 }
 0x3a4   :  { %8158 = vmatmul.mubr.msk.f32.gmra.mrb[46].mxu1 %vm574_vm2, %v11632_v61  ;;  %v12096_v61 = vld [vmem:[%s13936_s4 + $0x10] sm:$0xff] }
 0x3a5   :  { %8160 = vmatprep.mubr.msk.f32.mxu1 %vm574_vm2, %v11644_v26  ;;  %v12103_v26 = vld [vmem:[%s13936_s4 + $0x18] sm:$0xff] }
 0x3a6   :  { %8431 = vmatmul.mubr.msk.f32.gmra.mrb[72].mxu0 %vm376_vm1, %v14187_v14  ;;  %v14202_v14 = vld [vmem:[#allocation9_spill] sm:$0xff] }
 0x3a7   :  { %8433 = vmatprep.mubr.msk.f32.mxu0 %vm376_vm1, %v14188_v47 }
 0x3a8   :  { %8161 = vmatmul.mubr.msk.f32.gmra.mrb[48].mxu1 %vm574_vm2, %v11660_v52  ;;  %v12110_v52 = vld [vmem:[%s13936_s4 + $0x20] sm:$0xff] }
 0x3a9   :  { %8163 = vmatprep.mubr.msk.f32.mxu1 %vm574_vm2, %v11672_v23  ;;  %v12117_v23 = vld [vmem:[%s13936_s4 + $0x28] sm:$0xff] }
 0x3aa   :  { %8434 = vmatmul.mubr.msk.f32.gmra.mrb[74].mxu0 %vm376_vm1, %v14189_v31 }
 0x3ab   :  { %8436 = vmatprep.mubr.msk.f32.mxu0 %vm376_vm1, %v14190_v12 }
 0x3ac   :  { %8164 = vmatmul.mubr.msk.f32.gmra.mrb[50].mxu1 %vm574_vm2, %v11688_v49  ;;  %v12124_v49 = vld [vmem:[%s13936_s4 + $0x30] sm:$0xff] }
 0x3ad   :  { %8166 = vmatprep.mubr.msk.f32.mxu1 %vm574_vm2, %v14174_v3 }
 0x3ae   :  { %8437 = vmatmul.mubr.msk.f32.gmra.mrb[76].mxu0 %vm376_vm1, %v14191_v43 }
 0x3af   :  { %8439 = vmatprep.mubr.msk.f32.mxu0 %vm376_vm1, %v14192_v5 }
 0x3b0   :  { %8167 = vmatmul.mubr.msk.f32.gmra.mrb[52].mxu1 %vm574_vm2, %v14175_v40 }
 0x3b1   :  { %8169 = vmatprep.mubr.msk.f32.mxu1 %vm574_vm2, %v14176_v6 }
 0x3b2   :  { %8440 = vmatmul.mubr.msk.f32.gmra.mrb[78].mxu0 %vm376_vm1, %v14193_v18 }
 0x3b3   :  { %8450 = vmatprep.mubr.msk.f32.mxu0 %vm574_vm2, %v14194_v60 }
 0x3b4   :  { %8170 = vmatmul.mubr.msk.f32.gmra.mrb[54].mxu1 %vm574_vm2, %v14177_v8  ;;  %v14199_v8 = vld [vmem:[#allocation4_spill] sm:$0xff] }
 0x3b5   :  { %8238 = vmatprep.mubr.msk.f32.mxu1 %vm574_vm2, %v14178_v15 }
 0x3b8   :  { %8239 = vmatmul.mubr.msk.f32.vlgmr.msra.gmra.mrb[40].mxu1 %vm574_vm2, %v12089_v20 }
 0x3b9   :  { %8241 = vmatprep.mubr.msk.f32.mxu1 %vm574_vm2, %v12096_v61 }
 0x3bc   :  { %8242 = vmatmul.mubr.msk.f32.gmra.mrb[42].mxu1 %vm574_vm2, %v12103_v26 }
 0x3bd   :  { %8244 = vmatprep.mubr.msk.f32.mxu1 %vm574_vm2, %v12110_v52 }
 0x3c0   :  { %8245 = vmatmul.mubr.msk.f32.gmra.mrb[44].mxu1 %vm574_vm2, %v12117_v23 }
 0x3c1   :  { %8247 = vmatprep.mubr.msk.f32.mxu1 %vm574_vm2, %v12124_v49 }
 0x3c4   :  { %8248 = vmatmul.mubr.msk.f32.gmra.mrb[46].mxu1 %vm574_vm2, %v12131_v55 }
 0x3c5   :  { %8250 = vmatprep.mubr.msk.f32.mxu1 %vm574_vm2, %v12138_v36 }
 0x3c8   :  { %8251 = vmatmul.mubr.msk.f32.gmra.mrb[48].mxu1 %vm574_vm2, %v12145_v0 }
 0x3c9   :  { %8253 = vmatprep.mubr.msk.f32.mxu1 %vm574_vm2, %v12152_v50 }
 0x3cc   :  { %8254 = vmatmul.mubr.msk.f32.gmra.mrb[50].mxu1 %vm574_vm2, %v12159_v24 }
 0x3cd   :  { %8256 = vmatprep.mubr.msk.f32.mxu1 %vm574_vm2, %v12166_v41 }
 0x3d0   :  { %8257 = vmatmul.mubr.msk.f32.gmra.mrb[52].mxu1 %vm574_vm2, %v12173_v25 }
 0x3d1   :  { %8259 = vmatprep.mubr.msk.f32.mxu1 %vm574_vm2, %v12180_v1 }
 0x3d4   :  { %8260 = vmatmul.mubr.msk.f32.gmra.mrb[54].mxu1 %vm574_vm2, %v12187_v35 }
 0x3d5   :  { %8270 = vmatprep.mubr.msk.f32.mxu1 %vm574_vm2, %v12194_v59 }
 0x448   :  { %v8330_v10 = vpop.f32.mrb[48].mxu0 }
 0x449   :  { %v9154_v9 = vadd.f32 %v8330_v10, %v14195_v62  ;;  %v3110_v63 = vpop.f32.mrb[49].mxu0 }
 0x44a   :  { %v9155_v51 = vadd.f32 %v3110_v63, %v14196_v38 }
 0x44b   :  { %v6946_v53 = vmul.f32 -1.442695, %v9154_v9  ;;  %v14203_v9 = vld [vmem:[#allocation10_spill] sm:$0xff] }
 0x44c   :  { %v6945_v44 = vmul.f32 -1.442695, %v9155_v51  ;;  %v8333_v16 = vpop.f32.mrb[50].mxu0 }
 0x44d   :  { %9854 = vpow2.f32 %v6946_v53  ;;  %v9156_v54 = vadd.f32 %v8333_v16, %v14197_v42  ;;  %v3120_v29 = vpop.f32.mrb[51].mxu0 }
 0x44e   :  { %9856 = vpow2.f32 %v6945_v44  ;;  %v9157_v21 = vadd.f32 %v3120_v29, %v14198_v34 }
 0x44f   :  { %v6948_v3 = vmul.f32 -1.442695, %v9156_v54  ;;  %v14204_v54 = vld [vmem:[#allocation11_spill] sm:$0xff] }
 0x450   :  { %v6947_v40 = vmul.f32 -1.442695, %v9157_v21  ;;  %v8336_v6 = vpop.f32.mrb[52].mxu0 }
 0x451   :  { %9858 = vpow2.f32 %v6948_v3  ;;  %v9158_v15 = vadd.f32 %v8336_v6, %v14199_v8  ;;  %v3130_v33 = vpop.f32.mrb[53].mxu0 }
 0x452   :  { %9860 = vpow2.f32 %v6947_v40  ;;  %v9159_v32 = vadd.f32 %v3130_v33, %v14200_v17  ;;  %v14205_v40 = vld [vmem:[#allocation14_spill] sm:$0xff] }
 0x453   :  { %v6950_v11 = vmul.f32 -1.442695, %v9158_v15 }
 0x454   :  { %v6949_v57 = vmul.f32 -1.442695, %v9159_v32  ;;  %v8339_v28 = vpop.f32.mrb[54].mxu0 }
 0x455   :  { %9862 = vpow2.f32 %v6950_v11  ;;  %v9160_v39 = vadd.f32 %v8339_v28, %v14201_v30  ;;  %v3140_v4 = vpop.f32.mrb[55].mxu0 }
 0x456   :  { %9864 = vpow2.f32 %v6949_v57  ;;  %v9161_v47 = vadd.f32 %v3140_v4, %v14202_v14  ;;  %v14206_v57 = vld [vmem:[#allocation15_spill] sm:$0xff] }
 0x457   :  { %v9855_v31 = vpop.eup %9854  ;;  %v6952_v12 = vmul.f32 -1.442695, %v9160_v39 }
 0x458   :  { %v9857_v43 = vpop.eup %9856  ;;  %v3214_v5 = vadd.f32 1.0, %v9855_v31  ;;  %v6951_v18 = vmul.f32 -1.442695, %v9161_v47  ;;  %v8342_v60 = vpop.f32.mrb[56].mxu0  ;;  %v14207_v47 = vld [vmem:[#allocation12_spill] sm:$0xff] }
 0x459   :  { %v3213_v10 = vadd.f32 1.0, %v9857_v43  ;;  %9866 = vpow2.f32 %v6952_v12  ;;  %v9162_v63 = vadd.f32 %v8342_v60, %v14203_v9  ;;  %v3150_v51 = vpop.f32.mrb[57].mxu0  ;;  %v14208_v43 = vld [vmem:[#allocation13_spill] sm:$0xff] }
 0x45a   :  { %9868 = vrcp.f32 %v3214_v5  ;;  %v9163_v29 = vadd.f32 %v3150_v51, %v14204_v54 }
 0x45b   :  { %v9859_v53 = vpop.eup %9858  ;;  %9870 = vrcp.f32 %v3213_v10 }
 0x45c   :  { %v9861_v44 = vpop.eup %9860  ;;  %v3216_v16 = vadd.f32 1.0, %v9859_v53  ;;  %9872 = vpow2.f32 %v6951_v18  ;;  %v8345_v21 = vpop.f32.mrb[58].mxu0 }
 0x45d   :  { %v3215_v3 = vadd.f32 1.0, %v9861_v44  ;;  %9874 = vtanh.f32 %v9162_v63  ;;  %v9164_v6 = vadd.f32 %v8345_v21, %v14205_v40  ;;  %v3160_v15 = vpop.f32.mrb[59].mxu0 }
 0x45e   :  { %9876 = vrcp.f32 %v3216_v16  ;;  %v9165_v28 = vadd.f32 %v3160_v15, %v14206_v57  ;;  %v14209_v16 = vld [vmem:[#allocation16_spill] sm:$0xff] }
 0x45f   :  { %v9863_v33 = vpop.eup %9862  ;;  %9878 = vrcp.f32 %v3215_v3 }
 0x460   :  { %v9865_v32 = vpop.eup %9864  ;;  %v3218_v11 = vadd.f32 1.0, %v9863_v33  ;;  %9880 = vtanh.f32 %v9163_v29  ;;  %v8348_v39 = vpop.f32.mrb[60].mxu0 }
 0x461   :  { %v3217_v4 = vadd.f32 1.0, %v9865_v32  ;;  %9882 = vtanh.f32 %v9164_v6  ;;  %v9166_v31 = vadd.f32 %v8348_v39, %v14207_v47  ;;  %v3170_v12 = vpop.f32.mrb[61].mxu0  ;;  %v14210_v6 = vld [vmem:[#allocation17_spill] sm:$0xff] }
 0x462   :  { %9884 = vrcp.f32 %v3218_v11  ;;  %v9167_v5 = vadd.f32 %v3170_v12, %v14208_v43  ;;  %v14212_v43 = vld [vmem:[#allocation56_spill] sm:$0xff] }
 0x463   :  { %v9867_v18 = vpop.eup %9866  ;;  %9886 = vrcp.f32 %v3217_v4  ;;  %v6954_v60 = vmul.f32 -1.442695, %v9166_v31 }
 0x464   :  { %v9869_v10 = vpop.eup %9868  ;;  %v3220_v63 = vadd.f32 1.0, %v9867_v18  ;;  %9888 = vtanh.f32 %v9165_v28  ;;  %v6953_v51 = vmul.f32 -1.442695, %v9167_v5  ;;  %v8351_v53 = vpop.f32.mrb[62].mxu0 }
 0x465   :  { %v9871_v44 = vpop.eup %9870  ;;  %9890 = vpow2.f32 %v6954_v60  ;;  %v9168_v29 = vadd.f32 %v8351_v53, %v14209_v16  ;;  %v3180_v21 = vpop.f32.mrb[63].mxu0 }
 0x466   :  { %v9873_v3 = vpop.eup %9872  ;;  %9892 = vrcp.f32 %v3220_v63  ;;  %v9169_v15 = vadd.f32 %v3180_v21, %v14210_v6  ;;  %v14211_v6 = vld [vmem:[#allocation55_spill] sm:$0xff] }
 0x467   :  { %v9875_v33 = vpop.eup %9874  ;;  %v3219_v32 = vadd.f32 1.0, %v9873_v3  ;;  %9894 = vpow2.f32 %v6953_v51  ;;  %v6956_v11 = vmul.f32 -1.442695, %v9168_v29 }
 0x468   :  { %v9877_v39 = vpop.eup %9876  ;;  %v3270_v4 = vmul.f32 %v9875_v33, %v9869_v10  ;;  %v6955_v31 = vmul.f32 -1.442695, %v9169_v15 }
 0x469   :  { %v9879_v12 = vpop.eup %9878  ;;  %9896 = vrcp.f32 %v3219_v32 }
 0x46a   :  { %v9881_v28 = vpop.eup %9880  ;;  %9898 = vpow2.f32 %v6956_v11 }
 0x46b   :  { %v9883_v5 = vpop.eup %9882  ;;  %v3269_v18 = vmul.f32 %v9881_v28, %v9871_v44  ;;  %9900 = vpow2.f32 %v6955_v31 }
 0x46c   :  { %v9885_v60 = vpop.eup %9884  ;;  %v3272_v53 = vmul.f32 %v9883_v5, %v9877_v39 }
 0x46d   :  { %v9887_v16 = vpop.eup %9886  ;;  %v3266_v63 = vmul.f32 %v9885_v60, %v11970_v37 }
 0x46e   :  { %v9889_v21 = vpop.eup %9888  ;;  %v3265_v3 = vmul.f32 %v9887_v16, %v14211_v6  ;;  %v14213_v6 = vld [vmem:[#allocation57_spill] sm:$0xff] }
 0x46f   :  { %v9891_v51 = vpop.eup %9890  ;;  %v12253_v29 = vadd.f32 %v3270_v4, %v3266_v63  ;;  %v3271_v10 = vmul.f32 %v9889_v21, %v9879_v12 }
 0x470   :  { %v9893_v15 = vpop.eup %9892  ;;  %v12255_v33 = vadd.f32 %v3269_v18, %v3265_v3  ;;  %v3254_v32 = vadd.f32 1.0, %v9891_v51 }
 0x471   :  { %v9895_v11 = vpop.eup %9894  ;;  %v3268_v44 = vmul.f32 %v9893_v15, %v14212_v43  ;;  %9902 = vtanh.f32 %v12253_v29 }
 0x472   :  { %9904 = vtanh.f32 %v12255_v33  ;;  %v3253_v39 = vadd.f32 1.0, %v9895_v11 }
 0x473   :  { %v9897_v37 = vpop.eup %9896  ;;  %v12260_v31 = vadd.f32 %v3272_v53, %v3268_v44  ;;  %9906 = vrcp.f32 %v3254_v32 }
 0x474   :  { %v9899_v16 = vpop.eup %9898  ;;  %v3267_v4 = vmul.f32 %v9897_v37, %v14213_v6  ;;  %9908 = vrcp.f32 %v3253_v39  ;;  %v14214_v6 = vld [vmem:[#allocation18_spill] sm:$0xff] }
 0x475   :  { %v9901_v12 = vpop.eup %9900  ;;  %9910 = vtanh.f32 %v12260_v31  ;;  %v3256_v28 = vadd.f32 1.0, %v9899_v16 }
 0x476   :  { %v12264_v5 = vadd.f32 %v3271_v10, %v3267_v4  ;;  %v3255_v43 = vadd.f32 1.0, %v9901_v12 }
 0x477   :  { %9912 = vrcp.f32 %v3256_v28  ;;  %v12279_v28 = vld [vmem:[%s13934_s2 + $0x8] sm:$0xff] }
 0x478   :  { %9914 = vtanh.f32 %v12264_v5 }
 0x479   :  { %9916 = vrcp.f32 %v3255_v43  ;;  %v14215_v43 = vld [vmem:[#allocation19_spill] sm:$0xff] }
 0x47b   :  { %v9903_v18 = vpop.eup %9902 }
 0x47c   :  { %v9905_v60 = vpop.eup %9904 }
 0x47d   :  { %v9907_v53 = vpop.eup %9906 }
 0x47e   :  { %v9909_v63 = vpop.eup %9908  ;;  %v3282_v21 = vmul.f32 %v9907_v53, %v9903_v18 }
 0x47f   :  { %v9911_v3 = vpop.eup %9910  ;;  %v3281_v51 = vmul.f32 %v9909_v63, %v9905_v60  ;;  %v12287_v60 = vld [vmem:[%s13934_s2 + $0x10] sm:$0xff] }
 0x481   :  { %v9913_v15 = vpop.eup %9912  ;;  %v12267_v32 = vpack.c.bf16 %v3282_v21, %v3281_v51 }
 0x482   :  { %v9915_v11 = vpop.eup %9914  ;;  %v3284_v44 = vmul.f32 %v9913_v15, %v9911_v3  ;;  %v14216_v3 = vld [vmem:[#allocation22_spill] sm:$0xff] }
 0x483   :  { %v9917_v39 = vpop.eup %9916  ;;  %8961 = vmatprep.subr.bf16.mxu0 %v12267_v32 }
 0x484   :  { %8963 = vmatpush3.bf16.msra.mxu0 %v12267_v32  ;;  %v3283_v10 = vmul.f32 %v9917_v39, %v9915_v11  ;;  %v12295_v11 = vld [vmem:[%s13934_s2 + $0x18] sm:$0xff] }
 0x486   :  { %v12271_v37 = vpack.c.bf16 %v3284_v44, %v3283_v10  ;;  %v14217_v44 = vld [vmem:[#allocation23_spill] sm:$0xff]  ;;  %v12303_v10 = vld [vmem:[%s13934_s2 + $0x20] sm:$0xff] }
 0x488   :  { %8965 = vmatprep.subr.bf16.mxu0 %v12271_v37 }
 0x489   :  { %8967 = vmatpush3.bf16.msra.mxu0 %v12271_v37 }
 0x48b   :  { %v8240_v16 = vpop.f32.mrb[40].mxu1 }
 0x48c   :  { %v9106_v4 = vadd.f32 %v8240_v16, %v14214_v6  ;;  %v2576_v12 = vpop.f32.mrb[41].mxu1  ;;  %8451 = vmatmul.mubr.msk.f32.vlgmr.msra.gmra.mrb[64].mxu0 %vm574_vm2, %v12279_v28 }
 0x48d   :  { %v9107_v18 = vadd.f32 %v2576_v12, %v14215_v43  ;;  %8453 = vmatprep.mubr.msk.f32.mxu0 %vm574_vm2, %v12287_v60 }
 0x48e   :  { %v6885_v53 = vmul.f32 -1.442695, %v9106_v4 }
 0x48f   :  { %v6884_v63 = vmul.f32 -1.442695, %v9107_v18  ;;  %v8243_v21 = vpop.f32.mrb[42].mxu1  ;;  %v14218_v18 = vld [vmem:[#allocation20_spill] sm:$0xff] }
 0x490   :  { %9918 = vpow2.f32 %v6885_v53  ;;  %v9108_v51 = vadd.f32 %v8243_v21, %v14216_v3  ;;  %v2586_v15 = vpop.f32.mrb[43].mxu1  ;;  %8454 = vmatmul.mubr.msk.f32.gmra.mrb[66].mxu0 %vm574_vm2, %v12295_v11 }
 0x491   :  { %9920 = vpow2.f32 %v6884_v63  ;;  %v9109_v39 = vadd.f32 %v2586_v15, %v14217_v44  ;;  %8456 = vmatprep.mubr.msk.f32.mxu0 %vm574_vm2, %v12303_v10  ;;  %v12311_v63 = vld [vmem:[%s13934_s2 + $0x28] sm:$0xff]  ;;  %v14220_v15 = vld [vmem:[#allocation21_spill] sm:$0xff] }
 0x492   :  { %v6887_v16 = vmul.f32 -1.442695, %v9108_v51  ;;  %14219 = vst [vmem:[#allocation34_spill] sm:$0xff] %v12311_v63  ;;  %v12319_v51 = vld [vmem:[%s13934_s2 + $0x30] sm:$0xff] }
 0x493   :  { %v6886_v4 = vmul.f32 -1.442695, %v9109_v39  ;;  %v8246_v12 = vpop.f32.mrb[44].mxu1  ;;  %14221 = vst [vmem:[#allocation35_spill] sm:$0xff] %v12319_v51 }
 0x494   :  { %9922 = vpow2.f32 %v6887_v16  ;;  %v9110_v53 = vadd.f32 %v8246_v12, %v14218_v18  ;;  %v2596_v21 = vpop.f32.mrb[45].mxu1  ;;  %8457 = vmatmul.mubr.msk.f32.gmra.mrb[68].mxu0 %vm574_vm2, %v12311_v63  ;;  %v14222_v18 = vld [vmem:[#allocation24_spill] sm:$0xff] }
 0x495   :  { %9924 = vpow2.f32 %v6886_v4  ;;  %v9111_v44 = vadd.f32 %v2596_v21, %v14220_v15  ;;  %8459 = vmatprep.mubr.msk.f32.mxu0 %vm574_vm2, %v12319_v51  ;;  %v12327_v4 = vld [vmem:[%s13934_s2 + $0x38] sm:$0xff] }
 0x496   :  { %v6889_v39 = vmul.f32 -1.442695, %v9110_v53  ;;  %14223 = vst [vmem:[#allocation36_spill] sm:$0xff] %v12327_v4  ;;  %v14224_v21 = vld [vmem:[#allocation25_spill] sm:$0xff] }
 0x497   :  { %v6888_v16 = vmul.f32 -1.442695, %v9111_v44  ;;  %v8249_v12 = vpop.f32.mrb[46].mxu1  ;;  %v12335_v44 = vld [vmem:[%s13934_s2 + $0x40] sm:$0xff] }
 0x498   :  { %9926 = vpow2.f32 %v6889_v39  ;;  %v9112_v3 = vadd.f32 %v8249_v12, %v14222_v18  ;;  %v2606_v43 = vpop.f32.mrb[47].mxu1  ;;  %8460 = vmatmul.mubr.msk.f32.gmra.mrb[70].mxu0 %vm574_vm2, %v12327_v4  ;;  %14225 = vst [vmem:[#allocation37_spill] sm:$0xff] %v12335_v44 }
 0x499   :  { %9928 = vpow2.f32 %v6888_v16  ;;  %v9113_v15 = vadd.f32 %v2606_v43, %v14224_v21  ;;  %8462 = vmatprep.mubr.msk.f32.mxu0 %vm574_vm2, %v12335_v44  ;;  %v12343_v43 = vld [vmem:[%s13934_s2 + $0x48] sm:$0xff] }
 0x49a   :  { %v9919_v53 = vpop.eup %9918  ;;  %v6891_v39 = vmul.f32 -1.442695, %v9112_v3  ;;  %14226 = vst [vmem:[#allocation38_spill] sm:$0xff] %v12343_v43  ;;  %v12350_v3 = vld [vmem:[%s13934_s2 + $0x50] sm:$0xff] }
 0x49b   :  { %v9921_v12 = vpop.eup %9920  ;;  %v2680_v18 = vadd.f32 1.0, %v9919_v53  ;;  %v6890_v6 = vmul.f32 -1.442695, %v9113_v15  ;;  %v8252_v51 = vpop.f32.mrb[48].mxu1  ;;  %14227 = vst [vmem:[#allocation39_spill] sm:$0xff] %v12350_v3 }
 0x49c   :  { %v2679_v63 = vadd.f32 1.0, %v9921_v12  ;;  %9930 = vpow2.f32 %v6891_v39  ;;  %v9114_v16 = vadd.f32 %v8252_v51, %v14168_v27  ;;  %v2616_v4 = vpop.f32.mrb[49].mxu1  ;;  %8463 = vmatmul.mubr.msk.f32.gmra.mrb[72].mxu0 %vm574_vm2, %v12343_v43  ;;  %v12359_v43 = vld [vmem:[%s13934_s2 + $0x58] sm:$0xff] }
 0x49d   :  { %9932 = vrcp.f32 %v2680_v18  ;;  %8465 = vmatprep.mubr.msk.f32.mxu0 %vm574_vm2, %v12350_v3  ;;  %v9115_v39 = vadd.f32 %v2616_v4, %v14170_v2  ;;  %14228 = vst [vmem:[#allocation40_spill] sm:$0xff] %v12359_v43 }
 0x49e   :  { %v9923_v15 = vpop.eup %9922  ;;  %9934 = vrcp.f32 %v2679_v63 }
 0x49f   :  { %v9925_v51 = vpop.eup %9924  ;;  %v2682_v53 = vadd.f32 1.0, %v9923_v15  ;;  %9936 = vpow2.f32 %v6890_v6  ;;  %v8255_v12 = vpop.f32.mrb[50].mxu1  ;;  %v12366_v6 = vld [vmem:[%s13934_s2 + $0x60] sm:$0xff] }
 0x4a0   :  { %v2681_v27 = vadd.f32 1.0, %v9925_v51  ;;  %9938 = vtanh.f32 %v9114_v16  ;;  %v9116_v18 = vadd.f32 %v8255_v12, %v14172_v45  ;;  %v2626_v21 = vpop.f32.mrb[51].mxu1  ;;  %8466 = vmatmul.mubr.msk.f32.gmra.mrb[74].mxu0 %vm574_vm2, %v12359_v43  ;;  %14229 = vst [vmem:[#allocation41_spill] sm:$0xff] %v12366_v6  ;;  %v14230_v45 = vld [vmem:[#allocation28_spill] sm:$0xff]  ;;  %v12375_v43 = vld [vmem:[%s13934_s2 + $0x68] sm:$0xff] }
 0x4a1   :  { %9940 = vrcp.f32 %v2682_v53  ;;  %8468 = vmatprep.mubr.msk.f32.mxu0 %vm574_vm2, %v12366_v6  ;;  %v9117_v15 = vadd.f32 %v2626_v21, %v14173_v22  ;;  %14231 = vst [vmem:[#allocation42_spill] sm:$0xff] %v12375_v43  ;;  %v12383_v21 = vld [vmem:[%s13934_s2 + $0x70] sm:$0xff] }
 0x4a2   :  { %v9927_v63 = vpop.eup %9926  ;;  %9942 = vrcp.f32 %v2681_v27  ;;  %14232 = vst [vmem:[#allocation43_spill] sm:$0xff] %v12383_v21 }
 0x4a3   :  { %v9929_v4 = vpop.eup %9928  ;;  %v2684_v16 = vadd.f32 1.0, %v9927_v63  ;;  %9944 = vtanh.f32 %v9115_v39  ;;  %v8258_v51 = vpop.f32.mrb[52].mxu1 }
 0x4a4   :  { %v2683_v12 = vadd.f32 1.0, %v9929_v4  ;;  %9946 = vtanh.f32 %v9116_v18  ;;  %v9118_v53 = vadd.f32 %v8258_v51, %v14230_v45  ;;  %v2636_v2 = vpop.f32.mrb[53].mxu1  ;;  %8469 = vmatmul.mubr.msk.f32.gmra.mrb[76].mxu0 %vm574_vm2, %v12375_v43 }
 0x4a5   :  { %9948 = vrcp.f32 %v2684_v16  ;;  %v9119_v27 = vadd.f32 %v2636_v2, %v14171_v48  ;;  %8471 = vmatprep.mubr.msk.f32.mxu0 %vm574_vm2, %v12383_v21  ;;  %v12391_v48 = vld [vmem:[%s13934_s2 + $0x78] sm:$0xff] }
 0x4a6   :  { %v9931_v39 = vpop.eup %9930  ;;  %9950 = vrcp.f32 %v2683_v12  ;;  %v6893_v18 = vmul.f32 -1.442695, %v9118_v53  ;;  %14233 = vst [vmem:[#allocation44_spill] sm:$0xff] %v12391_v48 }
 0x4a7   :  { %v9933_v63 = vpop.eup %9932  ;;  %v2686_v4 = vadd.f32 1.0, %v9931_v39  ;;  %9952 = vtanh.f32 %v9117_v15  ;;  %v6892_v51 = vmul.f32 -1.442695, %v9119_v27  ;;  %v8261_v45 = vpop.f32.mrb[54].mxu1  ;;  %v12399_v15 = vld [vmem:[%s13932_s1] sm:$0xff] }
 0x4a8   :  { %v9935_v22 = vpop.eup %9934  ;;  %9954 = vpow2.f32 %v6893_v18  ;;  %v9120_v2 = vadd.f32 %v8261_v45, %v11526_v13  ;;  %v2646_v16 = vpop.f32.mrb[55].mxu1  ;;  %8472 = vmatmul.mubr.msk.f32.gmra.mrb[78].mxu0 %vm574_vm2, %v12391_v48  ;;  %14234 = vst [vmem:[#allocation45_spill] sm:$0xff] %v12399_v15 }
 0x4a9   :  { %v9937_v12 = vpop.eup %9936  ;;  %9956 = vrcp.f32 %v2686_v4  ;;  %v9121_v53 = vadd.f32 %v2646_v16, %v11539_v7  ;;  %8540 = vmatprep.mubr.msk.f32.mxu0 %vm376_vm1, %v12399_v15 }
 0x4aa   :  { %v9939_v45 = vpop.eup %9938  ;;  %v2685_v27 = vadd.f32 1.0, %v9937_v12  ;;  %9958 = vpow2.f32 %v6892_v51  ;;  %v6895_v39 = vmul.f32 -1.442695, %v9120_v2 }
 0x4ab   :  { %v9941_v18 = vpop.eup %9940  ;;  %v2736_v13 = vmul.f32 %v9939_v45, %v9933_v63  ;;  %v6894_v21 = vmul.f32 -1.442695, %v9121_v53 }
 0x4ac   :  { %v9943_v48 = vpop.eup %9942  ;;  %9960 = vrcp.f32 %v2685_v27 }
 0x4ad   :  { %v9945_v4 = vpop.eup %9944  ;;  %9962 = vpow2.f32 %v6895_v39 }
 0x4ae   :  { %v9947_v16 = vpop.eup %9946  ;;  %v2735_v7 = vmul.f32 %v9945_v4, %v9935_v22  ;;  %9964 = vpow2.f32 %v6894_v21 }
 0x4af   :  { %v9949_v43 = vpop.eup %9948  ;;  %v2738_v6 = vmul.f32 %v9947_v16, %v9941_v18 }
 0x4b0   :  { %v9951_v3 = vpop.eup %9950  ;;  %v2732_v44 = vmul.f32 %v9949_v43, %v12008_v46 }
 0x4b1   :  { %v9953_v15 = vpop.eup %9952  ;;  %v2731_v12 = vmul.f32 %v9951_v3, %v12010_v19 }
 0x4b2   :  { %v9955_v51 = vpop.eup %9954  ;;  %v12405_v2 = vadd.f32 %v2736_v13, %v2732_v44  ;;  %v2737_v63 = vmul.f32 %v9953_v15, %v9943_v48 }
 0x4b3   :  { %v9957_v53 = vpop.eup %9956  ;;  %v12407_v45 = vadd.f32 %v2735_v7, %v2731_v12  ;;  %v2720_v27 = vadd.f32 1.0, %v9955_v51 }
 0x4b4   :  { %v9959_v39 = vpop.eup %9958  ;;  %v2734_v22 = vmul.f32 %v9957_v53, %v12026_v56  ;;  %9966 = vtanh.f32 %v12405_v2 }
 0x4b5   :  { %9968 = vtanh.f32 %v12407_v45  ;;  %v2719_v21 = vadd.f32 1.0, %v9959_v39 }
 0x4b6   :  { %v9961_v46 = vpop.eup %9960  ;;  %v12412_v43 = vadd.f32 %v2738_v6, %v2734_v22  ;;  %9970 = vrcp.f32 %v2720_v27 }
 0x4b7   :  { %v9963_v19 = vpop.eup %9962  ;;  %v2733_v13 = vmul.f32 %v9961_v46, %v12030_v58  ;;  %9972 = vrcp.f32 %v2719_v21  ;;  %v12423_v21 = vld [vmem:[%s13937_s5 + $0x8] sm:$0xff]  ;;  %v12431_v46 = vld [vmem:[%s13937_s5 + $0x10] sm:$0xff] }
 0x4b8   :  { %v9965_v48 = vpop.eup %9964  ;;  %9974 = vtanh.f32 %v12412_v43  ;;  %v2722_v7 = vadd.f32 1.0, %v9963_v19  ;;  %v12439_v19 = vld [vmem:[%s13937_s5 + $0x18] sm:$0xff] }
 0x4b9   :  { %v12416_v44 = vadd.f32 %v2737_v63, %v2733_v13  ;;  %v2721_v56 = vadd.f32 1.0, %v9965_v48  ;;  %v12454_v13 = vld [vmem:[%s13937_s5 + $0x28] sm:$0xff]  ;;  %v12468_v48 = vld [vmem:[%s13937_s5 + $0x38] sm:$0xff] }
 0x4ba   :  { %9976 = vrcp.f32 %v2722_v7  ;;  %v12475_v7 = vld [vmem:[%s13937_s5 + $0x40] sm:$0xff] }
 0x4bb   :  { %9978 = vtanh.f32 %v12416_v44 }
 0x4bc   :  { %9980 = vrcp.f32 %v2721_v56  ;;  %v12482_v56 = vld [vmem:[%s13937_s5 + $0x48] sm:$0xff] }
 0x4be   :  { %v9967_v3 = vpop.eup %9966 }
 0x4bf   :  { %v9969_v15 = vpop.eup %9968 }
 0x4c0   :  { %v9971_v6 = vpop.eup %9970 }
 0x4c1   :  { %v9973_v18 = vpop.eup %9972  ;;  %v2748_v4 = vmul.f32 %v9971_v6, %v9967_v3  ;;  %v12489_v3 = vld [vmem:[%s13937_s5 + $0x50] sm:$0xff]  ;;  %v12503_v6 = vld [vmem:[%s13937_s5 + $0x60] sm:$0xff] }
 0x4c2   :  { %v9975_v16 = vpop.eup %9974  ;;  %v2747_v12 = vmul.f32 %v9973_v18, %v9969_v15  ;;  %v12496_v15 = vld [vmem:[%s13937_s5 + $0x58] sm:$0xff]  ;;  %v12510_v18 = vld [vmem:[%s13937_s5 + $0x68] sm:$0xff] }
 0x4c4   :  { %v9977_v58 = vpop.eup %9976  ;;  %v8928_v51 = vpack.c.bf16 %v2748_v4, %v2747_v12  ;;  %v12517_v4 = vld [vmem:[%s13937_s5 + $0x70] sm:$0xff]  ;;  %v12531_v12 = vld [vmem:[%s13936_s4] sm:$0xff] }
 0x4c5   :  { %v9979_v53 = vpop.eup %9978  ;;  %v2750_v27 = vmul.f32 %v9977_v58, %v9975_v16  ;;  %v12524_v16 = vld [vmem:[%s13937_s5 + $0x78] sm:$0xff]  ;;  %v12680_v58 = vld [vmem:[%s13934_s2] sm:$0xff] }
 0x4c6   :  { %v9981_v39 = vpop.eup %9980  ;;  %8929 = vmatprep.subr.bf16.mxu1 %v8928_v51  ;;  %14241 = vst [vmem:[#allocation52_spill] sm:$0xff] %v12680_v58 }
 0x4c7   :  { %8931 = vmatpush3.bf16.msra.mxu1 %v8928_v51  ;;  %v2749_v63 = vmul.f32 %v9981_v39, %v9979_v53 }
 0x4c9   :  { %v8932_v22 = vpack.c.bf16 %v2750_v27, %v2749_v63 }
 0x4cb   :  { %8933 = vmatprep.subr.bf16.mxu1 %v8932_v22 }
 0x4cc   :  { %8935 = vmatpush3.bf16.msra.mxu1 %v8932_v22 }
 0x4cd   :  { %8945 = vmatprep.subr.bf16.mxu1 %v12267_v32 }
 0x4cf   :  { %8271 = vmatmul.mubr.msk.f32.vlgmr.msra.gmra.mrb[56].mxu1 %vm574_vm2, %v12423_v21 }
 0x4d0   :  { %8947 = vmatpush3.bf16.msra.mxu1 %v12267_v32  ;;  %8273 = vmatprep.mubr.msk.f32.mxu1 %vm574_vm2, %v12431_v46  ;;  %v12447_v32 = vld [vmem:[%s13937_s5 + $0x20] sm:$0xff] }
 0x4d1   :  { %8949 = vmatprep.subr.bf16.mxu1 %v12271_v37 }
 0x4d3   :  { %8274 = vmatmul.mubr.msk.f32.gmra.mrb[58].mxu1 %vm574_vm2, %v12439_v19 }
 0x4d4   :  { %8951 = vmatpush3.bf16.msra.mxu1 %v12271_v37  ;;  %8276 = vmatprep.mubr.msk.f32.mxu1 %vm574_vm2, %v12447_v32  ;;  %v12461_v37 = vld [vmem:[%s13937_s5 + $0x30] sm:$0xff] }
 0x4d7   :  { %8277 = vmatmul.mubr.msk.f32.gmra.mrb[60].mxu1 %vm574_vm2, %v12454_v13 }
 0x4d8   :  { %8279 = vmatprep.mubr.msk.f32.mxu1 %vm574_vm2, %v12461_v37 }
 0x4db   :  { %8280 = vmatmul.mubr.msk.f32.gmra.mrb[62].mxu1 %vm574_vm2, %v12468_v48 }
 0x4dc   :  { %8282 = vmatprep.mubr.msk.f32.mxu1 %vm574_vm2, %v12475_v7 }
 0x4df   :  { %8283 = vmatmul.mubr.msk.f32.gmra.mrb[64].mxu1 %vm574_vm2, %v12482_v56 }
 0x4e0   :  { %8285 = vmatprep.mubr.msk.f32.mxu1 %vm574_vm2, %v12489_v3 }
 0x4e3   :  { %8286 = vmatmul.mubr.msk.f32.gmra.mrb[66].mxu1 %vm574_vm2, %v12496_v15 }
 0x4e4   :  { %8288 = vmatprep.mubr.msk.f32.mxu1 %vm574_vm2, %v12503_v6 }
 0x4e7   :  { %8289 = vmatmul.mubr.msk.f32.gmra.mrb[68].mxu1 %vm574_vm2, %v12510_v18 }
 0x4e8   :  { %8291 = vmatprep.mubr.msk.f32.mxu1 %vm574_vm2, %v12517_v4 }
 0x4eb   :  { %8292 = vmatmul.mubr.msk.f32.gmra.mrb[70].mxu1 %vm574_vm2, %v12524_v16 }
 0x4ec   :  { %8360 = vmatprep.mubr.msk.f32.mxu1 %vm574_vm2, %v12531_v12 }
 0x4ef   :  { %8361 = vmatmul.mubr.msk.f32.vlgmr.msra.gmra.mrb[56].mxu1 %vm574_vm2, %v12089_v20  ;;  %v31_v20 = vld [vmem:[%s13931_s0 + $0x14] sm:$0xf] }
 0x4f0   :  { %8363 = vmatprep.mubr.msk.f32.mxu1 %vm574_vm2, %v12096_v61  ;;  %8538 = vmatprep.subr.msk.mxu0 %vm425_vm0, %v31_v20  ;;  %v12567_v61 = vld [vmem:[%s13932_s1 + $0x8] sm:$0xff] }
 0x4f1   :  { %8539 = vmatpush3.msk.msra.mxu0 %vm425_vm0, %v31_v20 }
 0x4f2   :  { %8541 = vmatmul.mubr.msk.f32.vlgmr.msra.gmra.mrb[80].mxu0 %vm376_vm1, %v12567_v61 }
 0x4f3   :  { %8364 = vmatmul.mubr.msk.f32.gmra.mrb[58].mxu1 %vm574_vm2, %v12103_v26  ;;  %v12576_v26 = vld [vmem:[%s13932_s1 + $0x10] sm:$0xff] }
 0x4f4   :  { %8366 = vmatprep.mubr.msk.f32.mxu1 %vm574_vm2, %v12110_v52  ;;  %8543 = vmatprep.mubr.msk.f32.mxu0 %vm376_vm1, %v12576_v26  ;;  %v12585_v52 = vld [vmem:[%s13932_s1 + $0x18] sm:$0xff] }
 0x4f6   :  { %8544 = vmatmul.mubr.msk.f32.gmra.mrb[82].mxu0 %vm376_vm1, %v12585_v52 }
 0x4f7   :  { %8367 = vmatmul.mubr.msk.f32.gmra.mrb[60].mxu1 %vm574_vm2, %v12117_v23  ;;  %v12594_v23 = vld [vmem:[%s13932_s1 + $0x20] sm:$0xff] }
 0x4f8   :  { %8369 = vmatprep.mubr.msk.f32.mxu1 %vm574_vm2, %v12124_v49  ;;  %8546 = vmatprep.mubr.msk.f32.mxu0 %vm376_vm1, %v12594_v23  ;;  %v12603_v49 = vld [vmem:[%s13932_s1 + $0x28] sm:$0xff] }
 0x4fa   :  { %8547 = vmatmul.mubr.msk.f32.gmra.mrb[84].mxu0 %vm376_vm1, %v12603_v49 }
 0x4fb   :  { %8370 = vmatmul.mubr.msk.f32.gmra.mrb[62].mxu1 %vm574_vm2, %v12131_v55  ;;  %v12610_v55 = vld [vmem:[%s13932_s1 + $0x30] sm:$0xff] }
 0x4fc   :  { %8372 = vmatprep.mubr.msk.f32.mxu1 %vm574_vm2, %v12138_v36  ;;  %8549 = vmatprep.mubr.msk.f32.mxu0 %vm376_vm1, %v12610_v55  ;;  %v12617_v36 = vld [vmem:[%s13932_s1 + $0x38] sm:$0xff] }
 0x4fe   :  { %8550 = vmatmul.mubr.msk.f32.gmra.mrb[86].mxu0 %vm376_vm1, %v12617_v36 }
 0x4ff   :  { %8373 = vmatmul.mubr.msk.f32.gmra.mrb[64].mxu1 %vm574_vm2, %v12145_v0  ;;  %v12624_v0 = vld [vmem:[%s13932_s1 + $0x40] sm:$0xff] }
 0x500   :  { %8375 = vmatprep.mubr.msk.f32.mxu1 %vm574_vm2, %v12152_v50  ;;  %8552 = vmatprep.mubr.msk.f32.mxu0 %vm376_vm1, %v12624_v0  ;;  %v12631_v50 = vld [vmem:[%s13932_s1 + $0x48] sm:$0xff] }
 0x502   :  { %8553 = vmatmul.mubr.msk.f32.gmra.mrb[88].mxu0 %vm376_vm1, %v12631_v50 }
 0x503   :  { %8376 = vmatmul.mubr.msk.f32.gmra.mrb[66].mxu1 %vm574_vm2, %v12159_v24  ;;  %v12638_v24 = vld [vmem:[%s13932_s1 + $0x50] sm:$0xff] }
 0x504   :  { %8378 = vmatprep.mubr.msk.f32.mxu1 %vm574_vm2, %v12166_v41  ;;  %14235 = vst [vmem:[#allocation46_spill] sm:$0xff] %v12638_v24  ;;  %8555 = vmatprep.mubr.msk.f32.mxu0 %vm376_vm1, %v12638_v24  ;;  %v12645_v41 = vld [vmem:[%s13932_s1 + $0x58] sm:$0xff] }
 0x505   :  { %14236 = vst [vmem:[#allocation47_spill] sm:$0xff] %v12645_v41 }
 0x506   :  { %8556 = vmatmul.mubr.msk.f32.gmra.mrb[90].mxu0 %vm376_vm1, %v12645_v41 }
 0x507   :  { %8379 = vmatmul.mubr.msk.f32.gmra.mrb[68].mxu1 %vm574_vm2, %v12173_v25  ;;  %v12652_v25 = vld [vmem:[%s13932_s1 + $0x60] sm:$0xff] }
 0x508   :  { %8381 = vmatprep.mubr.msk.f32.mxu1 %vm574_vm2, %v12180_v1  ;;  %14237 = vst [vmem:[#allocation48_spill] sm:$0xff] %v12652_v25  ;;  %8558 = vmatprep.mubr.msk.f32.mxu0 %vm376_vm1, %v12652_v25  ;;  %v12659_v1 = vld [vmem:[%s13932_s1 + $0x68] sm:$0xff] }
 0x509   :  { %14238 = vst [vmem:[#allocation49_spill] sm:$0xff] %v12659_v1 }
 0x50a   :  { %8559 = vmatmul.mubr.msk.f32.gmra.mrb[92].mxu0 %vm376_vm1, %v12659_v1 }
 0x50b   :  { %8382 = vmatmul.mubr.msk.f32.gmra.mrb[70].mxu1 %vm574_vm2, %v12187_v35  ;;  %v12666_v35 = vld [vmem:[%s13932_s1 + $0x70] sm:$0xff] }
 0x50c   :  { %8392 = vmatprep.mubr.msk.f32.mxu1 %vm574_vm2, %v12194_v59  ;;  %14239 = vst [vmem:[#allocation50_spill] sm:$0xff] %v12666_v35  ;;  %8561 = vmatprep.mubr.msk.f32.mxu0 %vm376_vm1, %v12666_v35  ;;  %v12673_v59 = vld [vmem:[%s13932_s1 + $0x78] sm:$0xff] }
 0x50d   :  { %14240 = vst [vmem:[#allocation51_spill] sm:$0xff] %v12673_v59 }
 0x50e   :  { %8562 = vmatmul.mubr.msk.f32.gmra.mrb[94].mxu0 %vm376_vm1, %v12673_v59 }
 0x50f   :  { %8572 = vmatprep.mubr.msk.f32.mxu0 %vm574_vm2, %v12680_v58 }
 0x55f   :  { %v8452_v51 = vpop.f32.mrb[64].mxu0 }
 0x560   :  { %v9186_v53 = vadd.f32 %v8452_v51, %v14195_v62  ;;  %v3885_v27 = vpop.f32.mrb[65].mxu0 }
 0x561   :  { %v9187_v39 = vadd.f32 %v3885_v27, %v14196_v38 }
 0x562   :  { %v7035_v63 = vmul.f32 -1.442695, %v9186_v53 }
 0x563   :  { %v7034_v22 = vmul.f32 -1.442695, %v9187_v39  ;;  %v8455_v20 = vpop.f32.mrb[66].mxu0 }
 0x564   :  { %9982 = vpow2.f32 %v7035_v63  ;;  %v9188_v59 = vadd.f32 %v8455_v20, %v14197_v42  ;;  %v3895_v35 = vpop.f32.mrb[67].mxu0 }
 0x565   :  { %9984 = vpow2.f32 %v7034_v22  ;;  %v9189_v1 = vadd.f32 %v3895_v35, %v14198_v34 }
 0x566   :  { %v7037_v25 = vmul.f32 -1.442695, %v9188_v59 }
 0x567   :  { %v7036_v41 = vmul.f32 -1.442695, %v9189_v1  ;;  %v8458_v24 = vpop.f32.mrb[68].mxu0 }
 0x568   :  { %9986 = vpow2.f32 %v7037_v25  ;;  %v9190_v58 = vadd.f32 %v8458_v24, %v14199_v8  ;;  %v3905_v51 = vpop.f32.mrb[69].mxu0 }
 0x569   :  { %9988 = vpow2.f32 %v7036_v41  ;;  %v9191_v27 = vadd.f32 %v3905_v51, %v14200_v17 }
 0x56a   :  { %v7039_v53 = vmul.f32 -1.442695, %v9190_v58 }
 0x56b   :  { %v7038_v39 = vmul.f32 -1.442695, %v9191_v27  ;;  %v8461_v38 = vpop.f32.mrb[70].mxu0 }
 0x56c   :  { %9990 = vpow2.f32 %v7039_v53  ;;  %v9192_v63 = vadd.f32 %v8461_v38, %v14201_v30  ;;  %v3915_v20 = vpop.f32.mrb[71].mxu0 }
 0x56d   :  { %9992 = vpow2.f32 %v7038_v39  ;;  %v9193_v35 = vadd.f32 %v3915_v20, %v14202_v14 }
 0x56e   :  { %v9983_v59 = vpop.eup %9982  ;;  %v7041_v1 = vmul.f32 -1.442695, %v9192_v63 }
 0x56f   :  { %v9985_v22 = vpop.eup %9984  ;;  %v3989_v25 = vadd.f32 1.0, %v9983_v59  ;;  %v7040_v34 = vmul.f32 -1.442695, %v9193_v35  ;;  %v8464_v24 = vpop.f32.mrb[72].mxu0 }
 0x570   :  { %v3988_v8 = vadd.f32 1.0, %v9985_v22  ;;  %9994 = vpow2.f32 %v7041_v1  ;;  %v9194_v41 = vadd.f32 %v8464_v24, %v14203_v9  ;;  %v3925_v58 = vpop.f32.mrb[73].mxu0 }
 0x571   :  { %9996 = vrcp.f32 %v3989_v25  ;;  %v9195_v53 = vadd.f32 %v3925_v58, %v14204_v54 }
 0x572   :  { %v9987_v51 = vpop.eup %9986  ;;  %9998 = vrcp.f32 %v3988_v8 }
 0x573   :  { %v9989_v27 = vpop.eup %9988  ;;  %v3991_v38 = vadd.f32 1.0, %v9987_v51  ;;  %10000 = vpow2.f32 %v7040_v34  ;;  %v8467_v39 = vpop.f32.mrb[74].mxu0  ;;  %v14242_v51 = vld [vmem:[#allocation13_spill] sm:$0xff] }
 0x574   :  { %v3990_v20 = vadd.f32 1.0, %v9989_v27  ;;  %10002 = vtanh.f32 %v9194_v41  ;;  %v9196_v63 = vadd.f32 %v8467_v39, %v14205_v40  ;;  %v3935_v35 = vpop.f32.mrb[75].mxu0 }
 0x575   :  { %10004 = vrcp.f32 %v3991_v38  ;;  %v9197_v25 = vadd.f32 %v3935_v35, %v14206_v57  ;;  %v14243_v35 = vld [vmem:[#allocation16_spill] sm:$0xff] }
 0x576   :  { %v9991_v59 = vpop.eup %9990  ;;  %10006 = vrcp.f32 %v3990_v20 }
 0x577   :  { %v9993_v1 = vpop.eup %9992  ;;  %v3993_v22 = vadd.f32 1.0, %v9991_v59  ;;  %10008 = vtanh.f32 %v9195_v53  ;;  %v8470_v8 = vpop.f32.mrb[76].mxu0 }
 0x578   :  { %v3992_v24 = vadd.f32 1.0, %v9993_v1  ;;  %10010 = vtanh.f32 %v9196_v63  ;;  %v9198_v34 = vadd.f32 %v8470_v8, %v14207_v47  ;;  %v3945_v58 = vpop.f32.mrb[77].mxu0  ;;  %v14244_v8 = vld [vmem:[#allocation17_spill] sm:$0xff] }
 0x579   :  { %10012 = vrcp.f32 %v3993_v22  ;;  %v9199_v41 = vadd.f32 %v3945_v58, %v14242_v51 }
 0x57a   :  { %v9995_v27 = vpop.eup %9994  ;;  %10014 = vrcp.f32 %v3992_v24  ;;  %v7043_v39 = vmul.f32 -1.442695, %v9198_v34 }
 0x57b   :  { %v9997_v38 = vpop.eup %9996  ;;  %v3995_v40 = vadd.f32 1.0, %v9995_v27  ;;  %10016 = vtanh.f32 %v9197_v25  ;;  %v7042_v20 = vmul.f32 -1.442695, %v9199_v41  ;;  %v8473_v59 = vpop.f32.mrb[78].mxu0 }
 0x57c   :  { %v9999_v53 = vpop.eup %9998  ;;  %10018 = vpow2.f32 %v7043_v39  ;;  %v9200_v57 = vadd.f32 %v8473_v59, %v14243_v35  ;;  %v3955_v1 = vpop.f32.mrb[79].mxu0 }
 0x57d   :  { %v10001_v63 = vpop.eup %10000  ;;  %10020 = vrcp.f32 %v3995_v40  ;;  %v9201_v47 = vadd.f32 %v3955_v1, %v14244_v8 }
 0x57e   :  { %v10003_v22 = vpop.eup %10002  ;;  %v3994_v54 = vadd.f32 1.0, %v10001_v63  ;;  %10022 = vpow2.f32 %v7042_v20  ;;  %v7045_v58 = vmul.f32 -1.442695, %v9200_v57 }
 0x57f   :  { %v10005_v24 = vpop.eup %10004  ;;  %v4045_v34 = vmul.f32 %v10003_v22, %v9997_v38  ;;  %v7044_v51 = vmul.f32 -1.442695, %v9201_v47 }
 0x580   :  { %v10007_v27 = vpop.eup %10006  ;;  %10024 = vrcp.f32 %v3994_v54 }
 0x581   :  { %v10009_v25 = vpop.eup %10008  ;;  %10026 = vpow2.f32 %v7045_v58 }
 0x582   :  { %v10011_v41 = vpop.eup %10010  ;;  %v4044_v39 = vmul.f32 %v10009_v25, %v9999_v53  ;;  %10028 = vpow2.f32 %v7044_v51 }
 0x583   :  { %v10013_v59 = vpop.eup %10012  ;;  %v4047_v35 = vmul.f32 %v10011_v41, %v10005_v24 }
 0x584   :  { %v10015_v9 = vpop.eup %10014  ;;  %v4041_v40 = vmul.f32 %v10013_v59, %v12253_v29 }
 0x585   :  { %v10017_v1 = vpop.eup %10016  ;;  %v4040_v63 = vmul.f32 %v10015_v9, %v12255_v33 }
 0x586   :  { %v10019_v20 = vpop.eup %10018  ;;  %v12702_v57 = vadd.f32 %v4045_v34, %v4041_v40  ;;  %v4046_v38 = vmul.f32 %v10017_v1, %v10007_v27 }
 0x587   :  { %v10021_v47 = vpop.eup %10020  ;;  %v12704_v22 = vadd.f32 %v4044_v39, %v4040_v63  ;;  %v4029_v54 = vadd.f32 1.0, %v10019_v20 }
 0x588   :  { %v10023_v58 = vpop.eup %10022  ;;  %v4043_v53 = vmul.f32 %v10021_v47, %v12260_v31  ;;  %10030 = vtanh.f32 %v12702_v57 }
 0x589   :  { %10032 = vtanh.f32 %v12704_v22  ;;  %v4028_v51 = vadd.f32 1.0, %v10023_v58 }
 0x58a   :  { %v10025_v29 = vpop.eup %10024  ;;  %v12709_v24 = vadd.f32 %v4047_v35, %v4043_v53  ;;  %10034 = vrcp.f32 %v4029_v54 }
 0x58b   :  { %v10027_v9 = vpop.eup %10026  ;;  %v4042_v33 = vmul.f32 %v10025_v29, %v12264_v5  ;;  %10036 = vrcp.f32 %v4028_v51  ;;  %v14245_v51 = vld [vmem:[#allocation34_spill] sm:$0xff]  ;;  %v14246_v29 = vld [vmem:[#allocation35_spill] sm:$0xff] }
 0x58c   :  { %v10029_v34 = vpop.eup %10028  ;;  %10038 = vtanh.f32 %v12709_v24  ;;  %v4031_v27 = vadd.f32 1.0, %v10027_v9  ;;  %v14247_v9 = vld [vmem:[#allocation36_spill] sm:$0xff] }
 0x58d   :  { %v12713_v25 = vadd.f32 %v4046_v38, %v4042_v33  ;;  %v4030_v31 = vadd.f32 1.0, %v10029_v34  ;;  %v14248_v33 = vld [vmem:[#allocation37_spill] sm:$0xff]  ;;  %v14253_v34 = vld [vmem:[#allocation42_spill] sm:$0xff] }
 0x58e   :  { %10040 = vrcp.f32 %v4031_v27  ;;  %v14254_v27 = vld [vmem:[#allocation43_spill] sm:$0xff] }
 0x58f   :  { %10042 = vtanh.f32 %v12713_v25 }
 0x590   :  { %10044 = vrcp.f32 %v4030_v31  ;;  %v14255_v31 = vld [vmem:[#allocation44_spill] sm:$0xff] }
 0x592   :  { %v10031_v41 = vpop.eup %10030 }
 0x593   :  { %v10033_v39 = vpop.eup %10032 }
 0x594   :  { %v10035_v35 = vpop.eup %10034 }
 0x595   :  { %v10037_v59 = vpop.eup %10036  ;;  %v4057_v40 = vmul.f32 %v10035_v35, %v10031_v41  ;;  %v14256_v41 = vld [vmem:[#allocation45_spill] sm:$0xff]  ;;  %v14257_v35 = vld [vmem:[#allocation18_spill] sm:$0xff] }
 0x596   :  { %v10039_v1 = vpop.eup %10038  ;;  %v4056_v63 = vmul.f32 %v10037_v59, %v10033_v39 }
 0x598   :  { %v10041_v5 = vpop.eup %10040  ;;  %v12716_v20 = vpack.c.bf16 %v4057_v40, %v4056_v63 }
 0x599   :  { %v10043_v47 = vpop.eup %10042  ;;  %v4059_v54 = vmul.f32 %v10041_v5, %v10039_v1  ;;  %v14258_v1 = vld [vmem:[#allocation19_spill] sm:$0xff] }
 0x59a   :  { %v10045_v58 = vpop.eup %10044  ;;  %8985 = vmatprep.subr.bf16.mxu0 %v12716_v20 }
 0x59b   :  { %8987 = vmatpush3.bf16.msra.mxu0 %v12716_v20  ;;  %v4058_v38 = vmul.f32 %v10045_v58, %v10043_v47  ;;  %v14259_v58 = vld [vmem:[#allocation22_spill] sm:$0xff] }
 0x59d   :  { %v12720_v53 = vpack.c.bf16 %v4059_v54, %v4058_v38 }
 0x59f   :  { %8989 = vmatprep.subr.bf16.mxu0 %v12720_v53 }
 0x5a0   :  { %8991 = vmatpush3.bf16.msra.mxu0 %v12720_v53 }
 0x5a3   :  { %8573 = vmatmul.mubr.msk.f32.vlgmr.msra.gmra.mrb[80].mxu0 %vm574_vm2, %v12279_v28  ;;  %v14249_v28 = vld [vmem:[#allocation38_spill] sm:$0xff] }
 0x5a4   :  { %8575 = vmatprep.mubr.msk.f32.mxu0 %vm574_vm2, %v12287_v60  ;;  %v14250_v60 = vld [vmem:[#allocation39_spill] sm:$0xff] }
 0x5a7   :  { %8576 = vmatmul.mubr.msk.f32.gmra.mrb[82].mxu0 %vm574_vm2, %v12295_v11  ;;  %v14251_v11 = vld [vmem:[#allocation40_spill] sm:$0xff] }
 0x5a8   :  { %8578 = vmatprep.mubr.msk.f32.mxu0 %vm574_vm2, %v12303_v10  ;;  %v14252_v10 = vld [vmem:[#allocation41_spill] sm:$0xff] }
 0x5ab   :  { %8579 = vmatmul.mubr.msk.f32.gmra.mrb[84].mxu0 %vm574_vm2, %v14245_v51 }
 0x5ac   :  { %8581 = vmatprep.mubr.msk.f32.mxu0 %vm574_vm2, %v14246_v29  ;;  %v14260_v29 = vld [vmem:[#allocation23_spill] sm:$0xff] }
 0x5af   :  { %8582 = vmatmul.mubr.msk.f32.gmra.mrb[86].mxu0 %vm574_vm2, %v14247_v9 }
 0x5b0   :  { %8584 = vmatprep.mubr.msk.f32.mxu0 %vm574_vm2, %v14248_v33 }
 0x5b3   :  { %8585 = vmatmul.mubr.msk.f32.gmra.mrb[88].mxu0 %vm574_vm2, %v14249_v28 }
 0x5b4   :  { %8587 = vmatprep.mubr.msk.f32.mxu0 %vm574_vm2, %v14250_v60 }
 0x5b7   :  { %8588 = vmatmul.mubr.msk.f32.gmra.mrb[90].mxu0 %vm574_vm2, %v14251_v11  ;;  %v14261_v11 = vld [vmem:[#allocation20_spill] sm:$0xff] }
 0x5b8   :  { %8590 = vmatprep.mubr.msk.f32.mxu0 %vm574_vm2, %v14252_v10 }
 0x5bb   :  { %8591 = vmatmul.mubr.msk.f32.gmra.mrb[92].mxu0 %vm574_vm2, %v14253_v34 }
 0x5bc   :  { %8593 = vmatprep.mubr.msk.f32.mxu0 %vm574_vm2, %v14254_v27  ;;  %v14262_v27 = vld [vmem:[#allocation21_spill] sm:$0xff] }
 0x5bf   :  { %8594 = vmatmul.mubr.msk.f32.gmra.mrb[94].mxu0 %vm574_vm2, %v14255_v31 }
 0x5c0   :  { %8662 = vmatprep.mubr.msk.f32.mxu0 %vm376_vm1, %v14256_v41 }
 0x5c2   :  { %v8362_v39 = vpop.f32.mrb[56].mxu1 }
 0x5c3   :  { %v9138_v59 = vadd.f32 %v8362_v39, %v14257_v35  ;;  %v3351_v40 = vpop.f32.mrb[57].mxu1 }
 0x5c4   :  { %v9139_v63 = vadd.f32 %v3351_v40, %v14258_v1  ;;  %v14263_v40 = vld [vmem:[#allocation24_spill] sm:$0xff] }
 0x5c5   :  { %v6974_v5 = vmul.f32 -1.442695, %v9138_v59 }
 0x5c6   :  { %v6973_v47 = vmul.f32 -1.442695, %v9139_v63  ;;  %v8365_v54 = vpop.f32.mrb[58].mxu1 }
 0x5c7   :  { %10046 = vpow2.f32 %v6974_v5  ;;  %v9140_v38 = vadd.f32 %v8365_v54, %v14259_v58  ;;  %v3361_v51 = vpop.f32.mrb[59].mxu1 }
 0x5c8   :  { %10048 = vpow2.f32 %v6973_v47  ;;  %v9141_v9 = vadd.f32 %v3361_v51, %v14260_v29  ;;  %v14264_v47 = vld [vmem:[#allocation25_spill] sm:$0xff] }
 0x5c9   :  { %v6976_v33 = vmul.f32 -1.442695, %v9140_v38 }
 0x5ca   :  { %v6975_v28 = vmul.f32 -1.442695, %v9141_v9  ;;  %v8368_v60 = vpop.f32.mrb[60].mxu1 }
 0x5cb   :  { %10050 = vpow2.f32 %v6976_v33  ;;  %v9142_v10 = vadd.f32 %v8368_v60, %v14261_v11  ;;  %v3371_v34 = vpop.f32.mrb[61].mxu1 }
 0x5cc   :  { %10052 = vpow2.f32 %v6975_v28  ;;  %v9143_v31 = vadd.f32 %v3371_v34, %v14262_v27  ;;  %v14265_v28 = vld [vmem:[#allocation26_spill] sm:$0xff] }
 0x5cd   :  { %v6978_v41 = vmul.f32 -1.442695, %v9142_v10 }
 0x5ce   :  { %v6977_v39 = vmul.f32 -1.442695, %v9143_v31  ;;  %v8371_v59 = vpop.f32.mrb[62].mxu1 }
 0x5cf   :  { %10054 = vpow2.f32 %v6978_v41  ;;  %v9144_v63 = vadd.f32 %v8371_v59, %v14263_v40  ;;  %v3381_v5 = vpop.f32.mrb[63].mxu1 }
 0x5d0   :  { %10056 = vpow2.f32 %v6977_v39  ;;  %v9145_v54 = vadd.f32 %v3381_v5, %v14264_v47  ;;  %v14266_v39 = vld [vmem:[#allocation27_spill] sm:$0xff] }
 0x5d1   :  { %v10047_v38 = vpop.eup %10046  ;;  %v6980_v51 = vmul.f32 -1.442695, %v9144_v63  ;;  %v14267_v63 = vld [vmem:[#allocation30_spill] sm:$0xff] }
 0x5d2   :  { %v10049_v9 = vpop.eup %10048  ;;  %v3455_v33 = vadd.f32 1.0, %v10047_v38  ;;  %v6979_v29 = vmul.f32 -1.442695, %v9145_v54  ;;  %v8374_v60 = vpop.f32.mrb[64].mxu1 }
 0x5d3   :  { %v3454_v11 = vadd.f32 1.0, %v10049_v9  ;;  %10058 = vpow2.f32 %v6980_v51  ;;  %v9146_v34 = vadd.f32 %v8374_v60, %v14265_v28  ;;  %v3391_v10 = vpop.f32.mrb[65].mxu1 }
 0x5d4   :  { %10060 = vrcp.f32 %v3455_v33  ;;  %v9147_v40 = vadd.f32 %v3391_v10, %v14266_v39  ;;  %v14268_v33 = vld [vmem:[#allocation31_spill] sm:$0xff] }
 0x5d5   :  { %v10051_v31 = vpop.eup %10050  ;;  %10062 = vrcp.f32 %v3454_v11 }
 0x5d6   :  { %v10053_v41 = vpop.eup %10052  ;;  %v3457_v59 = vadd.f32 1.0, %v10051_v31  ;;  %10064 = vpow2.f32 %v6979_v29  ;;  %v8377_v5 = vpop.f32.mrb[66].mxu1  ;;  %v14269_v29 = vld [vmem:[#allocation28_spill] sm:$0xff] }
 0x5d7   :  { %v3456_v47 = vadd.f32 1.0, %v10053_v41  ;;  %10066 = vtanh.f32 %v9146_v34  ;;  %v9148_v38 = vadd.f32 %v8377_v5, %v14267_v63  ;;  %v3401_v54 = vpop.f32.mrb[67].mxu1  ;;  %v14270_v41 = vld [vmem:[#allocation29_spill] sm:$0xff] }
 0x5d8   :  { %10068 = vrcp.f32 %v3457_v59  ;;  %v9149_v28 = vadd.f32 %v3401_v54, %v14268_v33  ;;  %v14271_v54 = vld [vmem:[#allocation32_spill] sm:$0xff] }
 0x5d9   :  { %v10055_v9 = vpop.eup %10054  ;;  %10070 = vrcp.f32 %v3456_v47 }
 0x5da   :  { %v10057_v51 = vpop.eup %10056  ;;  %v3459_v60 = vadd.f32 1.0, %v10055_v9  ;;  %10072 = vtanh.f32 %v9147_v40  ;;  %v8380_v11 = vpop.f32.mrb[68].mxu1 }
 0x5db   :  { %v3458_v27 = vadd.f32 1.0, %v10057_v51  ;;  %10074 = vtanh.f32 %v9148_v38  ;;  %v9150_v31 = vadd.f32 %v8380_v11, %v14269_v29  ;;  %v3411_v10 = vpop.f32.mrb[69].mxu1  ;;  %v14272_v11 = vld [vmem:[#allocation33_spill] sm:$0xff] }
 0x5dc   :  { %10076 = vrcp.f32 %v3459_v60  ;;  %v9151_v34 = vadd.f32 %v3411_v10, %v14270_v41 }
 0x5dd   :  { %v10059_v39 = vpop.eup %10058  ;;  %10078 = vrcp.f32 %v3458_v27  ;;  %v6982_v5 = vmul.f32 -1.442695, %v9150_v31 }
 0x5de   :  { %v10061_v59 = vpop.eup %10060  ;;  %v3461_v63 = vadd.f32 1.0, %v10059_v39  ;;  %10080 = vtanh.f32 %v9149_v28  ;;  %v6981_v47 = vmul.f32 -1.442695, %v9151_v34  ;;  %v8383_v9 = vpop.f32.mrb[70].mxu1 }
 0x5df   :  { %v10063_v40 = vpop.eup %10062  ;;  %10082 = vpow2.f32 %v6982_v5  ;;  %v9152_v33 = vadd.f32 %v8383_v9, %v14271_v54  ;;  %v3421_v51 = vpop.f32.mrb[71].mxu1 }
 0x5e0   :  { %v10065_v38 = vpop.eup %10064  ;;  %10084 = vrcp.f32 %v3461_v63  ;;  %v9153_v29 = vadd.f32 %v3421_v51, %v14272_v11 }
 0x5e1   :  { %v10067_v60 = vpop.eup %10066  ;;  %v3460_v58 = vadd.f32 1.0, %v10065_v38  ;;  %10086 = vpow2.f32 %v6981_v47  ;;  %v6984_v10 = vmul.f32 -1.442695, %v9152_v33 }
 0x5e2   :  { %v10069_v27 = vpop.eup %10068  ;;  %v3511_v31 = vmul.f32 %v10067_v60, %v10061_v59  ;;  %v6983_v41 = vmul.f32 -1.442695, %v9153_v29 }
 0x5e3   :  { %v10071_v39 = vpop.eup %10070  ;;  %10088 = vrcp.f32 %v3460_v58 }
 0x5e4   :  { %v10073_v28 = vpop.eup %10072  ;;  %10090 = vpow2.f32 %v6984_v10 }
 0x5e5   :  { %v10075_v34 = vpop.eup %10074  ;;  %v3510_v5 = vmul.f32 %v10073_v28, %v10063_v40  ;;  %10092 = vpow2.f32 %v6983_v41 }
 0x5e6   :  { %v10077_v9 = vpop.eup %10076  ;;  %v3513_v54 = vmul.f32 %v10075_v34, %v10069_v27 }
 0x5e7   :  { %v10079_v1 = vpop.eup %10078  ;;  %v3507_v63 = vmul.f32 %v10077_v9, %v12405_v2 }
 0x5e8   :  { %v10081_v51 = vpop.eup %10080  ;;  %v3506_v38 = vmul.f32 %v10079_v1, %v12407_v45 }
 0x5e9   :  { %v10083_v47 = vpop.eup %10082  ;;  %v12774_v33 = vadd.f32 %v3511_v31, %v3507_v63  ;;  %v3512_v59 = vmul.f32 %v10081_v51, %v10071_v39 }
 0x5ea   :  { %v10085_v29 = vpop.eup %10084  ;;  %v12776_v60 = vadd.f32 %v3510_v5, %v3506_v38  ;;  %v3495_v58 = vadd.f32 1.0, %v10083_v47 }
 0x5eb   :  { %v10087_v10 = vpop.eup %10086  ;;  %v3509_v40 = vmul.f32 %v10085_v29, %v12412_v43  ;;  %10094 = vtanh.f32 %v12774_v33 }
 0x5ec   :  { %10096 = vtanh.f32 %v12776_v60  ;;  %v3494_v41 = vadd.f32 1.0, %v10087_v10 }
 0x5ed   :  { %v10089_v2 = vpop.eup %10088  ;;  %v12781_v27 = vadd.f32 %v3513_v54, %v3509_v40  ;;  %10098 = vrcp.f32 %v3495_v58 }
 0x5ee   :  { %v10091_v45 = vpop.eup %10090  ;;  %v3508_v1 = vmul.f32 %v10089_v2, %v12416_v44  ;;  %10100 = vrcp.f32 %v3494_v41  ;;  %v14280_v41 = vld [vmem:[#allocation3_spill] sm:$0xff] }
 0x5ef   :  { %v10093_v31 = vpop.eup %10092  ;;  %10102 = vtanh.f32 %v12781_v27  ;;  %v3497_v39 = vadd.f32 1.0, %v10091_v45 }
 0x5f0   :  { %v12785_v28 = vadd.f32 %v3512_v59, %v3508_v1  ;;  %v3496_v43 = vadd.f32 1.0, %v10093_v31 }
 0x5f1   :  { %10104 = vrcp.f32 %v3497_v39 }
 0x5f2   :  { %10106 = vtanh.f32 %v12785_v28 }
 0x5f3   :  { %10108 = vrcp.f32 %v3496_v43 }
 0x5f5   :  { %v10095_v34 = vpop.eup %10094 }
 0x5f6   :  { %v10097_v5 = vpop.eup %10096 }
 0x5f7   :  { %v10099_v54 = vpop.eup %10098 }
 0x5f8   :  { %v10101_v9 = vpop.eup %10100  ;;  %v3523_v63 = vmul.f32 %v10099_v54, %v10095_v34  ;;  %v14281_v34 = vld [vmem:[#allocation7_spill] sm:$0xff] }
 0x5f9   :  { %v10103_v51 = vpop.eup %10102  ;;  %v3522_v38 = vmul.f32 %v10101_v9, %v10097_v5 }
 0x5fb   :  { %v10105_v44 = vpop.eup %10104  ;;  %v8952_v47 = vpack.c.bf16 %v3523_v63, %v3522_v38 }
 0x5fc   :  { %v10107_v29 = vpop.eup %10106  ;;  %v3525_v58 = vmul.f32 %v10105_v44, %v10103_v51  ;;  %v14282_v51 = vld [vmem:[#allocation4_spill] sm:$0xff] }
 0x5fd   :  { %v10109_v10 = vpop.eup %10108  ;;  %8953 = vmatprep.subr.bf16.mxu1 %v8952_v47 }
 0x5fe   :  { %8955 = vmatpush3.bf16.msra.mxu1 %v8952_v47  ;;  %v3524_v59 = vmul.f32 %v10109_v10, %v10107_v29 }
 0x600   :  { %v8956_v40 = vpack.c.bf16 %v3525_v58, %v3524_v59 }
 0x602   :  { %8957 = vmatprep.subr.bf16.mxu1 %v8956_v40 }
 0x603   :  { %8959 = vmatpush3.bf16.msra.mxu1 %v8956_v40 }
 0x604   :  { %8969 = vmatprep.subr.bf16.mxu1 %v12716_v20 }
 0x606   :  { %8393 = vmatmul.mubr.msk.f32.vlgmr.msra.gmra.mrb[72].mxu1 %vm574_vm2, %v12423_v21  ;;  %v12817_v21 = vld [vmem:[%s13931_s0 + $0x18] sm:$0xf] }
 0x607   :  { %8971 = vmatpush3.bf16.msra.mxu1 %v12716_v20  ;;  %8395 = vmatprep.mubr.msk.f32.mxu1 %vm574_vm2, %v12431_v46  ;;  %v12846_v46 = vld [vmem:[%s13936_s4 + $0x8] sm:$0xff] }
 0x608   :  { %8973 = vmatprep.subr.bf16.mxu1 %v12720_v53  ;;  %8660 = vmatprep.subr.msk.mxu0 %vm425_vm0, %v12817_v21 }
 0x609   :  { %8661 = vmatpush3.msk.msra.mxu0 %vm425_vm0, %v12817_v21 }
 0x60a   :  { %8396 = vmatmul.mubr.msk.f32.gmra.mrb[74].mxu1 %vm574_vm2, %v12439_v19  ;;  %8663 = vmatmul.mubr.msk.f32.vlgmr.msra.gmra.mrb[96].mxu0 %vm376_vm1, %v12567_v61  ;;  %v12855_v19 = vld [vmem:[%s13936_s4 + $0x10] sm:$0xff]  ;;  %v14278_v61 = vld [vmem:[#allocation51_spill] sm:$0xff] }
 0x60b   :  { %8975 = vmatpush3.bf16.msra.mxu1 %v12720_v53  ;;  %8398 = vmatprep.mubr.msk.f32.mxu1 %vm574_vm2, %v12447_v32  ;;  %v12864_v32 = vld [vmem:[%s13936_s4 + $0x18] sm:$0xff] }
 0x60c   :  { %8665 = vmatprep.mubr.msk.f32.mxu0 %vm376_vm1, %v12576_v26  ;;  %v12936_v26 = vld [vmem:[%s13936_s4 + $0x58] sm:$0xff] }
 0x60e   :  { %8399 = vmatmul.mubr.msk.f32.gmra.mrb[76].mxu1 %vm574_vm2, %v12454_v13  ;;  %8666 = vmatmul.mubr.msk.f32.gmra.mrb[98].mxu0 %vm376_vm1, %v12585_v52  ;;  %v12873_v13 = vld [vmem:[%s13936_s4 + $0x20] sm:$0xff]  ;;  %v14279_v52 = vld [vmem:[#allocation52_spill] sm:$0xff] }
 0x60f   :  { %8401 = vmatprep.mubr.msk.f32.mxu1 %vm574_vm2, %v12461_v37  ;;  %8668 = vmatprep.mubr.msk.f32.mxu0 %vm376_vm1, %v12594_v23  ;;  %v12882_v37 = vld [vmem:[%s13936_s4 + $0x28] sm:$0xff]  ;;  %v12945_v23 = vld [vmem:[%s13936_s4 + $0x60] sm:$0xff] }
 0x612   :  { %8402 = vmatmul.mubr.msk.f32.gmra.mrb[78].mxu1 %vm574_vm2, %v12468_v48  ;;  %8669 = vmatmul.mubr.msk.f32.gmra.mrb[100].mxu0 %vm376_vm1, %v12603_v49  ;;  %v14273_v48 = vld [vmem:[#allocation46_spill] sm:$0xff]  ;;  %v12952_v49 = vld [vmem:[%s13936_s4 + $0x68] sm:$0xff] }
 0x613   :  { %8404 = vmatprep.mubr.msk.f32.mxu1 %vm574_vm2, %v12475_v7  ;;  %8671 = vmatprep.mubr.msk.f32.mxu0 %vm376_vm1, %v12610_v55  ;;  %v12891_v7 = vld [vmem:[%s13936_s4 + $0x30] sm:$0xff] }
 0x614   :  { %v12959_v55 = vld [vmem:[%s13936_s4 + $0x70] sm:$0xff] }
 0x616   :  { %8405 = vmatmul.mubr.msk.f32.gmra.mrb[80].mxu1 %vm574_vm2, %v12482_v56  ;;  %8672 = vmatmul.mubr.msk.f32.gmra.mrb[102].mxu0 %vm376_vm1, %v12617_v36  ;;  %v14274_v56 = vld [vmem:[#allocation47_spill] sm:$0xff]  ;;  %v12966_v36 = vld [vmem:[%s13936_s4 + $0x78] sm:$0xff] }
 0x617   :  { %8407 = vmatprep.mubr.msk.f32.mxu1 %vm574_vm2, %v12489_v3  ;;  %8674 = vmatprep.mubr.msk.f32.mxu0 %vm376_vm1, %v12624_v0  ;;  %v12900_v3 = vld [vmem:[%s13936_s4 + $0x38] sm:$0xff]  ;;  %v12973_v0 = vld [vmem:[%s13937_s5] sm:$0xff] }
 0x61a   :  { %8408 = vmatmul.mubr.msk.f32.gmra.mrb[82].mxu1 %vm574_vm2, %v12496_v15  ;;  %8675 = vmatmul.mubr.msk.f32.gmra.mrb[104].mxu0 %vm376_vm1, %v12631_v50  ;;  %v14275_v15 = vld [vmem:[#allocation48_spill] sm:$0xff] }
 0x61b   :  { %8410 = vmatprep.mubr.msk.f32.mxu1 %vm574_vm2, %v12503_v6  ;;  %8677 = vmatprep.mubr.msk.f32.mxu0 %vm376_vm1, %v14273_v48  ;;  %v12909_v6 = vld [vmem:[%s13936_s4 + $0x40] sm:$0xff] }
 0x61e   :  { %8411 = vmatmul.mubr.msk.f32.gmra.mrb[84].mxu1 %vm574_vm2, %v12510_v18  ;;  %8678 = vmatmul.mubr.msk.f32.gmra.mrb[106].mxu0 %vm376_vm1, %v14274_v56  ;;  %v14276_v18 = vld [vmem:[#allocation49_spill] sm:$0xff] }
 0x61f   :  { %8413 = vmatprep.mubr.msk.f32.mxu1 %vm574_vm2, %v12517_v4  ;;  %8680 = vmatprep.mubr.msk.f32.mxu0 %vm376_vm1, %v14275_v15  ;;  %v12918_v4 = vld [vmem:[%s13936_s4 + $0x48] sm:$0xff] }
 0x622   :  { %8414 = vmatmul.mubr.msk.f32.gmra.mrb[86].mxu1 %vm574_vm2, %v12524_v16  ;;  %8681 = vmatmul.mubr.msk.f32.gmra.mrb[108].mxu0 %vm376_vm1, %v14276_v18  ;;  %v14277_v16 = vld [vmem:[#allocation50_spill] sm:$0xff] }
 0x623   :  { %8482 = vmatprep.mubr.msk.f32.mxu1 %vm574_vm2, %v12531_v12  ;;  %8683 = vmatprep.mubr.msk.f32.mxu0 %vm376_vm1, %v14277_v16  ;;  %v12927_v12 = vld [vmem:[%s13936_s4 + $0x50] sm:$0xff] }
 0x626   :  { %8483 = vmatmul.mubr.msk.f32.vlgmr.msra.gmra.mrb[72].mxu1 %vm574_vm2, %v12846_v46  ;;  %8684 = vmatmul.mubr.msk.f32.gmra.mrb[110].mxu0 %vm376_vm1, %v14278_v61 }
 0x627   :  { %8485 = vmatprep.mubr.msk.f32.mxu1 %vm574_vm2, %v12855_v19  ;;  %8694 = vmatprep.mubr.msk.f32.mxu0 %vm574_vm2, %v14279_v52 }
 0x62a   :  { %8486 = vmatmul.mubr.msk.f32.gmra.mrb[74].mxu1 %vm574_vm2, %v12864_v32 }
 0x62b   :  { %8488 = vmatprep.mubr.msk.f32.mxu1 %vm574_vm2, %v12873_v13 }
 0x62e   :  { %8489 = vmatmul.mubr.msk.f32.gmra.mrb[76].mxu1 %vm574_vm2, %v12882_v37 }
 0x62f   :  { %8491 = vmatprep.mubr.msk.f32.mxu1 %vm574_vm2, %v12891_v7 }
 0x632   :  { %8492 = vmatmul.mubr.msk.f32.gmra.mrb[78].mxu1 %vm574_vm2, %v12900_v3 }
 0x633   :  { %8494 = vmatprep.mubr.msk.f32.mxu1 %vm574_vm2, %v12909_v6 }
 0x636   :  { %8495 = vmatmul.mubr.msk.f32.gmra.mrb[80].mxu1 %vm574_vm2, %v12918_v4 }
 0x637   :  { %8497 = vmatprep.mubr.msk.f32.mxu1 %vm574_vm2, %v12927_v12 }
 0x63a   :  { %8498 = vmatmul.mubr.msk.f32.gmra.mrb[82].mxu1 %vm574_vm2, %v12936_v26 }
 0x63b   :  { %8500 = vmatprep.mubr.msk.f32.mxu1 %vm574_vm2, %v12945_v23 }
 0x63e   :  { %8501 = vmatmul.mubr.msk.f32.gmra.mrb[84].mxu1 %vm574_vm2, %v12952_v49 }
 0x63f   :  { %8503 = vmatprep.mubr.msk.f32.mxu1 %vm574_vm2, %v12959_v55 }
 0x642   :  { %8504 = vmatmul.mubr.msk.f32.gmra.mrb[86].mxu1 %vm574_vm2, %v12966_v36 }
 0x643   :  { %8514 = vmatprep.mubr.msk.f32.mxu1 %vm574_vm2, %v12973_v0 }
 0x676   :  { %v8574_v50 = vpop.f32.mrb[80].mxu0 }
 0x677   :  { %v9218_v20 = vadd.f32 %v8574_v50, %v14195_v62  ;;  %v4660_v53 = vpop.f32.mrb[81].mxu0 }
 0x678   :  { %v9219_v2 = vadd.f32 %v4660_v53, %v14280_v41 }
 0x679   :  { %v7124_v45 = vmul.f32 -1.442695, %v9218_v20  ;;  %v14283_v20 = vld [vmem:[#allocation10_spill] sm:$0xff] }
 0x67a   :  { %v7123_v1 = vmul.f32 -1.442695, %v9219_v2  ;;  %v8577_v31 = vpop.f32.mrb[82].mxu0 }
 0x67b   :  { %10110 = vpow2.f32 %v7124_v45  ;;  %v9220_v39 = vadd.f32 %v8577_v31, %v14197_v42  ;;  %v4670_v43 = vpop.f32.mrb[83].mxu0 }
 0x67c   :  { %10112 = vpow2.f32 %v7123_v1  ;;  %v9221_v5 = vadd.f32 %v4670_v43, %v14281_v34 }
 0x67d   :  { %v7126_v54 = vmul.f32 -1.442695, %v9220_v39  ;;  %v14284_v39 = vld [vmem:[#allocation11_spill] sm:$0xff] }
 0x67e   :  { %v7125_v9 = vmul.f32 -1.442695, %v9221_v5  ;;  %v8580_v63 = vpop.f32.mrb[84].mxu0 }
 0x67f   :  { %10114 = vpow2.f32 %v7126_v54  ;;  %v9222_v38 = vadd.f32 %v8580_v63, %v14282_v51  ;;  %v4680_v44 = vpop.f32.mrb[85].mxu0 }
 0x680   :  { %10116 = vpow2.f32 %v7125_v9  ;;  %v9223_v47 = vadd.f32 %v4680_v44, %v14200_v17  ;;  %v14285_v9 = vld [vmem:[#allocation14_spill] sm:$0xff] }
 0x681   :  { %v7128_v29 = vmul.f32 -1.442695, %v9222_v38 }
 0x682   :  { %v7127_v58 = vmul.f32 -1.442695, %v9223_v47  ;;  %v8583_v10 = vpop.f32.mrb[86].mxu0 }
 0x683   :  { %10118 = vpow2.f32 %v7128_v29  ;;  %v9224_v59 = vadd.f32 %v8583_v10, %v14201_v30  ;;  %v4690_v40 = vpop.f32.mrb[87].mxu0 }
 0x684   :  { %10120 = vpow2.f32 %v7127_v58  ;;  %v9225_v48 = vadd.f32 %v4690_v40, %v14202_v14  ;;  %v14286_v58 = vld [vmem:[#allocation15_spill] sm:$0xff] }
 0x685   :  { %v10111_v56 = vpop.eup %10110  ;;  %v7130_v15 = vmul.f32 -1.442695, %v9224_v59 }
 0x686   :  { %v10113_v18 = vpop.eup %10112  ;;  %v4764_v16 = vadd.f32 1.0, %v10111_v56  ;;  %v7129_v61 = vmul.f32 -1.442695, %v9225_v48  ;;  %v8586_v52 = vpop.f32.mrb[88].mxu0  ;;  %v14287_v48 = vld [vmem:[#allocation12_spill] sm:$0xff] }
 0x687   :  { %v4763_v50 = vadd.f32 1.0, %v10113_v18  ;;  %10122 = vpow2.f32 %v7130_v15  ;;  %v9226_v53 = vadd.f32 %v8586_v52, %v14283_v20  ;;  %v4700_v2 = vpop.f32.mrb[89].mxu0  ;;  %v14288_v18 = vld [vmem:[#allocation13_spill] sm:$0xff] }
 0x688   :  { %10124 = vrcp.f32 %v4764_v16  ;;  %v9227_v43 = vadd.f32 %v4700_v2, %v14284_v39 }
 0x689   :  { %v10115_v45 = vpop.eup %10114  ;;  %10126 = vrcp.f32 %v4763_v50 }
 0x68a   :  { %v10117_v1 = vpop.eup %10116  ;;  %v4766_v31 = vadd.f32 1.0, %v10115_v45  ;;  %10128 = vpow2.f32 %v7129_v61  ;;  %v8589_v5 = vpop.f32.mrb[90].mxu0 }
 0x68b   :  { %v4765_v54 = vadd.f32 1.0, %v10117_v1  ;;  %10130 = vtanh.f32 %v9226_v53  ;;  %v9228_v63 = vadd.f32 %v8589_v5, %v14285_v9  ;;  %v4710_v38 = vpop.f32.mrb[91].mxu0 }
 0x68c   :  { %10132 = vrcp.f32 %v4766_v31  ;;  %v9229_v10 = vadd.f32 %v4710_v38, %v14286_v58  ;;  %v14289_v31 = vld [vmem:[#allocation16_spill] sm:$0xff] }
 0x68d   :  { %v10119_v44 = vpop.eup %10118  ;;  %10134 = vrcp.f32 %v4765_v54 }
 0x68e   :  { %v10121_v47 = vpop.eup %10120  ;;  %v4768_v29 = vadd.f32 1.0, %v10119_v44  ;;  %10136 = vtanh.f32 %v9227_v43  ;;  %v8592_v59 = vpop.f32.mrb[92].mxu0 }
 0x68f   :  { %v4767_v40 = vadd.f32 1.0, %v10121_v47  ;;  %10138 = vtanh.f32 %v9228_v63  ;;  %v9230_v56 = vadd.f32 %v8592_v59, %v14287_v48  ;;  %v4720_v15 = vpop.f32.mrb[93].mxu0 }
 0x690   :  { %10140 = vrcp.f32 %v4768_v29  ;;  %v9231_v16 = vadd.f32 %v4720_v15, %v14288_v18 }
 0x691   :  { %v10123_v61 = vpop.eup %10122  ;;  %10142 = vrcp.f32 %v4767_v40  ;;  %v7132_v52 = vmul.f32 -1.442695, %v9230_v56 }
 0x692   :  { %v10125_v50 = vpop.eup %10124  ;;  %v4770_v53 = vadd.f32 1.0, %v10123_v61  ;;  %10144 = vtanh.f32 %v9229_v10  ;;  %v7131_v2 = vmul.f32 -1.442695, %v9231_v16  ;;  %v8595_v45 = vpop.f32.mrb[94].mxu0 }
 0x693   :  { %v10127_v1 = vpop.eup %10126  ;;  %10146 = vpow2.f32 %v7132_v52  ;;  %v9232_v43 = vadd.f32 %v8595_v45, %v14289_v31  ;;  %v4730_v5 = vpop.f32.mrb[95].mxu0 }
 0x694   :  { %v10129_v54 = vpop.eup %10128  ;;  %10148 = vrcp.f32 %v4770_v53  ;;  %v9233_v63 = vadd.f32 %v4730_v5, %v14244_v8 }
 0x695   :  { %v10131_v38 = vpop.eup %10130  ;;  %v4769_v44 = vadd.f32 1.0, %v10129_v54  ;;  %10150 = vpow2.f32 %v7131_v2  ;;  %v7134_v47 = vmul.f32 -1.442695, %v9232_v43 }
 0x696   :  { %v10133_v29 = vpop.eup %10132  ;;  %v4820_v59 = vmul.f32 %v10131_v38, %v10125_v50  ;;  %v7133_v40 = vmul.f32 -1.442695, %v9233_v63 }
 0x697   :  { %v10135_v56 = vpop.eup %10134  ;;  %10152 = vrcp.f32 %v4769_v44 }
 0x698   :  { %v10137_v10 = vpop.eup %10136  ;;  %10154 = vpow2.f32 %v7134_v47 }
 0x699   :  { %v10139_v15 = vpop.eup %10138  ;;  %v4819_v16 = vmul.f32 %v10137_v10, %v10127_v1  ;;  %10156 = vpow2.f32 %v7133_v40 }
 0x69a   :  { %v10141_v61 = vpop.eup %10140  ;;  %v4822_v52 = vmul.f32 %v10139_v15, %v10133_v29 }
 0x69b   :  { %v10143_v45 = vpop.eup %10142  ;;  %v4816_v53 = vmul.f32 %v10141_v61, %v12702_v57 }
 0x69c   :  { %v10145_v5 = vpop.eup %10144  ;;  %v4815_v54 = vmul.f32 %v10143_v45, %v12704_v22 }
 0x69d   :  { %v10147_v2 = vpop.eup %10146  ;;  %v12995_v43 = vadd.f32 %v4820_v59, %v4816_v53  ;;  %v4821_v50 = vmul.f32 %v10145_v5, %v10135_v56 }
 0x69e   :  { %v10149_v63 = vpop.eup %10148  ;;  %v12997_v38 = vadd.f32 %v4819_v16, %v4815_v54  ;;  %v4804_v44 = vadd.f32 1.0, %v10147_v2 }
 0x69f   :  { %v10151_v47 = vpop.eup %10150  ;;  %v4818_v1 = vmul.f32 %v10149_v63, %v12709_v24  ;;  %10158 = vtanh.f32 %v12995_v43 }
 0x6a0   :  { %14290 = vst [vmem:[#allocation53_spill] sm:$0xff] %v12997_v38  ;;  %10160 = vtanh.f32 %v12997_v38  ;;  %v4803_v29 = vadd.f32 1.0, %v10151_v47 }
 0x6a1   :  { %v10153_v57 = vpop.eup %10152  ;;  %v13002_v40 = vadd.f32 %v4822_v52, %v4818_v1  ;;  %10162 = vrcp.f32 %v4804_v44 }
 0x6a2   :  { %v10155_v22 = vpop.eup %10154  ;;  %v4817_v59 = vmul.f32 %v10153_v57, %v12713_v25  ;;  %10164 = vrcp.f32 %v4803_v29  ;;  %v13020_v29 = vld [vmem:[%s13934_s2 + $0x8] sm:$0xff]  ;;  %v13027_v57 = vld [vmem:[%s13934_s2 + $0x10] sm:$0xff] }
 0x6a3   :  { %14291 = vst [vmem:[#allocation54_spill] sm:$0xff] %v13002_v40  ;;  %v10157_v56 = vpop.eup %10156  ;;  %10166 = vtanh.f32 %v13002_v40  ;;  %v4806_v10 = vadd.f32 1.0, %v10155_v22  ;;  %14293 = vst [vmem:[#allocation6_spill] sm:$0xff] %v13020_v29  ;;  %v13034_v22 = vld [vmem:[%s13934_s2 + $0x18] sm:$0xff]  ;;  %v13263_v40 = vld [vmem:[%s13937_s5 + $0x8] sm:$0xff] }
 0x6a4   :  { %v13006_v15 = vadd.f32 %v4821_v50, %v4817_v59  ;;  %v4805_v24 = vadd.f32 1.0, %v10157_v56  ;;  %14294 = vst [vmem:[#allocation2_spill] sm:$0xff] %v13027_v57  ;;  %14295 = vst [vmem:[#allocation8_spill] sm:$0xff] %v13034_v22  ;;  %v13041_v59 = vld [vmem:[%s13934_s2 + $0x20] sm:$0xff]  ;;  %v13048_v56 = vld [vmem:[%s13934_s2 + $0x28] sm:$0xff] }
 0x6a5   :  { %10168 = vrcp.f32 %v4806_v10  ;;  %14296 = vst [vmem:[#allocation9_spill] sm:$0xff] %v13041_v59  ;;  %14297 = vst [vmem:[#allocation55_spill] sm:$0xff] %v13048_v56  ;;  %v13055_v10 = vld [vmem:[%s13934_s2 + $0x30] sm:$0xff] }
 0x6a6   :  { %14292 = vst [vmem:[#allocation5_spill] sm:$0xff] %v13006_v15  ;;  %10170 = vtanh.f32 %v13006_v15  ;;  %14298 = vst [vmem:[#allocation56_spill] sm:$0xff] %v13055_v10 }
 0x6a7   :  { %10172 = vrcp.f32 %v4805_v24  ;;  %v13062_v24 = vld [vmem:[%s13934_s2 + $0x38] sm:$0xff]  ;;  %14326 = vst [vmem:[#allocation45_spill] sm:$0xff] %v13263_v40 }
 0x6a8   :  { %14299 = vst [vmem:[#allocation57_spill] sm:$0xff] %v13062_v24 }
 0x6a9   :  { %v10159_v16 = vpop.eup %10158 }
 0x6aa   :  { %v10161_v61 = vpop.eup %10160 }
 0x6ab   :  { %v10163_v52 = vpop.eup %10162 }
 0x6ac   :  { %v10165_v45 = vpop.eup %10164  ;;  %v4832_v53 = vmul.f32 %v10163_v52, %v10159_v16  ;;  %v13069_v16 = vld [vmem:[%s13934_s2 + $0x40] sm:$0xff]  ;;  %v13083_v52 = vld [vmem:[%s13934_s2 + $0x50] sm:$0xff] }
 0x6ad   :  { %v10167_v5 = vpop.eup %10166  ;;  %v4831_v54 = vmul.f32 %v10165_v45, %v10161_v61  ;;  %14300 = vst [vmem:[#allocation17_spill] sm:$0xff] %v13069_v16  ;;  %v13076_v61 = vld [vmem:[%s13934_s2 + $0x48] sm:$0xff]  ;;  %14302 = vst [vmem:[#allocation35_spill] sm:$0xff] %v13083_v52  ;;  %v13090_v45 = vld [vmem:[%s13934_s2 + $0x58] sm:$0xff] }
 0x6ae   :  { %14301 = vst [vmem:[#allocation34_spill] sm:$0xff] %v13076_v61  ;;  %14303 = vst [vmem:[#allocation36_spill] sm:$0xff] %v13090_v45 }
 0x6af   :  { %v10169_v25 = vpop.eup %10168  ;;  %v13009_v2 = vpack.c.bf16 %v4832_v53, %v4831_v54  ;;  %v13097_v53 = vld [vmem:[%s13934_s2 + $0x60] sm:$0xff]  ;;  %v13111_v54 = vld [vmem:[%s13934_s2 + $0x70] sm:$0xff] }
 0x6b0   :  { %v10171_v63 = vpop.eup %10170  ;;  %v4834_v44 = vmul.f32 %v10169_v25, %v10167_v5  ;;  %14304 = vst [vmem:[#allocation37_spill] sm:$0xff] %v13097_v53  ;;  %v13104_v5 = vld [vmem:[%s13934_s2 + $0x68] sm:$0xff]  ;;  %14306 = vst [vmem:[#allocation39_spill] sm:$0xff] %v13111_v54  ;;  %v13118_v25 = vld [vmem:[%s13934_s2 + $0x78] sm:$0xff] }
 0x6b1   :  { %v10173_v47 = vpop.eup %10172  ;;  %9009 = vmatprep.subr.bf16.mxu0 %v13009_v2  ;;  %14305 = vst [vmem:[#allocation38_spill] sm:$0xff] %v13104_v5  ;;  %14307 = vst [vmem:[#allocation40_spill] sm:$0xff] %v13118_v25 }
 0x6b2   :  { %9011 = vmatpush3.bf16.msra.mxu0 %v13009_v2  ;;  %v4833_v50 = vmul.f32 %v10173_v47, %v10171_v63  ;;  %v10688_v63 = vld [vmem:[%s13932_s1] sm:$0xff] }
 0x6b4   :  { %v13013_v1 = vpack.c.bf16 %v4834_v44, %v4833_v50 }
 0x6b6   :  { %9013 = vmatprep.subr.bf16.mxu0 %v13013_v1 }
 0x6b7   :  { %9015 = vmatpush3.bf16.msra.mxu0 %v13013_v1 }
 0x6ba   :  { %8695 = vmatmul.mubr.msk.f32.vlgmr.msra.gmra.mrb[96].mxu0 %vm574_vm2, %v13020_v29 }
 0x6bb   :  { %8697 = vmatprep.mubr.msk.f32.mxu0 %vm574_vm2, %v13027_v57 }
 0x6be   :  { %8698 = vmatmul.mubr.msk.f32.gmra.mrb[98].mxu0 %vm574_vm2, %v13034_v22 }
 0x6bf   :  { %8700 = vmatprep.mubr.msk.f32.mxu0 %vm574_vm2, %v13041_v59 }
 0x6c2   :  { %8701 = vmatmul.mubr.msk.f32.gmra.mrb[100].mxu0 %vm574_vm2, %v13048_v56 }
 0x6c3   :  { %8703 = vmatprep.mubr.msk.f32.mxu0 %vm574_vm2, %v13055_v10 }
 0x6c6   :  { %8704 = vmatmul.mubr.msk.f32.gmra.mrb[102].mxu0 %vm574_vm2, %v13062_v24 }
 0x6c7   :  { %8706 = vmatprep.mubr.msk.f32.mxu0 %vm574_vm2, %v13069_v16 }
 0x6ca   :  { %8707 = vmatmul.mubr.msk.f32.gmra.mrb[104].mxu0 %vm574_vm2, %v13076_v61  ;;  %v14309_v61 = vld [vmem:[#allocation22_spill] sm:$0xff] }
 0x6cb   :  { %8709 = vmatprep.mubr.msk.f32.mxu0 %vm574_vm2, %v13083_v52 }
 0x6ce   :  { %8710 = vmatmul.mubr.msk.f32.gmra.mrb[106].mxu0 %vm574_vm2, %v13090_v45 }
 0x6cf   :  { %8712 = vmatprep.mubr.msk.f32.mxu0 %vm574_vm2, %v13097_v53 }
 0x6d2   :  { %8713 = vmatmul.mubr.msk.f32.gmra.mrb[108].mxu0 %vm574_vm2, %v13104_v5  ;;  %v14308_v5 = vld [vmem:[#allocation19_spill] sm:$0xff] }
 0x6d3   :  { %8715 = vmatprep.mubr.msk.f32.mxu0 %vm574_vm2, %v13111_v54 }
 0x6d6   :  { %8716 = vmatmul.mubr.msk.f32.gmra.mrb[110].mxu0 %vm574_vm2, %v13118_v25  ;;  %v14310_v25 = vld [vmem:[#allocation23_spill] sm:$0xff] }
 0x6d7   :  { %8784 = vmatprep.mubr.msk.f32.mxu0 %vm376_vm1, %v10688_v63  ;;  %v14311_v63 = vld [vmem:[#allocation20_spill] sm:$0xff] }
 0x6f9   :  { %v8484_v44 = vpop.f32.mrb[72].mxu1 }
 0x6fa   :  { %v9170_v47 = vadd.f32 %v8484_v44, %v14257_v35  ;;  %v4126_v50 = vpop.f32.mrb[73].mxu1  ;;  %v14312_v35 = vld [vmem:[#allocation21_spill] sm:$0xff] }
 0x6fb   :  { %v9171_v54 = vadd.f32 %v4126_v50, %v14308_v5 }
 0x6fc   :  { %v7063_v53 = vmul.f32 -1.442695, %v9170_v47 }
 0x6fd   :  { %v7062_v45 = vmul.f32 -1.442695, %v9171_v54  ;;  %v8487_v52 = vpop.f32.mrb[74].mxu1 }
 0x6fe   :  { %10174 = vpow2.f32 %v7063_v53  ;;  %v9172_v16 = vadd.f32 %v8487_v52, %v14309_v61  ;;  %v4136_v24 = vpop.f32.mrb[75].mxu1  ;;  %v14313_v53 = vld [vmem:[#allocation24_spill] sm:$0xff] }
 0x6ff   :  { %10176 = vpow2.f32 %v7062_v45  ;;  %v9173_v10 = vadd.f32 %v4136_v24, %v14310_v25  ;;  %v14314_v45 = vld [vmem:[#allocation25_spill] sm:$0xff] }
 0x700   :  { %v7065_v56 = vmul.f32 -1.442695, %v9172_v16 }
 0x701   :  { %v7064_v59 = vmul.f32 -1.442695, %v9173_v10  ;;  %v8490_v22 = vpop.f32.mrb[76].mxu1 }
 0x702   :  { %10178 = vpow2.f32 %v7065_v56  ;;  %v9174_v57 = vadd.f32 %v8490_v22, %v14311_v63  ;;  %v4146_v44 = vpop.f32.mrb[77].mxu1 }
 0x703   :  { %10180 = vpow2.f32 %v7064_v59  ;;  %v9175_v50 = vadd.f32 %v4146_v44, %v14312_v35  ;;  %v14315_v59 = vld [vmem:[#allocation26_spill] sm:$0xff] }
 0x704   :  { %v7067_v47 = vmul.f32 -1.442695, %v9174_v57 }
 0x705   :  { %v7066_v54 = vmul.f32 -1.442695, %v9175_v50  ;;  %v8493_v5 = vpop.f32.mrb[78].mxu1 }
 0x706   :  { %10182 = vpow2.f32 %v7067_v47  ;;  %v9176_v52 = vadd.f32 %v8493_v5, %v14313_v53  ;;  %v4156_v61 = vpop.f32.mrb[79].mxu1 }
 0x707   :  { %10184 = vpow2.f32 %v7066_v54  ;;  %v9177_v24 = vadd.f32 %v4156_v61, %v14314_v45  ;;  %v14316_v54 = vld [vmem:[#allocation27_spill] sm:$0xff] }
 0x708   :  { %v10175_v16 = vpop.eup %10174  ;;  %v7069_v10 = vmul.f32 -1.442695, %v9176_v52  ;;  %v14317_v52 = vld [vmem:[#allocation30_spill] sm:$0xff] }
 0x709   :  { %v10177_v25 = vpop.eup %10176  ;;  %v4230_v56 = vadd.f32 1.0, %v10175_v16  ;;  %v7068_v29 = vmul.f32 -1.442695, %v9177_v24  ;;  %v8496_v22 = vpop.f32.mrb[80].mxu1 }
 0x70a   :  { %v4229_v63 = vadd.f32 1.0, %v10177_v25  ;;  %10186 = vpow2.f32 %v7069_v10  ;;  %v9178_v44 = vadd.f32 %v8496_v22, %v14315_v59  ;;  %v4166_v57 = vpop.f32.mrb[81].mxu1 }
 0x70b   :  { %10188 = vrcp.f32 %v4230_v56  ;;  %v9179_v53 = vadd.f32 %v4166_v57, %v14316_v54  ;;  %v14318_v56 = vld [vmem:[#allocation31_spill] sm:$0xff] }
 0x70c   :  { %v10179_v50 = vpop.eup %10178  ;;  %10190 = vrcp.f32 %v4229_v63 }
 0x70d   :  { %v10181_v47 = vpop.eup %10180  ;;  %v4232_v5 = vadd.f32 1.0, %v10179_v50  ;;  %10192 = vpow2.f32 %v7068_v29  ;;  %v8499_v61 = vpop.f32.mrb[82].mxu1  ;;  %v14319_v29 = vld [vmem:[#allocation28_spill] sm:$0xff] }
 0x70e   :  { %v4231_v45 = vadd.f32 1.0, %v10181_v47  ;;  %10194 = vtanh.f32 %v9178_v44  ;;  %v9180_v16 = vadd.f32 %v8499_v61, %v14317_v52  ;;  %v4176_v24 = vpop.f32.mrb[83].mxu1  ;;  %v14320_v47 = vld [vmem:[#allocation29_spill] sm:$0xff] }
 0x70f   :  { %10196 = vrcp.f32 %v4232_v5  ;;  %v9181_v59 = vadd.f32 %v4176_v24, %v14318_v56  ;;  %v14321_v24 = vld [vmem:[#allocation32_spill] sm:$0xff] }
 0x710   :  { %v10183_v25 = vpop.eup %10182  ;;  %10198 = vrcp.f32 %v4231_v45 }
 0x711   :  { %v10185_v10 = vpop.eup %10184  ;;  %v4234_v22 = vadd.f32 1.0, %v10183_v25  ;;  %10200 = vtanh.f32 %v9179_v53  ;;  %v8502_v63 = vpop.f32.mrb[84].mxu1 }
 0x712   :  { %v4233_v35 = vadd.f32 1.0, %v10185_v10  ;;  %10202 = vtanh.f32 %v9180_v16  ;;  %v9182_v50 = vadd.f32 %v8502_v63, %v14319_v29  ;;  %v4186_v57 = vpop.f32.mrb[85].mxu1 }
 0x713   :  { %10204 = vrcp.f32 %v4234_v22  ;;  %v9183_v44 = vadd.f32 %v4186_v57, %v14320_v47 }
 0x714   :  { %v10187_v54 = vpop.eup %10186  ;;  %10206 = vrcp.f32 %v4233_v35  ;;  %v7071_v61 = vmul.f32 -1.442695, %v9182_v50 }
 0x715   :  { %v10189_v5 = vpop.eup %10188  ;;  %v4236_v52 = vadd.f32 1.0, %v10187_v54  ;;  %10208 = vtanh.f32 %v9181_v59  ;;  %v7070_v45 = vmul.f32 -1.442695, %v9183_v44  ;;  %v8505_v25 = vpop.f32.mrb[86].mxu1 }
 0x716   :  { %v10191_v53 = vpop.eup %10190  ;;  %10210 = vpow2.f32 %v7071_v61  ;;  %v9184_v56 = vadd.f32 %v8505_v25, %v14321_v24  ;;  %v4196_v10 = vpop.f32.mrb[87].mxu1 }
 0x717   :  { %v10193_v16 = vpop.eup %10192  ;;  %10212 = vrcp.f32 %v4236_v52  ;;  %v9185_v63 = vadd.f32 %v4196_v10, %v14272_v11  ;;  %v113_v11 = vsel %vm34_vm3, %v12817_v21, inf }
 0x718   :  { %v10195_v22 = vpop.eup %10194  ;;  %v4235_v29 = vadd.f32 1.0, %v10193_v16  ;;  %10214 = vpow2.f32 %v7070_v45  ;;  %v7073_v57 = vmul.f32 -1.442695, %v9184_v56 }
 0x719   :  { %v10197_v35 = vpop.eup %10196  ;;  %v4286_v50 = vmul.f32 %v10195_v22, %v10189_v5  ;;  %v7072_v47 = vmul.f32 -1.442695, %v9185_v63 }
 0x71a   :  { %v10199_v54 = vpop.eup %10198  ;;  %10216 = vrcp.f32 %v4235_v29 }
 0x71b   :  { %v10201_v59 = vpop.eup %10200  ;;  %10218 = vpow2.f32 %v7073_v57 }
 0x71c   :  { %v10203_v44 = vpop.eup %10202  ;;  %v4285_v61 = vmul.f32 %v10201_v59, %v10191_v53  ;;  %10220 = vpow2.f32 %v7072_v47 }
 0x71d   :  { %v10205_v25 = vpop.eup %10204  ;;  %v4288_v24 = vmul.f32 %v10203_v44, %v10197_v35  ;;  %v13161_v35 = vld [vmem:[%s13931_s0 + $0x4] sm:$0xf] }
 0x71e   :  { %v10207_v15 = vpop.eup %10206  ;;  %v4282_v52 = vmul.f32 %v10205_v25, %v12774_v33 }
 0x71f   :  { %v10209_v10 = vpop.eup %10208  ;;  %v4281_v16 = vmul.f32 %v10207_v15, %v12776_v60  ;;  %v13154_v60 = vld [vmem:[%s13931_s0] sm:$0xf] }
 0x720   :  { %v10211_v45 = vpop.eup %10210  ;;  %v13144_v56 = vadd.f32 %v4286_v50, %v4282_v52  ;;  %v4287_v5 = vmul.f32 %v10209_v10, %v10199_v54  ;;  %v35_v15 = vsel %vm34_vm3, %v13154_v60, 0.0 }
 0x721   :  { %v10213_v63 = vpop.eup %10212  ;;  %v13146_v29 = vadd.f32 %v4285_v61, %v4281_v16  ;;  %v4270_v22 = vadd.f32 1.0, %v10211_v45  ;;  %v13174_v16 = vld [vmem:[%s13931_s0 + $0x8] sm:$0xf] }
 0x722   :  { %14322 = vst [vmem:[#allocation41_spill] sm:$0xff] %v13144_v56  ;;  %v10215_v57 = vpop.eup %10214  ;;  %v4284_v47 = vmul.f32 %v10213_v63, %v12781_v27  ;;  %10222 = vtanh.f32 %v13144_v56  ;;  %v36_v27 = vsel %vm34_vm3, %v13161_v35, 0.0 }
 0x723   :  { %14323 = vst [vmem:[#allocation42_spill] sm:$0xff] %v13146_v29  ;;  %10224 = vtanh.f32 %v13146_v29  ;;  %v4269_v33 = vadd.f32 1.0, %v10215_v57  ;;  %v37_v25 = vadd.f32 %v36_v27, %v35_v15  ;;  %v13189_v27 = vld [vmem:[%s13931_s0 + $0x10] sm:$0xf]  ;;  %v10699_v29 = vld [vmem:[%s13932_s1 + $0x28] sm:$0xff] }
 0x724   :  { %v10217_v53 = vpop.eup %10216  ;;  %v13165_v50 = vadd.f32 %v4288_v24, %v4284_v47  ;;  %10226 = vrcp.f32 %v4270_v22  ;;  %v38_v24 = vsel %vm34_vm3, %v13174_v16, 0.0 }
 0x725   :  { %v10219_v54 = vpop.eup %10218  ;;  %v4283_v59 = vmul.f32 %v10217_v53, %v12785_v28  ;;  %10228 = vrcp.f32 %v4269_v33  ;;  %v39_v28 = vadd.f32 %v38_v24, %v37_v25 }
 0x726   :  { %14324 = vst [vmem:[#allocation43_spill] sm:$0xff] %v13165_v50  ;;  %v10221_v44 = vpop.eup %10220  ;;  %10230 = vtanh.f32 %v13165_v50  ;;  %v4272_v61 = vadd.f32 1.0, %v10219_v54  ;;  %v42_v54 = vsel %vm34_vm3, %v13189_v27, 0.0 }
 0x727   :  { %v13169_v52 = vadd.f32 %v4287_v5, %v4283_v59  ;;  %v4271_v10 = vadd.f32 1.0, %v10221_v44  ;;  %v13182_v5 = vld [vmem:[%s13931_s0 + $0xc] sm:$0xf]  ;;  %v13196_v44 = vld [vmem:[%s13931_s0 + $0x1c] sm:$0xf] }
 0x728   :  { %10232 = vrcp.f32 %v4272_v61  ;;  %v40_v63 = vsel %vm34_vm3, %v13182_v5, 0.0  ;;  %8782 = vmatprep.subr.msk.mxu0 %vm425_vm0, %v13196_v44 }
 0x729   :  { %14325 = vst [vmem:[#allocation44_spill] sm:$0xff] %v13169_v52  ;;  %10234 = vtanh.f32 %v13169_v52  ;;  %v41_v33 = vadd.f32 %v40_v63, %v39_v28  ;;  %8783 = vmatpush3.msk.msra.mxu0 %vm425_vm0, %v13196_v44  ;;  %v13205_v63 = vld [vmem:[%s13931_s0 + $0x14] sm:$0xf]  ;;  %v93_v52 = vsel %vm34_vm3, %v13182_v5, -inf }
 0x72a   :  { %10236 = vrcp.f32 %v4271_v10 }
 0x72b   :  { %v43_v24 = vadd.f32 %v42_v54, %v41_v33  ;;  %v10696_v33 = vld [vmem:[%s13932_s1 + $0x10] sm:$0xff]  ;;  %v46_v54 = vsel %vm34_vm3, %v12817_v21, 0.0 }
 0x72c   :  { %v10223_v45 = vpop.eup %10222 }
 0x72d   :  { %v10225_v22 = vpop.eup %10224 }
 0x72e   :  { %v10227_v57 = vpop.eup %10226 }
 0x72f   :  { %v10229_v47 = vpop.eup %10228  ;;  %v4298_v53 = vmul.f32 %v10227_v57, %v10223_v45  ;;  %v10695_v57 = vld [vmem:[%s13932_s1 + $0x8] sm:$0xff] }
 0x730   :  { %v10231_v15 = vpop.eup %10230  ;;  %v4297_v59 = vmul.f32 %v10229_v47, %v10225_v22  ;;  %v44_v22 = vsel %vm34_vm3, %v13205_v63, 0.0  ;;  %8785 = vmatmul.mubr.msk.f32.vlgmr.msra.gmra.mrb[112].mxu0 %vm376_vm1, %v10695_v57  ;;  %v106_v57 = vsel %vm34_vm3, %v13161_v35, inf }
 0x731   :  { %8787 = vmatprep.mubr.msk.f32.mxu0 %vm376_vm1, %v10696_v33  ;;  %v111_v33 = vsel %vm34_vm3, %v13205_v63, inf }
 0x732   :  { %v10233_v61 = vpop.eup %10232  ;;  %v8976_v25 = vpack.c.bf16 %v4298_v53, %v4297_v59  ;;  %v45_v53 = vadd.f32 %v44_v22, %v43_v24  ;;  %v10697_v59 = vld [vmem:[%s13932_s1 + $0x18] sm:$0xff]  ;;  %v91_v24 = vsel %vm34_vm3, %v13161_v35, -inf  ;;  %v96_v22 = vsel %vm34_vm3, %v13205_v63, -inf }
 0x733   :  { %v10235_v10 = vpop.eup %10234  ;;  %v4300_v28 = vmul.f32 %v10233_v61, %v10231_v15  ;;  %v90_v61 = vsel %vm34_vm3, %v13154_v60, -inf }
 0x734   :  { %v10237_v45 = vpop.eup %10236  ;;  %8977 = vmatprep.subr.bf16.mxu1 %v8976_v25  ;;  %8788 = vmatmul.mubr.msk.f32.gmra.mrb[114].mxu0 %vm376_vm1, %v10697_v59  ;;  %v47_v59 = vadd.f32 %v46_v54, %v45_v53  ;;  %v97_v53 = vmax.f32 %v91_v24, %v96_v22  ;;  %v98_v54 = vsel %vm34_vm3, %v12817_v21, -inf  ;;  %v48_v24 = vsel %vm34_vm3, %v13196_v44, 0.0 }
 0x735   :  { %8979 = vmatpush3.bf16.msra.mxu1 %v8976_v25  ;;  %v4299_v47 = vmul.f32 %v10237_v45, %v10235_v10  ;;  %v94_v25 = vsel %vm34_vm3, %v13189_v27, -inf  ;;  %v10698_v10 = vld [vmem:[%s13932_s1 + $0x20] sm:$0xff]  ;;  %v109_v45 = vsel %vm34_vm3, %v13189_v27, inf }
 0x736   :  { %8790 = vmatprep.mubr.msk.f32.mxu0 %vm376_vm1, %v10698_v10  ;;  %v107_v10 = vsel %vm34_vm3, %v13174_v16, inf  ;;  %v95_v50 = vmax.f32 %v90_v61, %v94_v25  ;;  %v112_v61 = vmin.f32 %v106_v57, %v111_v33  ;;  %v13275_v25 = vld [vmem:[%s13937_s5 + $0x10] sm:$0xff] }
 0x737   :  { %v8980_v15 = vpack.c.bf16 %v4300_v28, %v4299_v47  ;;  %v105_v28 = vsel %vm34_vm3, %v13154_v60, inf  ;;  %v92_v47 = vsel %vm34_vm3, %v13174_v16, -inf  ;;  %14327 = vst [vmem:[#allocation46_spill] sm:$0xff] %v13275_v25  ;;  %v114_v57 = vmin.f32 %v107_v10, %v113_v11  ;;  %v10705_v11 = vld [vmem:[%s13932_s1 + $0x40] sm:$0xff] }
 0x738   :  { %8791 = vmatmul.mubr.msk.f32.gmra.mrb[116].mxu0 %vm376_vm1, %v10699_v29  ;;  %v110_v56 = vmin.f32 %v105_v28, %v109_v45  ;;  %v10701_v29 = vld [vmem:[%s13932_s1 + $0x30] sm:$0xff]  ;;  %v100_v28 = vsel %vm34_vm3, %v13196_v44, -inf  ;;  %v115_v45 = vsel %vm34_vm3, %v13196_v44, inf  ;;  %v99_v22 = vmax.f32 %v92_v47, %v98_v54 }
 0x739   :  { %8981 = vmatprep.subr.bf16.mxu1 %v8980_v15  ;;  %8793 = vmatprep.mubr.msk.f32.mxu0 %vm376_vm1, %v10701_v29  ;;  %v101_v33 = vmax.f32 %v93_v52, %v100_v28  ;;  %v102_v52 = vmax.f32 %v95_v50, %v97_v53 }
 0x73a   :  { %8983 = vmatpush3.bf16.msra.mxu1 %v8980_v15  ;;  %v108_v15 = vsel %vm34_vm3, %v13182_v5, inf  ;;  %v117_v47 = vmin.f32 %v110_v56, %v112_v61 }
 0x73b   :  { %8993 = vmatprep.subr.bf16.mxu1 %v13009_v2  ;;  %v116_v29 = vmin.f32 %v108_v15, %v115_v45  ;;  %v103_v54 = vmax.f32 %v99_v22, %v101_v33 }
 0x73d   :  { %8515 = vmatmul.mubr.msk.f32.vlgmr.msra.gmra.mrb[88].mxu1 %vm574_vm2, %v13263_v40  ;;  %v13293_v40 = vld [vmem:[%s13937_s5 + $0x18] sm:$0xff]  ;;  %v118_v61 = vmin.f32 %v114_v57, %v116_v29  ;;  %v10710_v57 = vld [vmem:[%s13932_s1 + $0x50] sm:$0xff] }
 0x73e   :  { %8995 = vmatpush3.bf16.msra.mxu1 %v13009_v2  ;;  %8517 = vmatprep.mubr.msk.f32.mxu1 %vm574_vm2, %v13275_v25  ;;  %v49_v2 = vadd.f32 %v48_v24, %v47_v59  ;;  %v10703_v25 = vld [vmem:[%s13932_s1 + $0x38] sm:$0xff]  ;;  %v13307_v59 = vld [vmem:[%s13937_s5 + $0x20] sm:$0xff] }
 0x73f   :  { %8997 = vmatprep.subr.bf16.mxu1 %v13013_v1  ;;  %8794 = vmatmul.mubr.msk.f32.gmra.mrb[118].mxu0 %vm376_vm1, %v10703_v25  ;;  %v13337_v25 = vld [vmem:[%s13937_s5 + $0x30] sm:$0xff] }
 0x740   :  { %v13297_v38 = vmul.f32 0.125, %v49_v2  ;;  %8796 = vmatprep.mubr.msk.f32.mxu0 %vm376_vm1, %v10705_v11  ;;  %v13359_v11 = vld [vmem:[%s13937_s5 + $0x38] sm:$0xff] }
 0x741   :  { %8518 = vmatmul.mubr.msk.f32.gmra.mrb[90].mxu1 %vm574_vm2, %v13293_v40 }
 0x742   :  { %8999 = vmatpush3.bf16.msra.mxu1 %v13013_v1  ;;  %8520 = vmatprep.mubr.msk.f32.mxu1 %vm574_vm2, %v13307_v59  ;;  %v51_v10 = vsub.f32 %v13154_v60, %v13297_v38  ;;  %v52_v15 = vsub.f32 %v13161_v35, %v13297_v38  ;;  %v53_v50 = vsub.f32 %v13174_v16, %v13297_v38  ;;  %v10707_v60 = vld [vmem:[%s13932_s1 + $0x48] sm:$0xff] }
 0x743   :  { %v54_v1 = vsub.f32 %v13182_v5, %v13297_v38  ;;  %v55_v56 = vsub.f32 %v13189_v27, %v13297_v38  ;;  %v56_v53 = vsub.f32 %v13205_v63, %v13297_v38  ;;  %8797 = vmatmul.mubr.msk.f32.gmra.mrb[120].mxu0 %vm376_vm1, %v10707_v60  ;;  %v13330_v35 = vld [vmem:[%s13937_s5 + $0x28] sm:$0xff]  ;;  %v57_v24 = vsub.f32 %v12817_v21, %v13297_v38  ;;  %v10711_v21 = vld [vmem:[%s13932_s1 + $0x58] sm:$0xff] }
 0x744   :  { %v59_v16 = vmul.f32 %v51_v10, %v51_v10  ;;  %v60_v5 = vmul.f32 %v52_v15, %v52_v15  ;;  %v61_v27 = vmul.f32 %v53_v50, %v53_v50  ;;  %8799 = vmatprep.mubr.msk.f32.mxu0 %vm376_vm1, %v10710_v57  ;;  %v58_v33 = vsub.f32 %v13196_v44, %v13297_v38  ;;  %v10719_v57 = vld [vmem:[%s13932_s1 + $0x78] sm:$0xff] }
 0x745   :  { %8521 = vmatmul.mubr.msk.f32.gmra.mrb[92].mxu1 %vm574_vm2, %v13330_v35  ;;  %v62_v63 = vmul.f32 %v54_v1, %v54_v1  ;;  %v63_v28 = vmul.f32 %v55_v56, %v55_v56  ;;  %v64_v10 = vmul.f32 %v56_v53, %v56_v53  ;;  %v104_v50 = vmax.f32 %v102_v52, %v103_v54  ;;  %v10713_v1 = vld [vmem:[%s13932_s1 + $0x60] sm:$0xff]  ;;  %v10715_v54 = vld [vmem:[%s13932_s1 + $0x68] sm:$0xff] }
 0x746   :  { %8523 = vmatprep.mubr.msk.f32.mxu1 %vm574_vm2, %v13337_v25  ;;  %v67_v45 = vsel %vm34_vm3, %v59_v16, 0.0  ;;  %v68_v2 = vsel %vm34_vm3, %v60_v5, 0.0  ;;  %v70_v22 = vsel %vm34_vm3, %v61_v27, 0.0  ;;  %v119_v44 = vmin.f32 %v117_v47, %v118_v61  ;;  %v13371_v56 = vld [vmem:[%s13937_s5 + $0x40] sm:$0xff]  ;;  %v13383_v61 = vld [vmem:[%s13937_s5 + $0x48] sm:$0xff] }
 0x747   :  { %v69_v29 = vadd.f32 %v68_v2, %v67_v45  ;;  %8800 = vmatmul.mubr.msk.f32.gmra.mrb[122].mxu0 %vm376_vm1, %v10711_v21  ;;  %v72_v15 = vsel %vm34_vm3, %v62_v63, 0.0  ;;  %v65_v53 = vmul.f32 %v57_v24, %v57_v24  ;;  %v74_v16 = vsel %vm34_vm3, %v63_v28, 0.0  ;;  %v10717_v24 = vld [vmem:[%s13932_s1 + $0x70] sm:$0xff]  ;;  %v10721_v21 = vld [vmem:[%s13934_s2] sm:$0xff] }
 0x748   :  { %8802 = vmatprep.mubr.msk.f32.mxu0 %vm376_vm1, %v10713_v1  ;;  %v6630_v52 = vrot.slane %v119_v44, 4  ;;  %v66_v5 = vmul.f32 %v58_v33, %v58_v33  ;;  %v76_v27 = vsel %vm34_vm3, %v64_v10, 0.0  ;;  %v13396_v28 = vld [vmem:[%s13937_s5 + $0x50] sm:$0xff]  ;;  %v13412_v33 = vld [vmem:[%s13937_s5 + $0x58] sm:$0xff]  ;;  %v13424_v10 = vld [vmem:[%s13937_s5 + $0x60] sm:$0xff] }
 0x749   :  { %8524 = vmatmul.mubr.msk.f32.gmra.mrb[94].mxu1 %vm574_vm2, %v13359_v11  ;;  %v71_v60 = vadd.f32 %v70_v22, %v69_v29  ;;  %v78_v2 = vsel %vm34_vm3, %v65_v53, 0.0  ;;  %v13431_v44 = vld [vmem:[%s13937_s5 + $0x68] sm:$0xff]  ;;  %v13438_v1 = vld [vmem:[%s13937_s5 + $0x70] sm:$0xff]  ;;  %v13445_v53 = vld [vmem:[%s13937_s5 + $0x78] sm:$0xff] }
 0x74a   :  { %8526 = vmatprep.mubr.msk.f32.mxu1 %vm574_vm2, %v13371_v56  ;;  %v6633_v63 = vsel %vm425_vm0, %v104_v50, %v6630_v52  ;;  %v80_v29 = vsel %vm34_vm3, %v66_v5, 0.0 }
 0x74b   :  { %v73_v47 = vadd.f32 %v72_v15, %v71_v60  ;;  %8803 = vmatmul.mubr.msk.f32.gmra.mrb[124].mxu0 %vm376_vm1, %v10715_v54  ;;  %6640 = vst.msk [vmem:[%s13938_s7 + $0x28] sm:$0xff] %vm6634_vm4, %v6633_v63 }
 0x74c   :  { %8805 = vmatprep.mubr.msk.f32.mxu0 %vm376_vm1, %v10717_v24 }
 0x74d   :  { %8527 = vmatmul.mubr.msk.f32.gmra.mrb[96].mxu1 %vm574_vm2, %v13383_v61  ;;  %v75_v45 = vadd.f32 %v74_v16, %v73_v47  ;;  %v13452_v16 = vld [vmem:[%s13936_s4] sm:$0xff] }
 0x74e   :  { %8529 = vmatprep.mubr.msk.f32.mxu1 %vm574_vm2, %v13396_v28 }
 0x74f   :  { %v77_v22 = vadd.f32 %v76_v27, %v75_v45  ;;  %8806 = vmatmul.mubr.msk.f32.gmra.mrb[126].mxu0 %vm376_vm1, %v10719_v57 }
 0x750   :  { %8816 = vmatprep.mubr.msk.f32.mxu0 %vm574_vm2, %v10721_v21 }
 0x751   :  { %8530 = vmatmul.mubr.msk.f32.gmra.mrb[98].mxu1 %vm574_vm2, %v13412_v33  ;;  %v79_v15 = vadd.f32 %v78_v2, %v77_v22 }
 0x752   :  { %8532 = vmatprep.mubr.msk.f32.mxu1 %vm574_vm2, %v13424_v10 }
 0x753   :  { %v81_v50 = vadd.f32 %v80_v29, %v79_v15 }
 0x755   :  { %8533 = vmatmul.mubr.msk.f32.gmra.mrb[100].mxu1 %vm574_vm2, %v13431_v44  ;;  %v82_v60 = vmul.f32 0.125, %v81_v50 }
 0x756   :  { %8535 = vmatprep.mubr.msk.f32.mxu1 %vm574_vm2, %v13438_v1 }
 0x757   :  { %10238 = vrsqrt.f32 %v82_v60  ;;  %vm85_vm5 = vcmp.eq.f32.partialorder %v82_v60, inf  ;;  %v88_v47 = vand.u32 2147483648, %v82_v60  ;;  %vm87_vm6 = vcmp.eq.f32.partialorder %v82_v60, 0.0 }
 0x759   :  { %8536 = vmatmul.mubr.msk.f32.gmra.mrb[102].mxu1 %vm574_vm2, %v13445_v53 }
 0x75a   :  { %8604 = vmatprep.mubr.msk.f32.mxu1 %vm574_vm2, %v13452_v16 }
 0x75d   :  { %8605 = vmatmul.mubr.msk.f32.vlgmr.msra.gmra.mrb[88].mxu1 %vm574_vm2, %v12846_v46 }
 0x75e   :  { %8607 = vmatprep.mubr.msk.f32.mxu1 %vm574_vm2, %v12855_v19 }
 0x761   :  { %8608 = vmatmul.mubr.msk.f32.gmra.mrb[90].mxu1 %vm574_vm2, %v12864_v32  ;;  %v10239_v52 = vpop.eup %10238 }
 0x762   :  { %8610 = vmatprep.mubr.msk.f32.mxu1 %vm574_vm2, %v12873_v13  ;;  %v84_v54 = vmul.f32 %v10239_v52, %v82_v60 }
 0x764   :  { %v86_v5 = vsel %vm85_vm5, %v82_v60, %v84_v54 }
 0x765   :  { %8611 = vmatmul.mubr.msk.f32.gmra.mrb[92].mxu1 %vm574_vm2, %v12882_v37  ;;  %v89_v46 = vsel %vm87_vm6, %v88_v47, %v86_v5 }
 0x766   :  { %8613 = vmatprep.mubr.msk.f32.mxu1 %vm574_vm2, %v12891_v7  ;;  %v6627_v19 = vrot.slane %v89_v46, 4 }
 0x768   :  { %v6632_v32 = vsel %vm425_vm0, %v13297_v38, %v6627_v19 }
 0x769   :  { %8614 = vmatmul.mubr.msk.f32.gmra.mrb[94].mxu1 %vm574_vm2, %v12900_v3  ;;  %6639 = vst.msk [vmem:[%s13938_s7 + $0x20] sm:$0xff] %vm6634_vm4, %v6632_v32 }
 0x76a   :  { %8616 = vmatprep.mubr.msk.f32.mxu1 %vm574_vm2, %v12909_v6 }
 0x76d   :  { %8617 = vmatmul.mubr.msk.f32.gmra.mrb[96].mxu1 %vm574_vm2, %v12918_v4 }
 0x76e   :  { %8619 = vmatprep.mubr.msk.f32.mxu1 %vm574_vm2, %v12927_v12 }
 0x771   :  { %8620 = vmatmul.mubr.msk.f32.gmra.mrb[98].mxu1 %vm574_vm2, %v12936_v26 }
 0x772   :  { %8622 = vmatprep.mubr.msk.f32.mxu1 %vm574_vm2, %v12945_v23 }
 0x775   :  { %8623 = vmatmul.mubr.msk.f32.gmra.mrb[100].mxu1 %vm574_vm2, %v12952_v49 }
 0x776   :  { %8625 = vmatprep.mubr.msk.f32.mxu1 %vm574_vm2, %v12959_v55 }
 0x779   :  { %8626 = vmatmul.mubr.msk.f32.gmra.mrb[102].mxu1 %vm574_vm2, %v12966_v36 }
 0x77a   :  { %8636 = vmatprep.mubr.msk.f32.mxu1 %vm574_vm2, %v12973_v0 }
 0x78d   :  { %v8696_v13 = vpop.f32.mrb[96].mxu0 }
 0x78e   :  { %v9250_v37 = vadd.f32 %v8696_v13, %v14195_v62  ;;  %v5435_v7 = vpop.f32.mrb[97].mxu0 }
 0x78f   :  { %v9251_v3 = vadd.f32 %v5435_v7, %v14280_v41 }
 0x790   :  { %v7213_v6 = vmul.f32 -1.442695, %v9250_v37 }
 0x791   :  { %v7212_v4 = vmul.f32 -1.442695, %v9251_v3  ;;  %v8699_v12 = vpop.f32.mrb[98].mxu0 }
 0x792   :  { %10240 = vpow2.f32 %v7213_v6  ;;  %v9252_v26 = vadd.f32 %v8699_v12, %v14197_v42  ;;  %v5445_v23 = vpop.f32.mrb[99].mxu0 }
 0x793   :  { %10242 = vpow2.f32 %v7212_v4  ;;  %v9253_v49 = vadd.f32 %v5445_v23, %v14281_v34 }
 0x794   :  { %v7215_v55 = vmul.f32 -1.442695, %v9252_v26 }
 0x795   :  { %v7214_v36 = vmul.f32 -1.442695, %v9253_v49  ;;  %v8702_v38 = vpop.f32.mrb[100].mxu0 }
 0x796   :  { %10244 = vpow2.f32 %v7215_v55  ;;  %v9254_v0 = vadd.f32 %v8702_v38, %v14282_v51  ;;  %v5455_v27 = vpop.f32.mrb[101].mxu0 }
 0x797   :  { %10246 = vpow2.f32 %v7214_v36  ;;  %v9255_v63 = vadd.f32 %v5455_v27, %v14200_v17 }
 0x798   :  { %v7217_v24 = vmul.f32 -1.442695, %v9254_v0 }
 0x799   :  { %v7216_v45 = vmul.f32 -1.442695, %v9255_v63  ;;  %v8705_v2 = vpop.f32.mrb[102].mxu0 }
 0x79a   :  { %10248 = vpow2.f32 %v7217_v24  ;;  %v9256_v22 = vadd.f32 %v8705_v2, %v14201_v30  ;;  %v5465_v57 = vpop.f32.mrb[103].mxu0 }
 0x79b   :  { %10250 = vpow2.f32 %v7216_v45  ;;  %v9257_v29 = vadd.f32 %v5465_v57, %v14202_v14 }
 0x79c   :  { %v10241_v21 = vpop.eup %10240  ;;  %v7219_v15 = vmul.f32 -1.442695, %v9256_v22 }
 0x79d   :  { %v10243_v50 = vpop.eup %10242  ;;  %v5539_v60 = vadd.f32 1.0, %v10241_v21  ;;  %v7218_v52 = vmul.f32 -1.442695, %v9257_v29  ;;  %v8708_v47 = vpop.f32.mrb[104].mxu0 }
 0x79e   :  { %v5538_v54 = vadd.f32 1.0, %v10243_v50  ;;  %10252 = vpow2.f32 %v7219_v15  ;;  %v9258_v5 = vadd.f32 %v8708_v47, %v14283_v20  ;;  %v5475_v46 = vpop.f32.mrb[105].mxu0 }
 0x79f   :  { %10254 = vrcp.f32 %v5539_v60  ;;  %v9259_v37 = vadd.f32 %v5475_v46, %v14284_v39 }
 0x7a0   :  { %v10245_v19 = vpop.eup %10244  ;;  %10256 = vrcp.f32 %v5538_v54 }
 0x7a1   :  { %v10247_v32 = vpop.eup %10246  ;;  %v5541_v13 = vadd.f32 1.0, %v10245_v19  ;;  %10258 = vpow2.f32 %v7218_v52  ;;  %v8711_v7 = vpop.f32.mrb[106].mxu0 }
 0x7a2   :  { %v5540_v3 = vadd.f32 1.0, %v10247_v32  ;;  %10260 = vtanh.f32 %v9258_v5  ;;  %v9260_v6 = vadd.f32 %v8711_v7, %v14285_v9  ;;  %v5485_v4 = vpop.f32.mrb[107].mxu0 }
 0x7a3   :  { %10262 = vrcp.f32 %v5541_v13  ;;  %v9261_v49 = vadd.f32 %v5485_v4, %v14286_v58 }
 0x7a4   :  { %v10249_v12 = vpop.eup %10248  ;;  %10264 = vrcp.f32 %v5540_v3 }
 0x7a5   :  { %v10251_v26 = vpop.eup %10250  ;;  %v5543_v23 = vadd.f32 1.0, %v10249_v12  ;;  %10266 = vtanh.f32 %v9259_v37  ;;  %v8714_v55 = vpop.f32.mrb[108].mxu0 }
 0x7a6   :  { %v5542_v36 = vadd.f32 1.0, %v10251_v26  ;;  %10268 = vtanh.f32 %v9260_v6  ;;  %v9262_v38 = vadd.f32 %v8714_v55, %v14287_v48  ;;  %v5495_v0 = vpop.f32.mrb[109].mxu0 }
 0x7a7   :  { %10270 = vrcp.f32 %v5543_v23  ;;  %v9263_v27 = vadd.f32 %v5495_v0, %v14288_v18  ;;  %v14328_v23 = vld [vmem:[#allocation53_spill] sm:$0xff] }
 0x7a8   :  { %v10253_v63 = vpop.eup %10252  ;;  %10272 = vrcp.f32 %v5542_v36  ;;  %v7221_v24 = vmul.f32 -1.442695, %v9262_v38 }
 0x7a9   :  { %v10255_v45 = vpop.eup %10254  ;;  %v5545_v2 = vadd.f32 1.0, %v10253_v63  ;;  %10274 = vtanh.f32 %v9261_v49  ;;  %v7220_v22 = vmul.f32 -1.442695, %v9263_v27  ;;  %v8717_v57 = vpop.f32.mrb[110].mxu0 }
 0x7aa   :  { %v10257_v29 = vpop.eup %10256  ;;  %10276 = vpow2.f32 %v7221_v24  ;;  %v9264_v21 = vadd.f32 %v8717_v57, %v14289_v31  ;;  %v5505_v15 = vpop.f32.mrb[111].mxu0 }
 0x7ab   :  { %v10259_v50 = vpop.eup %10258  ;;  %10278 = vrcp.f32 %v5545_v2  ;;  %v9265_v60 = vadd.f32 %v5505_v15, %v14244_v8 }
 0x7ac   :  { %v10261_v52 = vpop.eup %10260  ;;  %v5544_v47 = vadd.f32 1.0, %v10259_v50  ;;  %10280 = vpow2.f32 %v7220_v22  ;;  %v7223_v54 = vmul.f32 -1.442695, %v9264_v21  ;;  %v14330_v21 = vld [vmem:[#allocation5_spill] sm:$0xff] }
 0x7ad   :  { %v10263_v5 = vpop.eup %10262  ;;  %v5595_v46 = vmul.f32 %v10261_v52, %v10255_v45  ;;  %v7222_v19 = vmul.f32 -1.442695, %v9265_v60  ;;  %v14329_v45 = vld [vmem:[#allocation54_spill] sm:$0xff] }
 0x7ae   :  { %v10265_v32 = vpop.eup %10264  ;;  %10282 = vrcp.f32 %v5544_v47 }
 0x7af   :  { %v10267_v13 = vpop.eup %10266  ;;  %10284 = vpow2.f32 %v7223_v54 }
 0x7b0   :  { %v10269_v37 = vpop.eup %10268  ;;  %v5594_v7 = vmul.f32 %v10267_v13, %v10257_v29  ;;  %10286 = vpow2.f32 %v7222_v19 }
 0x7b1   :  { %v10271_v3 = vpop.eup %10270  ;;  %v5597_v6 = vmul.f32 %v10269_v37, %v10263_v5 }
 0x7b2   :  { %v10273_v4 = vpop.eup %10272  ;;  %v5591_v12 = vmul.f32 %v10271_v3, %v12995_v43 }
 0x7b3   :  { %v10275_v26 = vpop.eup %10274  ;;  %v5590_v49 = vmul.f32 %v10273_v4, %v14328_v23 }
 0x7b4   :  { %v10277_v55 = vpop.eup %10276  ;;  %v13512_v36 = vadd.f32 %v5595_v46, %v5591_v12  ;;  %v5596_v38 = vmul.f32 %v10275_v26, %v10265_v32 }
 0x7b5   :  { %v10279_v0 = vpop.eup %10278  ;;  %v13514_v27 = vadd.f32 %v5594_v7, %v5590_v49  ;;  %v5579_v63 = vadd.f32 1.0, %v10277_v55  ;;  %v14331_v49 = vld [vmem:[#allocation6_spill] sm:$0xff] }
 0x7b6   :  { %v10281_v24 = vpop.eup %10280  ;;  %v5593_v2 = vmul.f32 %v10279_v0, %v14329_v45  ;;  %10288 = vtanh.f32 %v13512_v36  ;;  %v14332_v55 = vld [vmem:[#allocation2_spill] sm:$0xff]  ;;  %v14334_v0 = vld [vmem:[#allocation9_spill] sm:$0xff] }
 0x7b7   :  { %10290 = vtanh.f32 %v13514_v27  ;;  %v5578_v22 = vadd.f32 1.0, %v10281_v24  ;;  %v14336_v24 = vld [vmem:[#allocation56_spill] sm:$0xff]  ;;  %v14337_v45 = vld [vmem:[#allocation57_spill] sm:$0xff] }
 0x7b8   :  { %v10283_v43 = vpop.eup %10282  ;;  %v13519_v57 = vadd.f32 %v5597_v6, %v5593_v2  ;;  %10292 = vrcp.f32 %v5579_v63  ;;  %v14335_v63 = vld [vmem:[#allocation55_spill] sm:$0xff]  ;;  %v14338_v2 = vld [vmem:[#allocation17_spill] sm:$0xff] }
 0x7b9   :  { %v10285_v29 = vpop.eup %10284  ;;  %v5592_v15 = vmul.f32 %v10283_v43, %v14330_v21  ;;  %10294 = vrcp.f32 %v5578_v22  ;;  %v14339_v22 = vld [vmem:[#allocation34_spill] sm:$0xff]  ;;  %v14340_v43 = vld [vmem:[#allocation35_spill] sm:$0xff]  ;;  %v14342_v21 = vld [vmem:[#allocation37_spill] sm:$0xff] }
 0x7ba   :  { %v10287_v50 = vpop.eup %10286  ;;  %10296 = vtanh.f32 %v13519_v57  ;;  %v5581_v60 = vadd.f32 1.0, %v10285_v29  ;;  %v14341_v29 = vld [vmem:[#allocation36_spill] sm:$0xff] }
 0x7bb   :  { %v13523_v52 = vadd.f32 %v5596_v38, %v5592_v15  ;;  %v5580_v47 = vadd.f32 1.0, %v10287_v50  ;;  %v14333_v38 = vld [vmem:[#allocation8_spill] sm:$0xff]  ;;  %v14343_v15 = vld [vmem:[#allocation38_spill] sm:$0xff]  ;;  %v14344_v50 = vld [vmem:[#allocation39_spill] sm:$0xff] }
 0x7bc   :  { %10298 = vrcp.f32 %v5581_v60  ;;  %v14345_v60 = vld [vmem:[#allocation40_spill] sm:$0xff] }
 0x7bd   :  { %10300 = vtanh.f32 %v13523_v52 }
 0x7be   :  { %10302 = vrcp.f32 %v5580_v47 }
 0x7c0   :  { %v10289_v54 = vpop.eup %10288 }
 0x7c1   :  { %v10291_v5 = vpop.eup %10290 }
 0x7c2   :  { %v10293_v46 = vpop.eup %10292 }
 0x7c3   :  { %v10295_v19 = vpop.eup %10294  ;;  %v5607_v32 = vmul.f32 %v10293_v46, %v10289_v54  ;;  %v14346_v54 = vld [vmem:[#allocation18_spill] sm:$0xff] }
 0x7c4   :  { %v10297_v13 = vpop.eup %10296  ;;  %v5606_v37 = vmul.f32 %v10295_v19, %v10291_v5  ;;  %v14347_v19 = vld [vmem:[#allocation19_spill] sm:$0xff] }
 0x7c6   :  { %v10299_v7 = vpop.eup %10298  ;;  %v13526_v3 = vpack.c.bf16 %v5607_v32, %v5606_v37 }
 0x7c7   :  { %v10301_v6 = vpop.eup %10300  ;;  %v5609_v4 = vmul.f32 %v10299_v7, %v10297_v13 }
 0x7c8   :  { %v10303_v12 = vpop.eup %10302  ;;  %9033 = vmatprep.subr.bf16.mxu0 %v13526_v3 }
 0x7c9   :  { %9035 = vmatpush3.bf16.msra.mxu0 %v13526_v3  ;;  %v5608_v26 = vmul.f32 %v10303_v12, %v10301_v6  ;;  %v14348_v6 = vld [vmem:[#allocation22_spill] sm:$0xff] }
 0x7cb   :  { %v13530_v23 = vpack.c.bf16 %v5609_v4, %v5608_v26  ;;  %v14349_v26 = vld [vmem:[#allocation23_spill] sm:$0xff] }
 0x7cd   :  { %9037 = vmatprep.subr.bf16.mxu0 %v13530_v23 }
 0x7ce   :  { %9039 = vmatpush3.bf16.msra.mxu0 %v13530_v23 }
 0x7d1   :  { %8817 = vmatmul.mubr.msk.f32.vlgmr.msra.gmra.mrb[112].mxu0 %vm574_vm2, %v14331_v49 }
 0x7d2   :  { %8819 = vmatprep.mubr.msk.f32.mxu0 %vm574_vm2, %v14332_v55 }
 0x7d5   :  { %8820 = vmatmul.mubr.msk.f32.gmra.mrb[114].mxu0 %vm574_vm2, %v14333_v38 }
 0x7d6   :  { %8822 = vmatprep.mubr.msk.f32.mxu0 %vm574_vm2, %v14334_v0 }
 0x7d9   :  { %8823 = vmatmul.mubr.msk.f32.gmra.mrb[116].mxu0 %vm574_vm2, %v14335_v63  ;;  %v14350_v63 = vld [vmem:[#allocation20_spill] sm:$0xff] }
 0x7da   :  { %8825 = vmatprep.mubr.msk.f32.mxu0 %vm574_vm2, %v14336_v24 }
 0x7dd   :  { %8826 = vmatmul.mubr.msk.f32.gmra.mrb[118].mxu0 %vm574_vm2, %v14337_v45 }
 0x7de   :  { %8828 = vmatprep.mubr.msk.f32.mxu0 %vm574_vm2, %v14338_v2  ;;  %v14351_v2 = vld [vmem:[#allocation21_spill] sm:$0xff] }
 0x7e1   :  { %8829 = vmatmul.mubr.msk.f32.gmra.mrb[120].mxu0 %vm574_vm2, %v14339_v22 }
 0x7e2   :  { %8831 = vmatprep.mubr.msk.f32.mxu0 %vm574_vm2, %v14340_v43 }
 0x7e5   :  { %8832 = vmatmul.mubr.msk.f32.gmra.mrb[122].mxu0 %vm574_vm2, %v14341_v29 }
 0x7e6   :  { %8834 = vmatprep.mubr.msk.f32.mxu0 %vm574_vm2, %v14342_v21 }
 0x7e9   :  { %8835 = vmatmul.mubr.msk.f32.gmra.mrb[124].mxu0 %vm574_vm2, %v14343_v15  ;;  %v14352_v15 = vld [vmem:[#allocation24_spill] sm:$0xff] }
 0x7ea   :  { %8837 = vmatprep.mubr.msk.f32.mxu0 %vm574_vm2, %v14344_v50 }
 0x7ed   :  { %8838 = vmatmul.mubr.msk.f32.gmra.mrb[126].mxu0 %vm574_vm2, %v14345_v60 }
 0x830   :  { %v8606_v47 = vpop.f32.mrb[88].mxu1 }
 0x831   :  { %v9202_v5 = vadd.f32 %v8606_v47, %v14346_v54  ;;  %v4901_v46 = vpop.f32.mrb[89].mxu1  ;;  %v14353_v47 = vld [vmem:[#allocation25_spill] sm:$0xff] }
 0x832   :  { %v9203_v32 = vadd.f32 %v4901_v46, %v14347_v19 }
 0x833   :  { %v7152_v13 = vmul.f32 -1.442695, %v9202_v5 }
 0x834   :  { %v7151_v37 = vmul.f32 -1.442695, %v9203_v32  ;;  %v8609_v7 = vpop.f32.mrb[90].mxu1 }
 0x835   :  { %10304 = vpow2.f32 %v7152_v13  ;;  %v9204_v4 = vadd.f32 %v8609_v7, %v14348_v6  ;;  %v4911_v12 = vpop.f32.mrb[91].mxu1 }
 0x836   :  { %10306 = vpow2.f32 %v7151_v37  ;;  %v9205_v49 = vadd.f32 %v4911_v12, %v14349_v26 }
 0x837   :  { %v7154_v55 = vmul.f32 -1.442695, %v9204_v4 }
 0x838   :  { %v7153_v38 = vmul.f32 -1.442695, %v9205_v49  ;;  %v8612_v0 = vpop.f32.mrb[92].mxu1  ;;  %v14354_v49 = vld [vmem:[#allocation26_spill] sm:$0xff] }
 0x839   :  { %10308 = vpow2.f32 %v7154_v55  ;;  %v9206_v24 = vadd.f32 %v8612_v0, %v14350_v63  ;;  %v4921_v45 = vpop.f32.mrb[93].mxu1  ;;  %v14364_v63 = vld [vmem:[#allocation43_spill] sm:$0xff] }
 0x83a   :  { %10310 = vpow2.f32 %v7153_v38  ;;  %v9207_v22 = vadd.f32 %v4921_v45, %v14351_v2 }
 0x83b   :  { %v7156_v43 = vmul.f32 -1.442695, %v9206_v24 }
 0x83c   :  { %v7155_v29 = vmul.f32 -1.442695, %v9207_v22  ;;  %v8615_v21 = vpop.f32.mrb[94].mxu1  ;;  %v14355_v22 = vld [vmem:[#allocation27_spill] sm:$0xff] }
 0x83d   :  { %10312 = vpow2.f32 %v7156_v43  ;;  %v9208_v50 = vadd.f32 %v8615_v21, %v14352_v15  ;;  %v4931_v60 = vpop.f32.mrb[95].mxu1 }
 0x83e   :  { %10314 = vpow2.f32 %v7155_v29  ;;  %v9209_v5 = vadd.f32 %v4931_v60, %v14353_v47 }
 0x83f   :  { %v10305_v46 = vpop.eup %10304  ;;  %v7158_v32 = vmul.f32 -1.442695, %v9208_v50  ;;  %v14356_v50 = vld [vmem:[#allocation30_spill] sm:$0xff] }
 0x840   :  { %v10307_v13 = vpop.eup %10306  ;;  %v5005_v37 = vadd.f32 1.0, %v10305_v46  ;;  %v7157_v7 = vmul.f32 -1.442695, %v9209_v5  ;;  %v8618_v4 = vpop.f32.mrb[96].mxu1 }
 0x841   :  { %v5004_v12 = vadd.f32 1.0, %v10307_v13  ;;  %10316 = vpow2.f32 %v7158_v32  ;;  %v9210_v55 = vadd.f32 %v8618_v4, %v14354_v49  ;;  %v4941_v38 = vpop.f32.mrb[97].mxu1 }
 0x842   :  { %10318 = vrcp.f32 %v5005_v37  ;;  %v9211_v43 = vadd.f32 %v4941_v38, %v14355_v22  ;;  %v14357_v37 = vld [vmem:[#allocation31_spill] sm:$0xff] }
 0x843   :  { %v10309_v0 = vpop.eup %10308  ;;  %10320 = vrcp.f32 %v5004_v12 }
 0x844   :  { %v10311_v24 = vpop.eup %10310  ;;  %v5007_v45 = vadd.f32 1.0, %v10309_v0  ;;  %10322 = vpow2.f32 %v7157_v7  ;;  %v8621_v29 = vpop.f32.mrb[98].mxu1  ;;  %v14358_v7 = vld [vmem:[#allocation28_spill] sm:$0xff] }
 0x845   :  { %v5006_v21 = vadd.f32 1.0, %v10311_v24  ;;  %10324 = vtanh.f32 %v9210_v55  ;;  %v9212_v60 = vadd.f32 %v8621_v29, %v14356_v50  ;;  %v4951_v5 = vpop.f32.mrb[99].mxu1  ;;  %v14359_v24 = vld [vmem:[#allocation29_spill] sm:$0xff] }
 0x846   :  { %10326 = vrcp.f32 %v5007_v45  ;;  %v9213_v4 = vadd.f32 %v4951_v5, %v14357_v37  ;;  %v14360_v5 = vld [vmem:[#allocation32_spill] sm:$0xff] }
 0x847   :  { %v10313_v46 = vpop.eup %10312  ;;  %10328 = vrcp.f32 %v5006_v21 }
 0x848   :  { %v10315_v32 = vpop.eup %10314  ;;  %v5009_v13 = vadd.f32 1.0, %v10313_v46  ;;  %10330 = vtanh.f32 %v9211_v43  ;;  %v8624_v12 = vpop.f32.mrb[100].mxu1 }
 0x849   :  { %v5008_v49 = vadd.f32 1.0, %v10315_v32  ;;  %10332 = vtanh.f32 %v9212_v60  ;;  %v9214_v0 = vadd.f32 %v8624_v12, %v14358_v7  ;;  %v4961_v38 = vpop.f32.mrb[101].mxu1  ;;  %v14361_v12 = vld [vmem:[#allocation33_spill] sm:$0xff] }
 0x84a   :  { %10334 = vrcp.f32 %v5009_v13  ;;  %v9215_v55 = vadd.f32 %v4961_v38, %v14359_v24 }
 0x84b   :  { %v10317_v22 = vpop.eup %10316  ;;  %10336 = vrcp.f32 %v5008_v49  ;;  %v7160_v29 = vmul.f32 -1.442695, %v9214_v0 }
 0x84c   :  { %v10319_v45 = vpop.eup %10318  ;;  %v5011_v50 = vadd.f32 1.0, %v10317_v22  ;;  %10338 = vtanh.f32 %v9213_v4  ;;  %v7159_v21 = vmul.f32 -1.442695, %v9215_v55  ;;  %v8627_v46 = vpop.f32.mrb[102].mxu1 }
 0x84d   :  { %v10321_v43 = vpop.eup %10320  ;;  %10340 = vpow2.f32 %v7160_v29  ;;  %v9216_v37 = vadd.f32 %v8627_v46, %v14360_v5  ;;  %v4971_v32 = vpop.f32.mrb[103].mxu1 }
 0x84e   :  { %v10323_v60 = vpop.eup %10322  ;;  %10342 = vrcp.f32 %v5011_v50  ;;  %v9217_v7 = vadd.f32 %v4971_v32, %v14361_v12  ;;  %v14362_v50 = vld [vmem:[#allocation41_spill] sm:$0xff]  ;;  %v14363_v12 = vld [vmem:[#allocation42_spill] sm:$0xff] }
 0x84f   :  { %v10325_v13 = vpop.eup %10324  ;;  %v5010_v47 = vadd.f32 1.0, %v10323_v60  ;;  %10344 = vpow2.f32 %v7159_v21  ;;  %v7162_v38 = vmul.f32 -1.442695, %v9216_v37 }
 0x850   :  { %v10327_v49 = vpop.eup %10326  ;;  %v5061_v0 = vmul.f32 %v10325_v13, %v10319_v45  ;;  %v7161_v24 = vmul.f32 -1.442695, %v9217_v7 }
 0x851   :  { %v10329_v22 = vpop.eup %10328  ;;  %10346 = vrcp.f32 %v5010_v47 }
 0x852   :  { %v10331_v4 = vpop.eup %10330  ;;  %10348 = vpow2.f32 %v7162_v38 }
 0x853   :  { %v10333_v55 = vpop.eup %10332  ;;  %v5060_v29 = vmul.f32 %v10331_v4, %v10321_v43  ;;  %10350 = vpow2.f32 %v7161_v24 }
 0x854   :  { %v10335_v46 = vpop.eup %10334  ;;  %v5063_v5 = vmul.f32 %v10333_v55, %v10327_v49 }
 0x855   :  { %v10337_v15 = vpop.eup %10336  ;;  %v5057_v2 = vmul.f32 %v10335_v46, %v14362_v50 }
 0x856   :  { %v10339_v32 = vpop.eup %10338  ;;  %v5056_v60 = vmul.f32 %v10337_v15, %v14363_v12 }
 0x857   :  { %v10341_v21 = vpop.eup %10340  ;;  %v13582_v37 = vadd.f32 %v5061_v0, %v5057_v2  ;;  %v5062_v45 = vmul.f32 %v10339_v32, %v10329_v22  ;;  %v14365_v2 = vld [vmem:[#allocation44_spill] sm:$0xff] }
 0x858   :  { %v10343_v7 = vpop.eup %10342  ;;  %v13584_v13 = vadd.f32 %v5060_v29, %v5056_v60  ;;  %v5045_v47 = vadd.f32 1.0, %v10341_v21 }
 0x859   :  { %v10345_v38 = vpop.eup %10344  ;;  %v5059_v43 = vmul.f32 %v10343_v7, %v14364_v63  ;;  %10352 = vtanh.f32 %v13582_v37 }
 0x85a   :  { %10354 = vtanh.f32 %v13584_v13  ;;  %v5044_v24 = vadd.f32 1.0, %v10345_v38 }
 0x85b   :  { %v10347_v49 = vpop.eup %10346  ;;  %v13589_v4 = vadd.f32 %v5063_v5, %v5059_v43  ;;  %10356 = vrcp.f32 %v5045_v47 }
 0x85c   :  { %v10349_v15 = vpop.eup %10348  ;;  %v5058_v12 = vmul.f32 %v10347_v49, %v14365_v2  ;;  %10358 = vrcp.f32 %v5044_v24  ;;  %v14367_v2 = vld [vmem:[#allocation46_spill] sm:$0xff] }
 0x85d   :  { %v10351_v0 = vpop.eup %10350  ;;  %10360 = vtanh.f32 %v13589_v4  ;;  %v5047_v22 = vadd.f32 1.0, %v10349_v15  ;;  %v14366_v15 = vld [vmem:[#allocation45_spill] sm:$0xff] }
 0x85e   :  { %v13593_v55 = vadd.f32 %v5062_v45, %v5058_v12  ;;  %v5046_v63 = vadd.f32 1.0, %v10351_v0 }
 0x85f   :  { %10362 = vrcp.f32 %v5047_v22  ;;  %v13714_v22 = vld [vmem:[%s13936_s4 + $0x60] sm:$0xff] }
 0x860   :  { %10364 = vtanh.f32 %v13593_v55 }
 0x861   :  { %10366 = vrcp.f32 %v5046_v63 }
 0x863   :  { %v10353_v29 = vpop.eup %10352 }
 0x864   :  { %v10355_v46 = vpop.eup %10354 }
 0x865   :  { %v10357_v5 = vpop.eup %10356 }
 0x866   :  { %v10359_v50 = vpop.eup %10358  ;;  %v5073_v32 = vmul.f32 %v10357_v5, %v10353_v29 }
 0x867   :  { %v10361_v60 = vpop.eup %10360  ;;  %v5072_v21 = vmul.f32 %v10359_v50, %v10355_v46  ;;  %v13723_v46 = vld [vmem:[%s13936_s4 + $0x68] sm:$0xff] }
 0x869   :  { %v10363_v7 = vpop.eup %10362  ;;  %v9000_v47 = vpack.c.bf16 %v5073_v32, %v5072_v21 }
 0x86a   :  { %v10365_v38 = vpop.eup %10364  ;;  %v5075_v43 = vmul.f32 %v10363_v7, %v10361_v60  ;;  %v13739_v7 = vld [vmem:[%s13936_s4 + $0x78] sm:$0xff] }
 0x86b   :  { %v10367_v24 = vpop.eup %10366  ;;  %9001 = vmatprep.subr.bf16.mxu1 %v9000_v47 }
 0x86c   :  { %9003 = vmatpush3.bf16.msra.mxu1 %v9000_v47  ;;  %v5074_v45 = vmul.f32 %v10367_v24, %v10365_v38 }
 0x86e   :  { %v9004_v49 = vpack.c.bf16 %v5075_v43, %v5074_v45 }
 0x870   :  { %9005 = vmatprep.subr.bf16.mxu1 %v9004_v49 }
 0x871   :  { %9007 = vmatpush3.bf16.msra.mxu1 %v9004_v49 }
 0x872   :  { %9017 = vmatprep.subr.bf16.mxu1 %v13526_v3 }
 0x874   :  { %8637 = vmatmul.mubr.msk.f32.vlgmr.msra.gmra.mrb[104].mxu1 %vm574_vm2, %v14366_v15 }
 0x875   :  { %9019 = vmatpush3.bf16.msra.mxu1 %v13526_v3  ;;  %8639 = vmatprep.mubr.msk.f32.mxu1 %vm574_vm2, %v14367_v2 }
 0x876   :  { %9021 = vmatprep.subr.bf16.mxu1 %v13530_v23 }
 0x878   :  { %8640 = vmatmul.mubr.msk.f32.gmra.mrb[106].mxu1 %vm574_vm2, %v13293_v40  ;;  %v13635_v40 = vld [vmem:[%s13936_s4 + $0x8] sm:$0xff] }
 0x879   :  { %9023 = vmatpush3.bf16.msra.mxu1 %v13530_v23  ;;  %8642 = vmatprep.mubr.msk.f32.mxu1 %vm574_vm2, %v13307_v59  ;;  %v13642_v59 = vld [vmem:[%s13936_s4 + $0x10] sm:$0xff]  ;;  %v13707_v23 = vld [vmem:[%s13936_s4 + $0x58] sm:$0xff] }
 0x87c   :  { %8643 = vmatmul.mubr.msk.f32.gmra.mrb[108].mxu1 %vm574_vm2, %v13330_v35  ;;  %v13649_v35 = vld [vmem:[%s13936_s4 + $0x18] sm:$0xff] }
 0x87d   :  { %8645 = vmatprep.mubr.msk.f32.mxu1 %vm574_vm2, %v13337_v25  ;;  %v13656_v25 = vld [vmem:[%s13936_s4 + $0x20] sm:$0xff] }
 0x880   :  { %8646 = vmatmul.mubr.msk.f32.gmra.mrb[110].mxu1 %vm574_vm2, %v13359_v11  ;;  %v13663_v11 = vld [vmem:[%s13936_s4 + $0x28] sm:$0xff] }
 0x881   :  { %8648 = vmatprep.mubr.msk.f32.mxu1 %vm574_vm2, %v13371_v56  ;;  %v13670_v56 = vld [vmem:[%s13936_s4 + $0x30] sm:$0xff] }
 0x884   :  { %8649 = vmatmul.mubr.msk.f32.gmra.mrb[112].mxu1 %vm574_vm2, %v13383_v61  ;;  %v13677_v61 = vld [vmem:[%s13936_s4 + $0x38] sm:$0xff] }
 0x885   :  { %8651 = vmatprep.mubr.msk.f32.mxu1 %vm574_vm2, %v13396_v28  ;;  %v13684_v28 = vld [vmem:[%s13936_s4 + $0x40] sm:$0xff] }
 0x888   :  { %8652 = vmatmul.mubr.msk.f32.gmra.mrb[114].mxu1 %vm574_vm2, %v13412_v33  ;;  %v13691_v33 = vld [vmem:[%s13936_s4 + $0x48] sm:$0xff] }
 0x889   :  { %8654 = vmatprep.mubr.msk.f32.mxu1 %vm574_vm2, %v13424_v10 }
 0x88c   :  { %8655 = vmatmul.mubr.msk.f32.gmra.mrb[116].mxu1 %vm574_vm2, %v13431_v44  ;;  %v13698_v44 = vld [vmem:[%s13936_s4 + $0x50] sm:$0xff] }
 0x88d   :  { %8657 = vmatprep.mubr.msk.f32.mxu1 %vm574_vm2, %v13438_v1 }
 0x890   :  { %8658 = vmatmul.mubr.msk.f32.gmra.mrb[118].mxu1 %vm574_vm2, %v13445_v53 }
 0x891   :  { %8726 = vmatprep.mubr.msk.f32.mxu1 %vm574_vm2, %v13452_v16 }
 0x894   :  { %8727 = vmatmul.mubr.msk.f32.vlgmr.msra.gmra.mrb[104].mxu1 %vm574_vm2, %v13635_v40 }
 0x895   :  { %8729 = vmatprep.mubr.msk.f32.mxu1 %vm574_vm2, %v13642_v59 }
 0x898   :  { %8730 = vmatmul.mubr.msk.f32.gmra.mrb[106].mxu1 %vm574_vm2, %v13649_v35 }
 0x899   :  { %8732 = vmatprep.mubr.msk.f32.mxu1 %vm574_vm2, %v13656_v25 }
 0x89c   :  { %8733 = vmatmul.mubr.msk.f32.gmra.mrb[108].mxu1 %vm574_vm2, %v13663_v11 }
 0x89d   :  { %8735 = vmatprep.mubr.msk.f32.mxu1 %vm574_vm2, %v13670_v56 }
 0x8a0   :  { %8736 = vmatmul.mubr.msk.f32.gmra.mrb[110].mxu1 %vm574_vm2, %v13677_v61 }
 0x8a1   :  { %8738 = vmatprep.mubr.msk.f32.mxu1 %vm574_vm2, %v13684_v28 }
 0x8a4   :  { %8739 = vmatmul.mubr.msk.f32.gmra.mrb[112].mxu1 %vm574_vm2, %v13691_v33  ;;  %v8818_v10 = vpop.f32.mrb[112].mxu0 }
 0x8a5   :  { %8741 = vmatprep.mubr.msk.f32.mxu1 %vm574_vm2, %v13698_v44  ;;  %v9282_v1 = vadd.f32 %v8818_v10, %v14195_v62  ;;  %v6210_v53 = vpop.f32.mrb[113].mxu0 }
 0x8a6   :  { %v9283_v16 = vadd.f32 %v6210_v53, %v14280_v41 }
 0x8a7   :  { %v7302_v3 = vmul.f32 -1.442695, %v9282_v1 }
 0x8a8   :  { %8742 = vmatmul.mubr.msk.f32.gmra.mrb[114].mxu1 %vm574_vm2, %v13707_v23  ;;  %v7301_v12 = vmul.f32 -1.442695, %v9283_v16  ;;  %v8821_v0 = vpop.f32.mrb[114].mxu0 }
 0x8a9   :  { %10368 = vpow2.f32 %v7302_v3  ;;  %8744 = vmatprep.mubr.msk.f32.mxu1 %vm574_vm2, %v13714_v22  ;;  %v9284_v62 = vadd.f32 %v8821_v0, %v14197_v42  ;;  %v6220_v41 = vpop.f32.mrb[115].mxu0  ;;  %v13730_v42 = vld [vmem:[%s13936_s4 + $0x70] sm:$0xff] }
 0x8aa   :  { %10370 = vpow2.f32 %v7301_v12  ;;  %v9285_v63 = vadd.f32 %v6220_v41, %v14281_v34 }
 0x8ab   :  { %v7304_v29 = vmul.f32 -1.442695, %v9284_v62 }
 0x8ac   :  { %8745 = vmatmul.mubr.msk.f32.gmra.mrb[116].mxu1 %vm574_vm2, %v13723_v46  ;;  %v7303_v5 = vmul.f32 -1.442695, %v9285_v63  ;;  %v8824_v50 = vpop.f32.mrb[116].mxu0 }
 0x8ad   :  { %10372 = vpow2.f32 %v7304_v29  ;;  %8747 = vmatprep.mubr.msk.f32.mxu1 %vm574_vm2, %v13730_v42  ;;  %v9286_v34 = vadd.f32 %v8824_v50, %v14282_v51  ;;  %v6230_v32 = vpop.f32.mrb[117].mxu0  ;;  %v10742_v51 = vld [vmem:[%s13937_s5] sm:$0xff] }
 0x8ae   :  { %10374 = vpow2.f32 %v7303_v5  ;;  %v9287_v60 = vadd.f32 %v6230_v32, %v14200_v17 }
 0x8af   :  { %v7306_v21 = vmul.f32 -1.442695, %v9286_v34 }
 0x8b0   :  { %8748 = vmatmul.mubr.msk.f32.gmra.mrb[118].mxu1 %vm574_vm2, %v13739_v7  ;;  %v7305_v47 = vmul.f32 -1.442695, %v9287_v60  ;;  %v8827_v38 = vpop.f32.mrb[118].mxu0 }
 0x8b1   :  { %10376 = vpow2.f32 %v7306_v21  ;;  %v9288_v43 = vadd.f32 %v8827_v38, %v14201_v30  ;;  %v6240_v24 = vpop.f32.mrb[119].mxu0  ;;  %8758 = vmatprep.mubr.msk.f32.mxu1 %vm574_vm2, %v10742_v51 }
 0x8b2   :  { %10378 = vpow2.f32 %v7305_v47  ;;  %v9289_v17 = vadd.f32 %v6240_v24, %v14202_v14 }
 0x8b3   :  { %v10369_v45 = vpop.eup %10368  ;;  %v7308_v49 = vmul.f32 -1.442695, %v9288_v43 }
 0x8b4   :  { %v10371_v15 = vpop.eup %10370  ;;  %v6314_v2 = vadd.f32 1.0, %v10369_v45  ;;  %v7307_v10 = vmul.f32 -1.442695, %v9289_v17  ;;  %v8830_v1 = vpop.f32.mrb[120].mxu0 }
 0x8b5   :  { %v6313_v53 = vadd.f32 1.0, %v10371_v15  ;;  %10380 = vpow2.f32 %v7308_v49  ;;  %v9290_v30 = vadd.f32 %v8830_v1, %v14283_v20  ;;  %v6250_v16 = vpop.f32.mrb[121].mxu0 }
 0x8b6   :  { %10382 = vrcp.f32 %v6314_v2  ;;  %v9291_v62 = vadd.f32 %v6250_v16, %v14284_v39 }
 0x8b7   :  { %v10373_v3 = vpop.eup %10372  ;;  %10384 = vrcp.f32 %v6313_v53 }
 0x8b8   :  { %v10375_v12 = vpop.eup %10374  ;;  %v6316_v0 = vadd.f32 1.0, %v10373_v3  ;;  %10386 = vpow2.f32 %v7307_v10  ;;  %v8833_v14 = vpop.f32.mrb[122].mxu0 }
 0x8b9   :  { %v6315_v41 = vadd.f32 1.0, %v10375_v12  ;;  %10388 = vtanh.f32 %v9290_v30  ;;  %v9292_v63 = vadd.f32 %v8833_v14, %v14285_v9  ;;  %v6260_v29 = vpop.f32.mrb[123].mxu0 }
 0x8ba   :  { %10390 = vrcp.f32 %v6316_v0  ;;  %v9293_v34 = vadd.f32 %v6260_v29, %v14286_v58 }
 0x8bb   :  { %v10377_v5 = vpop.eup %10376  ;;  %10392 = vrcp.f32 %v6315_v41 }
 0x8bc   :  { %v10379_v50 = vpop.eup %10378  ;;  %v6318_v20 = vadd.f32 1.0, %v10377_v5  ;;  %10394 = vtanh.f32 %v9291_v62  ;;  %v8836_v32 = vpop.f32.mrb[124].mxu0 }
 0x8bd   :  { %v6317_v60 = vadd.f32 1.0, %v10379_v50  ;;  %10396 = vtanh.f32 %v9292_v63  ;;  %v9294_v21 = vadd.f32 %v8836_v32, %v14287_v48  ;;  %v6270_v39 = vpop.f32.mrb[125].mxu0 }
 0x8be   :  { %10398 = vrcp.f32 %v6318_v20  ;;  %v9295_v47 = vadd.f32 %v6270_v39, %v14288_v18 }
 0x8bf   :  { %v10381_v38 = vpop.eup %10380  ;;  %10400 = vrcp.f32 %v6317_v60  ;;  %v7310_v9 = vmul.f32 -1.442695, %v9294_v21 }
 0x8c0   :  { %v10383_v43 = vpop.eup %10382  ;;  %v6320_v24 = vadd.f32 1.0, %v10381_v38  ;;  %10402 = vtanh.f32 %v9293_v34  ;;  %v7309_v51 = vmul.f32 -1.442695, %v9295_v47  ;;  %v8839_v17 = vpop.f32.mrb[126].mxu0 }
 0x8c1   :  { %v10385_v45 = vpop.eup %10384  ;;  %10404 = vpow2.f32 %v7310_v9  ;;  %v9296_v58 = vadd.f32 %v8839_v17, %v14289_v31  ;;  %v6280_v49 = vpop.f32.mrb[127].mxu0 }
 0x8c2   :  { %v10387_v15 = vpop.eup %10386  ;;  %10406 = vrcp.f32 %v6320_v24  ;;  %v9297_v48 = vadd.f32 %v6280_v49, %v14244_v8 }
 0x8c3   :  { %v10389_v2 = vpop.eup %10388  ;;  %v6319_v10 = vadd.f32 1.0, %v10387_v15  ;;  %10408 = vpow2.f32 %v7309_v51  ;;  %v7312_v18 = vmul.f32 -1.442695, %v9296_v58 }
 0x8c4   :  { %v10391_v1 = vpop.eup %10390  ;;  %v6370_v53 = vmul.f32 %v10389_v2, %v10383_v43  ;;  %v7311_v30 = vmul.f32 -1.442695, %v9297_v48 }
 0x8c5   :  { %v10393_v16 = vpop.eup %10392  ;;  %10410 = vrcp.f32 %v6319_v10 }
 0x8c6   :  { %v10395_v3 = vpop.eup %10394  ;;  %10412 = vpow2.f32 %v7312_v18 }
 0x8c7   :  { %v10397_v12 = vpop.eup %10396  ;;  %v6369_v0 = vmul.f32 %v10395_v3, %v10385_v45  ;;  %10414 = vpow2.f32 %v7311_v30 }
 0x8c8   :  { %v10399_v31 = vpop.eup %10398  ;;  %v6372_v62 = vmul.f32 %v10397_v12, %v10391_v1 }
 0x8c9   :  { %v10401_v14 = vpop.eup %10400  ;;  %v6366_v41 = vmul.f32 %v10399_v31, %v13512_v36 }
 0x8ca   :  { %v10403_v8 = vpop.eup %10402  ;;  %v6365_v63 = vmul.f32 %v10401_v14, %v13514_v27 }
 0x8cb   :  { %v10405_v29 = vpop.eup %10404  ;;  %v6374_v5 = vadd.f32 %v6370_v53, %v6366_v41  ;;  %v6371_v50 = vmul.f32 %v10403_v8, %v10393_v16 }
 0x8cc   :  { %v10407_v20 = vpop.eup %10406  ;;  %v6373_v34 = vadd.f32 %v6369_v0, %v6365_v63  ;;  %v6354_v32 = vadd.f32 1.0, %v10405_v29 }
 0x8cd   :  { %v10409_v60 = vpop.eup %10408  ;;  %v6368_v21 = vmul.f32 %v10407_v20, %v13519_v57  ;;  %10416 = vtanh.f32 %v6374_v5  ;;  %v14368_v20 = vld [vmem:[#allocation20_spill] sm:$0xff] }
 0x8ce   :  { %10418 = vtanh.f32 %v6373_v34  ;;  %v6353_v39 = vadd.f32 1.0, %v10409_v60  ;;  %v14369_v60 = vld [vmem:[#allocation21_spill] sm:$0xff] }
 0x8cf   :  { %v10411_v47 = vpop.eup %10410  ;;  %v6376_v38 = vadd.f32 %v6372_v62, %v6368_v21  ;;  %10420 = vrcp.f32 %v6354_v32 }
 0x8d0   :  { %v10413_v9 = vpop.eup %10412  ;;  %v6367_v36 = vmul.f32 %v10411_v47, %v13523_v52  ;;  %10422 = vrcp.f32 %v6353_v39 }
 0x8d1   :  { %v10415_v27 = vpop.eup %10414  ;;  %10424 = vtanh.f32 %v6376_v38  ;;  %v6356_v43 = vadd.f32 1.0, %v10413_v9  ;;  %v14370_v9 = vld [vmem:[#allocation24_spill] sm:$0xff] }
 0x8d2   :  { %v6375_v24 = vadd.f32 %v6371_v50, %v6367_v36  ;;  %v6355_v51 = vadd.f32 1.0, %v10415_v27 }
 0x8d3   :  { %10426 = vrcp.f32 %v6356_v43  ;;  %v14371_v43 = vld [vmem:[#allocation25_spill] sm:$0xff] }
 0x8d4   :  { %10428 = vtanh.f32 %v6375_v24 }
 0x8d5   :  { %10430 = vrcp.f32 %v6355_v51 }
 0x8d7   :  { %v10417_v17 = vpop.eup %10416 }
 0x8d8   :  { %v10419_v57 = vpop.eup %10418 }
 0x8d9   :  { %v10421_v45 = vpop.eup %10420 }
 0x8da   :  { %v10423_v58 = vpop.eup %10422  ;;  %v6382_v49 = vmul.f32 %v10421_v45, %v10417_v17 }
 0x8db   :  { %v10425_v15 = vpop.eup %10424  ;;  %v6381_v48 = vmul.f32 %v10423_v58, %v10419_v57 }
 0x8dd   :  { %v10427_v2 = vpop.eup %10426  ;;  %v13761_v10 = vpack.c.bf16 %v6382_v49, %v6381_v48  ;;  %v14372_v48 = vld [vmem:[#allocation26_spill] sm:$0xff] }
 0x8de   :  { %v10429_v52 = vpop.eup %10428  ;;  %v6384_v18 = vmul.f32 %v10427_v2, %v10425_v15 }
 0x8df   :  { %v10431_v1 = vpop.eup %10430 }
 0x8e0   :  { %v6383_v53 = vmul.f32 %v10431_v1, %v10429_v52 }
 0x8e2   :  { %v13763_v30 = vpack.c.bf16 %v6384_v18, %v6383_v53 }
 0x967   :  { %v8728_v16 = vpop.f32.mrb[104].mxu1 }
 0x968   :  { %v9234_v3 = vadd.f32 %v8728_v16, %v14346_v54  ;;  %v5676_v12 = vpop.f32.mrb[105].mxu1  ;;  %v14373_v16 = vld [vmem:[#allocation27_spill] sm:$0xff] }
 0x969   :  { %v9235_v0 = vadd.f32 %v5676_v12, %v14347_v19 }
 0x96a   :  { %v7241_v31 = vmul.f32 -1.442695, %v9234_v3 }
 0x96b   :  { %v7240_v62 = vmul.f32 -1.442695, %v9235_v0  ;;  %v8731_v14 = vpop.f32.mrb[106].mxu1 }
 0x96c   :  { %10432 = vpow2.f32 %v7241_v31  ;;  %v9236_v41 = vadd.f32 %v8731_v14, %v14348_v6  ;;  %v5686_v8 = vpop.f32.mrb[107].mxu1  ;;  %v14374_v31 = vld [vmem:[#allocation30_spill] sm:$0xff] }
 0x96d   :  { %10434 = vpow2.f32 %v7240_v62  ;;  %v9237_v63 = vadd.f32 %v5686_v8, %v14349_v26 }
 0x96e   :  { %v7243_v29 = vmul.f32 -1.442695, %v9236_v41 }
 0x96f   :  { %v7242_v5 = vmul.f32 -1.442695, %v9237_v63  ;;  %v8734_v50 = vpop.f32.mrb[108].mxu1 }
 0x970   :  { %10436 = vpow2.f32 %v7243_v29  ;;  %v9238_v34 = vadd.f32 %v8734_v50, %v14368_v20  ;;  %v5696_v32 = vpop.f32.mrb[109].mxu1  ;;  %v14375_v29 = vld [vmem:[#allocation31_spill] sm:$0xff] }
 0x971   :  { %10438 = vpow2.f32 %v7242_v5  ;;  %v9239_v21 = vadd.f32 %v5696_v32, %v14369_v60  ;;  %v14376_v32 = vld [vmem:[#allocation28_spill] sm:$0xff] }
 0x972   :  { %v7245_v39 = vmul.f32 -1.442695, %v9238_v34 }
 0x973   :  { %v7244_v47 = vmul.f32 -1.442695, %v9239_v21  ;;  %v8737_v38 = vpop.f32.mrb[110].mxu1 }
 0x974   :  { %10440 = vpow2.f32 %v7245_v39  ;;  %v9240_v36 = vadd.f32 %v8737_v38, %v14370_v9  ;;  %v5706_v27 = vpop.f32.mrb[111].mxu1 }
 0x975   :  { %10442 = vpow2.f32 %v7244_v47  ;;  %v9241_v24 = vadd.f32 %v5706_v27, %v14371_v43  ;;  %v14377_v47 = vld [vmem:[#allocation29_spill] sm:$0xff] }
 0x976   :  { %v10433_v51 = vpop.eup %10432  ;;  %v7247_v17 = vmul.f32 -1.442695, %v9240_v36 }
 0x977   :  { %v10435_v57 = vpop.eup %10434  ;;  %v5780_v45 = vadd.f32 1.0, %v10433_v51  ;;  %v7246_v58 = vmul.f32 -1.442695, %v9241_v24  ;;  %v8740_v49 = vpop.f32.mrb[112].mxu1 }
 0x978   :  { %v5779_v15 = vadd.f32 1.0, %v10435_v57  ;;  %10444 = vpow2.f32 %v7247_v17  ;;  %v9242_v2 = vadd.f32 %v8740_v49, %v14372_v48  ;;  %v5716_v52 = vpop.f32.mrb[113].mxu1 }
 0x979   :  { %10446 = vrcp.f32 %v5780_v45  ;;  %v9243_v3 = vadd.f32 %v5716_v52, %v14373_v16  ;;  %v14379_v52 = vld [vmem:[#allocation33_spill] sm:$0xff] }
 0x97a   :  { %v10437_v18 = vpop.eup %10436  ;;  %10448 = vrcp.f32 %v5779_v15 }
 0x97b   :  { %v10439_v1 = vpop.eup %10438  ;;  %v5782_v53 = vadd.f32 1.0, %v10437_v18  ;;  %10450 = vpow2.f32 %v7246_v58  ;;  %v8743_v12 = vpop.f32.mrb[114].mxu1  ;;  %v14378_v58 = vld [vmem:[#allocation32_spill] sm:$0xff] }
 0x97c   :  { %v5781_v0 = vadd.f32 1.0, %v10439_v1  ;;  %10452 = vtanh.f32 %v9242_v2  ;;  %v9244_v62 = vadd.f32 %v8743_v12, %v14374_v31  ;;  %v5726_v14 = vpop.f32.mrb[115].mxu1 }
 0x97d   :  { %10454 = vrcp.f32 %v5782_v53  ;;  %v9245_v5 = vadd.f32 %v5726_v14, %v14375_v29 }
 0x97e   :  { %v10441_v41 = vpop.eup %10440  ;;  %10456 = vrcp.f32 %v5781_v0 }
 0x97f   :  { %v10443_v8 = vpop.eup %10442  ;;  %v5784_v63 = vadd.f32 1.0, %v10441_v41  ;;  %10458 = vtanh.f32 %v9243_v3  ;;  %v8746_v50 = vpop.f32.mrb[116].mxu1 }
 0x980   :  { %v5783_v34 = vadd.f32 1.0, %v10443_v8  ;;  %10460 = vtanh.f32 %v9244_v62  ;;  %v9246_v21 = vadd.f32 %v8746_v50, %v14376_v32  ;;  %v5736_v39 = vpop.f32.mrb[117].mxu1 }
 0x981   :  { %10462 = vrcp.f32 %v5784_v63  ;;  %v9247_v38 = vadd.f32 %v5736_v39, %v14377_v47 }
 0x982   :  { %v10445_v36 = vpop.eup %10444  ;;  %10464 = vrcp.f32 %v5783_v34  ;;  %v7249_v27 = vmul.f32 -1.442695, %v9246_v21 }
 0x983   :  { %v10447_v24 = vpop.eup %10446  ;;  %v5786_v51 = vadd.f32 1.0, %v10445_v36  ;;  %10466 = vtanh.f32 %v9245_v5  ;;  %v7248_v17 = vmul.f32 -1.442695, %v9247_v38  ;;  %v8749_v57 = vpop.f32.mrb[118].mxu1 }
 0x984   :  { %v10449_v45 = vpop.eup %10448  ;;  %10468 = vpow2.f32 %v7249_v27  ;;  %v9248_v49 = vadd.f32 %v8749_v57, %v14378_v58  ;;  %v5746_v15 = vpop.f32.mrb[119].mxu1 }
 0x985   :  { %v10451_v2 = vpop.eup %10450  ;;  %10470 = vrcp.f32 %v5786_v51  ;;  %v9249_v18 = vadd.f32 %v5746_v15, %v14379_v52 }
 0x986   :  { %v10453_v1 = vpop.eup %10452  ;;  %v5785_v53 = vadd.f32 1.0, %v10451_v2  ;;  %10472 = vpow2.f32 %v7248_v17  ;;  %v7251_v3 = vmul.f32 -1.442695, %v9248_v49 }
 0x987   :  { %v10455_v12 = vpop.eup %10454  ;;  %v5836_v0 = vmul.f32 %v10453_v1, %v10447_v24  ;;  %v7250_v62 = vmul.f32 -1.442695, %v9249_v18 }
 0x988   :  { %v10457_v14 = vpop.eup %10456  ;;  %10474 = vrcp.f32 %v5785_v53 }
 0x989   :  { %v10459_v41 = vpop.eup %10458  ;;  %10476 = vpow2.f32 %v7251_v3 }
 0x98a   :  { %v10461_v8 = vpop.eup %10460  ;;  %v5835_v63 = vmul.f32 %v10459_v41, %v10449_v45  ;;  %10478 = vpow2.f32 %v7250_v62 }
 0x98b   :  { %v10463_v5 = vpop.eup %10462  ;;  %v5838_v50 = vmul.f32 %v10461_v8, %v10455_v12 }
 0x98c   :  { %v10465_v34 = vpop.eup %10464  ;;  %v5832_v21 = vmul.f32 %v10463_v5, %v13582_v37 }
 0x98d   :  { %v10467_v39 = vpop.eup %10466  ;;  %v5831_v38 = vmul.f32 %v10465_v34, %v13584_v13 }
 0x98e   :  { %v10469_v36 = vpop.eup %10468  ;;  %v13783_v27 = vadd.f32 %v5836_v0, %v5832_v21  ;;  %v5837_v24 = vmul.f32 %v10467_v39, %v10457_v14 }
 0x98f   :  { %v10471_v51 = vpop.eup %10470  ;;  %v13785_v17 = vadd.f32 %v5835_v63, %v5831_v38  ;;  %v5820_v57 = vadd.f32 1.0, %v10469_v36  ;;  %v10743_v36 = vld [vmem:[%s13937_s5 + $0x8] sm:$0xff] }
 0x990   :  { %v10473_v49 = vpop.eup %10472  ;;  %v5834_v45 = vmul.f32 %v10471_v51, %v13589_v4  ;;  %10480 = vtanh.f32 %v13783_v27  ;;  %v10745_v51 = vld [vmem:[%s13937_s5 + $0x18] sm:$0xff] }
 0x991   :  { %10482 = vtanh.f32 %v13785_v17  ;;  %v5819_v15 = vadd.f32 1.0, %v10473_v49  ;;  %v10748_v49 = vld [vmem:[%s13937_s5 + $0x30] sm:$0xff] }
 0x992   :  { %v10475_v37 = vpop.eup %10474  ;;  %v13790_v2 = vadd.f32 %v5838_v50, %v5834_v45  ;;  %10484 = vrcp.f32 %v5820_v57  ;;  %v10747_v57 = vld [vmem:[%s13937_s5 + $0x28] sm:$0xff]  ;;  %v10750_v45 = vld [vmem:[%s13937_s5 + $0x40] sm:$0xff] }
 0x993   :  { %v10477_v13 = vpop.eup %10476  ;;  %v5833_v18 = vmul.f32 %v10475_v37, %v13593_v55  ;;  %10486 = vrcp.f32 %v5819_v15  ;;  %v10751_v15 = vld [vmem:[%s13937_s5 + $0x48] sm:$0xff]  ;;  %v10752_v37 = vld [vmem:[%s13937_s5 + $0x50] sm:$0xff] }
 0x994   :  { %v10479_v1 = vpop.eup %10478  ;;  %10488 = vtanh.f32 %v13790_v2  ;;  %v5822_v53 = vadd.f32 1.0, %v10477_v13  ;;  %v10753_v13 = vld [vmem:[%s13937_s5 + $0x58] sm:$0xff] }
 0x995   :  { %v13794_v3 = vadd.f32 %v5837_v24, %v5833_v18  ;;  %v5821_v4 = vadd.f32 1.0, %v10479_v1  ;;  %v10744_v24 = vld [vmem:[%s13937_s5 + $0x10] sm:$0xff]  ;;  %v10754_v18 = vld [vmem:[%s13937_s5 + $0x60] sm:$0xff]  ;;  %v10755_v1 = vld [vmem:[%s13937_s5 + $0x68] sm:$0xff] }
 0x996   :  { %10490 = vrcp.f32 %v5822_v53  ;;  %v10756_v53 = vld [vmem:[%s13937_s5 + $0x70] sm:$0xff] }
 0x997   :  { %10492 = vtanh.f32 %v13794_v3 }
 0x998   :  { %10494 = vrcp.f32 %v5821_v4  ;;  %v10757_v4 = vld [vmem:[%s13937_s5 + $0x78] sm:$0xff] }
 0x99a   :  { %v10481_v12 = vpop.eup %10480 }
 0x99b   :  { %v10483_v0 = vpop.eup %10482 }
 0x99c   :  { %v10485_v62 = vpop.eup %10484 }
 0x99d   :  { %v10487_v14 = vpop.eup %10486  ;;  %v5848_v41 = vmul.f32 %v10485_v62, %v10481_v12  ;;  %v10758_v12 = vld [vmem:[%s13936_s4] sm:$0xff] }
 0x99e   :  { %v10489_v8 = vpop.eup %10488  ;;  %v5847_v63 = vmul.f32 %v10487_v14, %v10483_v0 }
 0x9a0   :  { %v10491_v55 = vpop.eup %10490  ;;  %v9024_v5 = vpack.c.bf16 %v5848_v41, %v5847_v63 }
 0x9a1   :  { %v10493_v50 = vpop.eup %10492  ;;  %v5850_v34 = vmul.f32 %v10491_v55, %v10489_v8 }
 0x9a2   :  { %v10495_v21 = vpop.eup %10494  ;;  %9025 = vmatprep.subr.bf16.mxu1 %v9024_v5 }
 0x9a3   :  { %9027 = vmatpush3.bf16.msra.mxu1 %v9024_v5  ;;  %v5849_v39 = vmul.f32 %v10495_v21, %v10493_v50 }
 0x9a5   :  { %v9028_v38 = vpack.c.bf16 %v5850_v34, %v5849_v39 }
 0x9a7   :  { %9029 = vmatprep.subr.bf16.mxu1 %v9028_v38 }
 0x9a8   :  { %9031 = vmatpush3.bf16.msra.mxu1 %v9028_v38 }
 0x9a9   :  { %9041 = vmatprep.subr.bf16.mxu1 %v13761_v10 }
 0x9ab   :  { %8759 = vmatmul.mubr.msk.f32.vlgmr.msra.gmra.mrb[120].mxu1 %vm574_vm2, %v10743_v36 }
 0x9ac   :  { %9043 = vmatpush3.bf16.msra.mxu1 %v13761_v10  ;;  %8761 = vmatprep.mubr.msk.f32.mxu1 %vm574_vm2, %v10744_v24  ;;  %v10746_v10 = vld [vmem:[%s13937_s5 + $0x20] sm:$0xff] }
 0x9ad   :  { %9045 = vmatprep.subr.bf16.mxu1 %v13763_v30 }
 0x9af   :  { %8762 = vmatmul.mubr.msk.f32.gmra.mrb[122].mxu1 %vm574_vm2, %v10745_v51 }
 0x9b0   :  { %9047 = vmatpush3.bf16.msra.mxu1 %v13763_v30  ;;  %8764 = vmatprep.mubr.msk.f32.mxu1 %vm574_vm2, %v10746_v10  ;;  %v10749_v30 = vld [vmem:[%s13937_s5 + $0x38] sm:$0xff] }
 0x9b3   :  { %8765 = vmatmul.mubr.msk.f32.gmra.mrb[124].mxu1 %vm574_vm2, %v10747_v57 }
 0x9b4   :  { %8767 = vmatprep.mubr.msk.f32.mxu1 %vm574_vm2, %v10748_v49 }
 0x9b7   :  { %8768 = vmatmul.mubr.msk.f32.gmra.mrb[126].mxu1 %vm574_vm2, %v10749_v30 }
 0x9b8   :  { %8770 = vmatprep.mubr.msk.f32.mxu1 %vm574_vm2, %v10750_v45 }
 0x9bb   :  { %8771 = vmatmul.mubr.msk.f32.gmra.mrb[128].mxu1 %vm574_vm2, %v10751_v15 }
 0x9bc   :  { %8773 = vmatprep.mubr.msk.f32.mxu1 %vm574_vm2, %v10752_v37 }
 0x9bf   :  { %8774 = vmatmul.mubr.msk.f32.gmra.mrb[130].mxu1 %vm574_vm2, %v10753_v13 }
 0x9c0   :  { %8776 = vmatprep.mubr.msk.f32.mxu1 %vm574_vm2, %v10754_v18 }
 0x9c3   :  { %8777 = vmatmul.mubr.msk.f32.gmra.mrb[132].mxu1 %vm574_vm2, %v10755_v1 }
 0x9c4   :  { %8779 = vmatprep.mubr.msk.f32.mxu1 %vm574_vm2, %v10756_v53 }
 0x9c7   :  { %8780 = vmatmul.mubr.msk.f32.gmra.mrb[134].mxu1 %vm574_vm2, %v10757_v4 }
 0x9c8   :  { %8848 = vmatprep.mubr.msk.f32.mxu1 %vm574_vm2, %v10758_v12 }
 0x9cb   :  { %8849 = vmatmul.mubr.msk.f32.vlgmr.msra.gmra.mrb[120].mxu1 %vm574_vm2, %v13635_v40 }
 0x9cc   :  { %8851 = vmatprep.mubr.msk.f32.mxu1 %vm574_vm2, %v13642_v59 }
 0x9cf   :  { %8852 = vmatmul.mubr.msk.f32.gmra.mrb[122].mxu1 %vm574_vm2, %v13649_v35 }
 0x9d0   :  { %8854 = vmatprep.mubr.msk.f32.mxu1 %vm574_vm2, %v13656_v25 }
 0x9d3   :  { %8855 = vmatmul.mubr.msk.f32.gmra.mrb[124].mxu1 %vm574_vm2, %v13663_v11 }
 0x9d4   :  { %8857 = vmatprep.mubr.msk.f32.mxu1 %vm574_vm2, %v13670_v56 }
 0x9d7   :  { %8858 = vmatmul.mubr.msk.f32.gmra.mrb[126].mxu1 %vm574_vm2, %v13677_v61 }
 0x9d8   :  { %8860 = vmatprep.mubr.msk.f32.mxu1 %vm574_vm2, %v13684_v28 }
 0x9db   :  { %8861 = vmatmul.mubr.msk.f32.gmra.mrb[128].mxu1 %vm574_vm2, %v13691_v33 }
 0x9dc   :  { %8863 = vmatprep.mubr.msk.f32.mxu1 %vm574_vm2, %v13698_v44 }
 0x9df   :  { %8864 = vmatmul.mubr.msk.f32.gmra.mrb[130].mxu1 %vm574_vm2, %v13707_v23 }
 0x9e0   :  { %8866 = vmatprep.mubr.msk.f32.mxu1 %vm574_vm2, %v13714_v22 }
 0x9e3   :  { %8867 = vmatmul.mubr.msk.f32.gmra.mrb[132].mxu1 %vm574_vm2, %v13723_v46 }
 0x9e4   :  { %8869 = vmatprep.mubr.msk.f32.mxu1 %vm574_vm2, %v13730_v42 }
 0x9e7   :  { %8870 = vmatmul.mubr.msk.f32.gmra.mrb[134].mxu1 %vm574_vm2, %v13739_v7 }
 0xa9e   :  { %v8850_v40 = vpop.f32.mrb[120].mxu1 }
 0xa9f   :  { %v9266_v59 = vadd.f32 %v8850_v40, %v14346_v54  ;;  %v6451_v35 = vpop.f32.mrb[121].mxu1 }
 0xaa0   :  { %v9267_v25 = vadd.f32 %v6451_v35, %v14347_v19 }
 0xaa1   :  { %v7330_v11 = vmul.f32 -1.442695, %v9266_v59 }
 0xaa2   :  { %v7329_v56 = vmul.f32 -1.442695, %v9267_v25  ;;  %v8853_v61 = vpop.f32.mrb[122].mxu1 }
 0xaa3   :  { %10496 = vpow2.f32 %v7330_v11  ;;  %v9268_v28 = vadd.f32 %v8853_v61, %v14348_v6  ;;  %v6461_v33 = vpop.f32.mrb[123].mxu1 }
 0xaa4   :  { %10498 = vpow2.f32 %v7329_v56  ;;  %v9269_v44 = vadd.f32 %v6461_v33, %v14349_v26 }
 0xaa5   :  { %v7332_v23 = vmul.f32 -1.442695, %v9268_v28 }
 0xaa6   :  { %v7331_v22 = vmul.f32 -1.442695, %v9269_v44  ;;  %v8856_v46 = vpop.f32.mrb[124].mxu1 }
 0xaa7   :  { %10500 = vpow2.f32 %v7332_v23  ;;  %v9270_v42 = vadd.f32 %v8856_v46, %v14368_v20  ;;  %v6471_v54 = vpop.f32.mrb[125].mxu1 }
 0xaa8   :  { %10502 = vpow2.f32 %v7331_v22  ;;  %v9271_v19 = vadd.f32 %v6471_v54, %v14369_v60 }
 0xaa9   :  { %v7334_v7 = vmul.f32 -1.442695, %v9270_v42 }
 0xaaa   :  { %v7333_v0 = vmul.f32 -1.442695, %v9271_v19  ;;  %v8859_v62 = vpop.f32.mrb[126].mxu1 }
 0xaab   :  { %10504 = vpow2.f32 %v7334_v7  ;;  %v9272_v6 = vadd.f32 %v8859_v62, %v14370_v9  ;;  %v6481_v14 = vpop.f32.mrb[127].mxu1 }
 0xaac   :  { %10506 = vpow2.f32 %v7333_v0  ;;  %v9273_v26 = vadd.f32 %v6481_v14, %v14371_v43 }
 0xaad   :  { %v10497_v41 = vpop.eup %10496  ;;  %v7336_v8 = vmul.f32 -1.442695, %v9272_v6 }
 0xaae   :  { %v10499_v63 = vpop.eup %10498  ;;  %v6555_v55 = vadd.f32 1.0, %v10497_v41  ;;  %v7335_v5 = vmul.f32 -1.442695, %v9273_v26  ;;  %v8862_v20 = vpop.f32.mrb[128].mxu1 }
 0xaaf   :  { %v6554_v50 = vadd.f32 1.0, %v10499_v63  ;;  %10508 = vpow2.f32 %v7336_v8  ;;  %v9274_v60 = vadd.f32 %v8862_v20, %v14372_v48  ;;  %v6491_v34 = vpop.f32.mrb[129].mxu1 }
 0xab0   :  { %10510 = vrcp.f32 %v6555_v55  ;;  %v9275_v38 = vadd.f32 %v6491_v34, %v14373_v16 }
 0xab1   :  { %v10501_v21 = vpop.eup %10500  ;;  %10512 = vrcp.f32 %v6554_v50 }
 0xab2   :  { %v10503_v39 = vpop.eup %10502  ;;  %v6557_v9 = vadd.f32 1.0, %v10501_v21  ;;  %10514 = vpow2.f32 %v7335_v5  ;;  %v8865_v43 = vpop.f32.mrb[130].mxu1 }
 0xab3   :  { %v6556_v36 = vadd.f32 1.0, %v10503_v39  ;;  %10516 = vtanh.f32 %v9274_v60  ;;  %v9276_v24 = vadd.f32 %v8865_v43, %v14374_v31  ;;  %v6501_v51 = vpop.f32.mrb[131].mxu1 }
 0xab4   :  { %10518 = vrcp.f32 %v6557_v9  ;;  %v9277_v49 = vadd.f32 %v6501_v51, %v14375_v29 }
 0xab5   :  { %v10505_v10 = vpop.eup %10504  ;;  %10520 = vrcp.f32 %v6556_v36 }
 0xab6   :  { %v10507_v57 = vpop.eup %10506  ;;  %v6559_v48 = vadd.f32 1.0, %v10505_v10  ;;  %10522 = vtanh.f32 %v9275_v38  ;;  %v8868_v30 = vpop.f32.mrb[132].mxu1 }
 0xab7   :  { %v6558_v45 = vadd.f32 1.0, %v10507_v57  ;;  %10524 = vtanh.f32 %v9276_v24  ;;  %v9278_v15 = vadd.f32 %v8868_v30, %v14376_v32  ;;  %v6511_v16 = vpop.f32.mrb[133].mxu1 }
 0xab8   :  { %10526 = vrcp.f32 %v6559_v48  ;;  %v9279_v37 = vadd.f32 %v6511_v16, %v14377_v47 }
 0xab9   :  { %v10509_v13 = vpop.eup %10508  ;;  %10528 = vrcp.f32 %v6558_v45  ;;  %v7338_v31 = vmul.f32 -1.442695, %v9278_v15 }
 0xaba   :  { %v10511_v18 = vpop.eup %10510  ;;  %v6561_v1 = vadd.f32 1.0, %v10509_v13  ;;  %10530 = vtanh.f32 %v9277_v49  ;;  %v7337_v53 = vmul.f32 -1.442695, %v9279_v37  ;;  %v8871_v4 = vpop.f32.mrb[134].mxu1 }
 0xabb   :  { %v10513_v12 = vpop.eup %10512  ;;  %10532 = vpow2.f32 %v7338_v31  ;;  %v9280_v29 = vadd.f32 %v8871_v4, %v14378_v58  ;;  %v6521_v40 = vpop.f32.mrb[135].mxu1 }
 0xabc   :  { %v10515_v59 = vpop.eup %10514  ;;  %10534 = vrcp.f32 %v6561_v1  ;;  %v9281_v32 = vadd.f32 %v6521_v40, %v14379_v52 }
 0xabd   :  { %v10517_v35 = vpop.eup %10516  ;;  %v6560_v25 = vadd.f32 1.0, %v10515_v59  ;;  %10536 = vpow2.f32 %v7337_v53  ;;  %v7340_v47 = vmul.f32 -1.442695, %v9280_v29 }
 0xabe   :  { %v10519_v11 = vpop.eup %10518  ;;  %v6611_v56 = vmul.f32 %v10517_v35, %v10511_v18  ;;  %v7339_v61 = vmul.f32 -1.442695, %v9281_v32 }
 0xabf   :  { %v10521_v28 = vpop.eup %10520  ;;  %10538 = vrcp.f32 %v6560_v25 }
 0xac0   :  { %v10523_v33 = vpop.eup %10522  ;;  %10540 = vpow2.f32 %v7340_v47 }
 0xac1   :  { %v10525_v44 = vpop.eup %10524  ;;  %v6610_v23 = vmul.f32 %v10523_v33, %v10513_v12  ;;  %10542 = vpow2.f32 %v7339_v61 }
 0xac2   :  { %v10527_v58 = vpop.eup %10526  ;;  %v6613_v22 = vmul.f32 %v10525_v44, %v10519_v11 }
 0xac3   :  { %v10529_v46 = vpop.eup %10528  ;;  %v6607_v42 = vmul.f32 %v10527_v58, %v13783_v27 }
 0xac4   :  { %v10531_v52 = vpop.eup %10530  ;;  %v6606_v54 = vmul.f32 %v10529_v46, %v13785_v17 }
 0xac5   :  { %v10533_v19 = vpop.eup %10532  ;;  %v6615_v7 = vadd.f32 %v6611_v56, %v6607_v42  ;;  %v6612_v0 = vmul.f32 %v10531_v52, %v10521_v28 }
 0xac6   :  { %v10535_v62 = vpop.eup %10534  ;;  %v6614_v6 = vadd.f32 %v6610_v23, %v6606_v54  ;;  %v6595_v14 = vadd.f32 1.0, %v10533_v19 }
 0xac7   :  { %v10537_v26 = vpop.eup %10536  ;;  %v6609_v41 = vmul.f32 %v10535_v62, %v13790_v2  ;;  %10544 = vtanh.f32 %v6615_v7 }
 0xac8   :  { %10546 = vtanh.f32 %v6614_v6  ;;  %v6594_v8 = vadd.f32 1.0, %v10537_v26 }
 0xac9   :  { %v10539_v63 = vpop.eup %10538  ;;  %v6617_v55 = vadd.f32 %v6613_v22, %v6609_v41  ;;  %10548 = vrcp.f32 %v6595_v14 }
 0xaca   :  { %v10541_v5 = vpop.eup %10540  ;;  %v6608_v27 = vmul.f32 %v10539_v63, %v13794_v3  ;;  %10550 = vrcp.f32 %v6594_v8 }
 0xacb   :  { %v10543_v17 = vpop.eup %10542  ;;  %10552 = vtanh.f32 %v6617_v55  ;;  %v6597_v20 = vadd.f32 1.0, %v10541_v5 }
 0xacc   :  { %v6616_v50 = vadd.f32 %v6612_v0, %v6608_v27  ;;  %v6596_v60 = vadd.f32 1.0, %v10543_v17 }
 0xacd   :  { %10554 = vrcp.f32 %v6597_v20 }
 0xace   :  { %10556 = vtanh.f32 %v6616_v50 }
 0xacf   :  { %10558 = vrcp.f32 %v6596_v60 }
 0xad1   :  { %v10545_v34 = vpop.eup %10544 }
 0xad2   :  { %v10547_v2 = vpop.eup %10546 }
 0xad3   :  { %v10549_v21 = vpop.eup %10548 }
 0xad4   :  { %v10551_v39 = vpop.eup %10550  ;;  %v6623_v9 = vmul.f32 %v10549_v21, %v10545_v34 }
 0xad5   :  { %v10553_v38 = vpop.eup %10552  ;;  %v6622_v43 = vmul.f32 %v10551_v39, %v10547_v2 }
 0xad6   :  { %6636 = vst.msk [vmem:[%s13938_s7 + $0x8] sm:$0xff] %vm6634_vm4, %v6623_v9 }
 0xad7   :  { %v10555_v3 = vpop.eup %10554  ;;  %6635 = vst.msk [vmem:[%s13938_s7] sm:$0xff] %vm6634_vm4, %v6622_v43 }
 0xad8   :  { %v10557_v36 = vpop.eup %10556  ;;  %v6625_v24 = vmul.f32 %v10555_v3, %v10553_v38 }
 0xad9   :  { %v10559_v51 = vpop.eup %10558 }
 0xada   :  { %6638 = vst.msk [vmem:[%s13938_s7 + $0x18] sm:$0xff] %vm6634_vm4, %v6625_v24  ;;  %v6624_v10 = vmul.f32 %v10559_v51, %v10557_v36 }
 0xadc   :  { %6637 = vst.msk [vmem:[%s13938_s7 + $0x10] sm:$0xff] %vm6634_vm4, %v6624_v10 }

</bundles_post_ra>
